<compile_context>
chip_gen: v5e
topology: v5e:2x2
jax: 0.10.0
libtpu: 0.0.40
codegen_flags: <defaults>
</compile_context>

<pallas_src>
import jax
import jax.numpy as jnp
from jax import lax
from jax.experimental import pallas as pl
from jax.experimental.pallas import tpu as pltpu

CHAR_EMB_DIM = 32     # char_embedding_dim
HIDDEN_DIM = 128      # LSTM hidden size
EXTRA_DIM = 33        # guessed(26) + word_length_bits(5) + vowel_ratio(1) + lives(1)
EXTRA_PAD = 40        # 33 -> multiple of 8 (zero-padded)
OUT_PAD = 128         # 26 -> full 128-lane output (lane-dense store)
VOCAB = 28
N_ACTIONS = 26
MLP1 = 256
MLP2 = 128


def _round_up(x, m):
    return (x + m - 1) // m * m


def hangman_dqn_kernel(emb_ref, extra_ref,
                       wih_ref, whh_ref, blstm_ref,
                       w1h_ref, w1x_ref, b1_ref,
                       w2_ref, b2_ref,
                       w3_ref, b3_ref,
                       out_ref,
                       xg_ref):
    """One batch block: LSTM recurrence + MLP head.

    emb_ref   : [T, TB, E]   bf16  time-major embedded chars (batch block)
    extra_ref : [TB, 40]     bf16  zero-padded hand features
    wih_ref   : [E, 4H]      bf16  LSTM input->gates (PyTorch i,f,g,o order)
    whh_ref   : [H, 4H]      bf16  LSTM hidden->gates
    blstm_ref : [1, 4H]      f32   b_ih + b_hh
    w1h/w1x   : [H,256]/[40,256] bf16  first Linear split (no in-kernel concat)
    w2        : [256,128]    bf16
    w3        : [128,128]    bf16  zero-padded to 128 output lanes
    b1,b2,b3  : f32 biases (b3 padded to 128 lanes)
    out_ref   : [TB, 128]    f32   Q-values (first 26 lanes valid)
    xg_ref    : [T, TB, 4H]  f32   scratch: hoisted input projection
    """
    T, TB, E = emb_ref.shape
    H = whh_ref.shape[0]

    # ---- hoisted input projection: ONE big matmul, bias folded in once ----
    x_flat = emb_ref[...].reshape(T * TB, E)                       # bf16
    xg_ref[...] = (jnp.dot(x_flat, wih_ref[...],
                           preferred_element_type=jnp.float32)
                   + blstm_ref[...]).reshape(T, TB, 4 * H)         # f32

    whh = whh_ref[...]                                             # bf16, hoisted

    def step(t, carry):
        h, c = carry
        gates = xg_ref[t] + jnp.dot(h.astype(whh.dtype), whh,
                                    preferred_element_type=jnp.float32)
        i_g = jax.nn.sigmoid(gates[:, 0 * H:1 * H])
        f_g = jax.nn.sigmoid(gates[:, 1 * H:2 * H])
        g_g = jnp.tanh(gates[:, 2 * H:3 * H])
        o_g = jax.nn.sigmoid(gates[:, 3 * H:4 * H])
        c_new = f_g * c + i_g * g_g
        h_new = o_g * jnp.tanh(c_new)
        return h_new, c_new

    h0 = jnp.zeros((TB, H), jnp.float32)
    c0 = jnp.zeros((TB, H), jnp.float32)
    unroll = True if T <= 32 else 8     # full unroll only for short sequences
    h, _ = lax.fori_loop(0, T, step, (h0, c0), unroll=unroll)

    # ---- MLP head (dropout = identity in eval mode) ----
    z1 = (jnp.dot(h.astype(jnp.bfloat16), w1h_ref[...],
                  preferred_element_type=jnp.float32)
          + jnp.dot(extra_ref[...], w1x_ref[...],
                    preferred_element_type=jnp.float32)
          + b1_ref[...])
    a1 = jnp.maximum(z1, 0.0).astype(jnp.bfloat16)
    z2 = jnp.dot(a1, w2_ref[...], preferred_element_type=jnp.float32) + b2_ref[...]
    a2 = jnp.maximum(z2, 0.0).astype(jnp.bfloat16)
    out_ref[...] = (jnp.dot(a2, w3_ref[...],
                            preferred_element_type=jnp.float32)
                    + b3_ref[...]).astype(out_ref.dtype)


def init_params(key):
    ks = jax.random.split(key, 12)
    s = 0.1
    emb_table = s * jax.random.normal(ks[0], (VOCAB, CHAR_EMB_DIM), jnp.float32)
    emb_table = emb_table.at[0].set(0.0)  # padding_idx=0

    H4 = 4 * HIDDEN_DIM
    params = dict(
        emb_table=emb_table,
        w_ih=s * jax.random.normal(ks[1], (CHAR_EMB_DIM, H4), jnp.float32),
        w_hh=s * jax.random.normal(ks[2], (HIDDEN_DIM, H4), jnp.float32),
        b_lstm=(s * jax.random.normal(ks[3], (1, H4), jnp.float32)
                + s * jax.random.normal(ks[4], (1, H4), jnp.float32)),  # b_ih + b_hh
        w1=s * jax.random.normal(ks[5], (HIDDEN_DIM + EXTRA_DIM, MLP1), jnp.float32),
        b1=s * jax.random.normal(ks[6], (1, MLP1), jnp.float32),
        w2=s * jax.random.normal(ks[7], (MLP1, MLP2), jnp.float32),
        b2=s * jax.random.normal(ks[8], (1, MLP2), jnp.float32),
        w3=s * jax.random.normal(ks[9], (MLP2, N_ACTIONS), jnp.float32),
        b3=s * jax.random.normal(ks[10], (1, N_ACTIONS), jnp.float32),
    )
    return params


@jax.jit
def hangman_dqn_forward(params, char_indices, guessed, word_length_bits,
                        vowel_ratio, lives):
    B, T = char_indices.shape
    H = HIDDEN_DIM
    bf16 = jnp.bfloat16

    # ---- PyTorch-style broadcasting of hand features (plain-JAX glue) ----
    def _expand2d(x):
        x = jnp.asarray(x, jnp.float32)
        if x.ndim == 1:
            x = x[None, :]
        return jnp.broadcast_to(x, (B, x.shape[-1]))

    def _expand_col(x):
        x = jnp.asarray(x, jnp.float32).reshape(-1)
        return jnp.broadcast_to(x, (B,))[:, None]

    guessed = _expand2d(guessed)
    word_length_bits = _expand2d(word_length_bits)
    vowel_ratio = _expand_col(vowel_ratio)
    lives = _expand_col(lives)
    extra = jnp.concatenate([guessed, word_length_bits, vowel_ratio, lives],
                            axis=1)                                # [B, 33] f32

    # ---- batch / feature padding (sublane = 16 for bf16 blocks) ----
    TB = 256 if B >= 256 else _round_up(B, 16)
    B_pad = _round_up(B, TB)

    # time-major embedding gather directly (no [B,T,E] transpose round-trip)
    emb_tm = params["emb_table"].astype(bf16)[char_indices.T]     # [T, B, E] bf16
    if B_pad != B:
        emb_tm = jnp.pad(emb_tm, ((0, 0), (0, B_pad - B), (0, 0)))

    extra_p = jnp.zeros((B_pad, EXTRA_PAD), bf16)
    extra_p = extra_p.at[:B, :EXTRA_DIM].set(extra.astype(bf16))

    # ---- weight prep: bf16 matmul operands, padded w1x / w3 / b3 ----
    w_ih = params["w_ih"].astype(bf16)
    w_hh = params["w_hh"].astype(bf16)
    b_lstm = params["b_lstm"].astype(jnp.float32)
    w1h = params["w1"][:H].astype(bf16)                           # [128, 256]
    w1x = jnp.zeros((EXTRA_PAD, MLP1), bf16).at[:EXTRA_DIM].set(
        params["w1"][H:].astype(bf16))                            # [40, 256]
    b1 = params["b1"].astype(jnp.float32)
    w2 = params["w2"].astype(bf16)
    b2 = params["b2"].astype(jnp.float32)
    w3 = jnp.zeros((MLP2, OUT_PAD), bf16).at[:, :N_ACTIONS].set(
        params["w3"].astype(bf16))                                # [128, 128]
    b3 = jnp.zeros((1, OUT_PAD), jnp.float32).at[:, :N_ACTIONS].set(
        params["b3"].astype(jnp.float32))

    const = lambda b: (0, 0)
    grid_spec = pltpu.PrefetchScalarGridSpec(
        num_scalar_prefetch=0,
        grid=(B_pad // TB,),
        in_specs=[
            pl.BlockSpec((T, TB, CHAR_EMB_DIM), lambda b: (0, b, 0)),  # emb
            pl.BlockSpec((TB, EXTRA_PAD), lambda b: (b, 0)),           # extra
            pl.BlockSpec((CHAR_EMB_DIM, 4 * H), const),                # w_ih
            pl.BlockSpec((H, 4 * H), const),                           # w_hh
            pl.BlockSpec((1, 4 * H), const),                           # b_lstm
            pl.BlockSpec((H, MLP1), const),                            # w1h
            pl.BlockSpec((EXTRA_PAD, MLP1), const),                    # w1x
            pl.BlockSpec((1, MLP1), const),                            # b1
            pl.BlockSpec((MLP1, MLP2), const),                         # w2
            pl.BlockSpec((1, MLP2), const),                            # b2
            pl.BlockSpec((MLP2, OUT_PAD), const),                      # w3
            pl.BlockSpec((1, OUT_PAD), const),                         # b3
        ],
        out_specs=pl.BlockSpec((TB, OUT_PAD), lambda b: (b, 0)),
        scratch_shapes=[pltpu.VMEM((T, TB, 4 * H), jnp.float32)],
    )

    out_p = pl.pallas_call(
        hangman_dqn_kernel,
        out_shape=jax.ShapeDtypeStruct((B_pad, OUT_PAD), jnp.float32),
        grid_spec=grid_spec,
        compiler_params=pltpu.CompilerParams(
            dimension_semantics=("parallel",)),
    )(emb_tm, extra_p,
      w_ih, w_hh, b_lstm,
      w1h, w1x, b1,
      w2, b2,
      w3, b3)

    return out_p[:B, :N_ACTIONS]


def hangman_dqn_reference(params, char_indices, guessed, word_length_bits,
                          vowel_ratio, lives):
    """Pure-JAX f32 reference mirroring the PyTorch forward (eval mode)."""
    embedded = params["emb_table"][char_indices]                  # [B, T, E]
    H = HIDDEN_DIM
    B = char_indices.shape[0]

    def step(carry, x_t):
        h, c = carry
        gates = x_t @ params["w_ih"] + h @ params["w_hh"] + params["b_lstm"]
        i_g = jax.nn.sigmoid(gates[:, 0 * H:1 * H])
        f_g = jax.nn.sigmoid(gates[:, 1 * H:2 * H])
        g_g = jnp.tanh(gates[:, 2 * H:3 * H])
        o_g = jax.nn.sigmoid(gates[:, 3 * H:4 * H])
        c = f_g * c + i_g * g_g
        h = o_g * jnp.tanh(c)
        return (h, c), None

    h0 = jnp.zeros((B, H), jnp.float32)
    c0 = jnp.zeros((B, H), jnp.float32)
    (h, _), _ = lax.scan(step, (h0, c0), jnp.transpose(embedded, (1, 0, 2)))

    if vowel_ratio.ndim == 1:
        vowel_ratio = vowel_ratio[:, None]
    if lives.ndim == 1:
        lives = lives[:, None]
    feats = jnp.concatenate([h, guessed, word_length_bits, vowel_ratio, lives],
                            axis=1)
    a1 = jnp.maximum(feats @ params["w1"] + params["b1"], 0.0)
    a2 = jnp.maximum(a1 @ params["w2"] + params["b2"], 0.0)
    return a2 @ params["w3"] + params["b3"]


if __name__ == "__main__":
    key = jax.random.PRNGKey(0)
    k_par, k_idx, k_g, k_wl, k_v, k_l = jax.random.split(key, 6)

    params = init_params(k_par)

    B, T = 2, 8
    char_indices = jax.random.randint(k_idx, (B, T), 0, VOCAB, dtype=jnp.int32)
    guessed = jax.random.bernoulli(k_g, 0.3, (B, 26)).astype(jnp.float32)
    word_length_bits = jax.random.bernoulli(k_wl, 0.5, (B, 5)).astype(jnp.float32)
    vowel_ratio = jax.random.uniform(k_v, (B,), jnp.float32)      # 1-D -> unsqueezed
    lives = jax.random.randint(k_l, (B,), 1, 7).astype(jnp.float32)

    q = hangman_dqn_forward(params, char_indices, guessed, word_length_bits,
                            vowel_ratio, lives)
    q = jax.block_until_ready(q)

    q_ref = hangman_dqn_reference(params, char_indices, guessed,
                                  word_length_bits, vowel_ratio, lives)
    assert q.shape == (B, N_ACTIONS)
    # bf16 matmul operands (f32 accumulation) vs pure-f32 reference -> loosened
    # tolerance per review guidance.
    max_err = jnp.max(jnp.abs(q - q_ref))
    assert jnp.allclose(q, q_ref, atol=5e-2, rtol=5e-2), (
        f"mismatch vs reference: max |diff| = {max_err}")

    print("KERNEL_OK")
</pallas_src>

<mosaic_0001>
module attributes {stable_mosaic.version = 11 : i64} {
  func.func @hangman_dqn_kernel(%arg0: i32, %arg1: memref<8x16x32xbf16, #tpu.memory_space<vmem>>, %arg2: memref<16x40xbf16, #tpu.memory_space<vmem>>, %arg3: memref<32x512xbf16, #tpu.memory_space<vmem>>, %arg4: memref<128x512xbf16, #tpu.memory_space<vmem>>, %arg5: memref<1x512xf32, #tpu.memory_space<vmem>>, %arg6: memref<128x256xbf16, #tpu.memory_space<vmem>>, %arg7: memref<40x256xbf16, #tpu.memory_space<vmem>>, %arg8: memref<1x256xf32, #tpu.memory_space<vmem>>, %arg9: memref<256x128xbf16, #tpu.memory_space<vmem>>, %arg10: memref<1x128xf32, #tpu.memory_space<vmem>>, %arg11: memref<128x128xbf16, #tpu.memory_space<vmem>>, %arg12: memref<1x128xf32, #tpu.memory_space<vmem>>, %arg13: memref<16x128xf32, #tpu.memory_space<vmem>>, %arg14: memref<8x16x512xf32, #tpu.memory_space<vmem>>) attributes {dimension_semantics = [#tpu.dimension_semantics<parallel>], iteration_bounds = array<i64: 1>, scalar_prefetch = 0 : i64, scratch_operands = 1 : i64, tpu.core_type = #tpu.core_type<tc>, window_params = [{transform_indices = @transform_0, window_bounds = array<i64: 8, 16, 32>}, {transform_indices = @transform_1, window_bounds = array<i64: 16, 40>}, {pipeline_mode = #tpu.pipeline_mode<synchronous>, transform_indices = @transform_2, window_bounds = array<i64: 32, 512>}, {pipeline_mode = #tpu.pipeline_mode<synchronous>, transform_indices = @transform_3, window_bounds = array<i64: 128, 512>}, {pipeline_mode = #tpu.pipeline_mode<synchronous>, transform_indices = @transform_4, window_bounds = array<i64: 1, 512>}, {pipeline_mode = #tpu.pipeline_mode<synchronous>, transform_indices = @transform_5, window_bounds = array<i64: 128, 256>}, {pipeline_mode = #tpu.pipeline_mode<synchronous>, transform_indices = @transform_6, window_bounds = array<i64: 40, 256>}, {pipeline_mode = #tpu.pipeline_mode<synchronous>, transform_indices = @transform_7, window_bounds = array<i64: 1, 256>}, {pipeline_mode = #tpu.pipeline_mode<synchronous>, transform_indices = @transform_8, window_bounds = array<i64: 256, 128>}, {pipeline_mode = #tpu.pipeline_mode<synchronous>, transform_indices = @transform_9, window_bounds = array<i64: 1, 128>}, {pipeline_mode = #tpu.pipeline_mode<synchronous>, transform_indices = @transform_10, window_bounds = array<i64: 128, 128>}, {pipeline_mode = #tpu.pipeline_mode<synchronous>, transform_indices = @transform_11, window_bounds = array<i64: 1, 128>}, {transform_indices = @transform_12, window_bounds = array<i64: 16, 128>}]} {
    %c0 = arith.constant 0 : index
    %c0_0 = arith.constant 0 : index
    %c0_1 = arith.constant 0 : index
    %0 = vector.load %arg1[%c0, %c0_0, %c0_1] : memref<8x16x32xbf16, #tpu.memory_space<vmem>>, vector<8x16x32xbf16>
    %1 = vector.shape_cast %0 : vector<8x16x32xbf16> to vector<128x32xbf16>
    %c0_2 = arith.constant 0 : index
    %c0_3 = arith.constant 0 : index
    %2 = vector.load %arg3[%c0_2, %c0_3] : memref<32x512xbf16, #tpu.memory_space<vmem>>, vector<32x512xbf16>
    %cst = arith.constant dense<0.000000e+00> : vector<128x512xf32>
    %3 = tpu.matmul %1, %2, %cst {dimension_numbers = #tpu.dot_dimension_numbers<[1], [0], [0], [1], [0, 0, 1, 1], [], []>} : vector<128x32xbf16>, vector<32x512xbf16>, vector<128x512xf32> -> vector<128x512xf32>
    %c0_4 = arith.constant 0 : index
    %c0_5 = arith.constant 0 : index
    %4 = vector.load %arg5[%c0_4, %c0_5] : memref<1x512xf32, #tpu.memory_space<vmem>>, vector<1x512xf32>
    %5 = vector.broadcast %4 : vector<1x512xf32> to vector<128x512xf32>
    %6 = arith.addf %3, %5 : vector<128x512xf32>
    %7 = vector.shape_cast %6 : vector<128x512xf32> to vector<8x16x512xf32>
    %c0_6 = arith.constant 0 : index
    %c0_7 = arith.constant 0 : index
    %c0_8 = arith.constant 0 : index
    %8 = vector.load %arg14[%c0_6, %c0_7, %c0_8] : memref<8x16x512xf32, #tpu.memory_space<vmem>>, vector<8x16x512xf32>
    tpu.vector_store %arg14[%c0_6, %c0_7, %c0_8], %7 {strides = array<i32>} : memref<8x16x512xf32, #tpu.memory_space<vmem>>, vector<8x16x512xf32>,
    %c0_9 = arith.constant 0 : index
    %c0_10 = arith.constant 0 : index
    %9 = vector.load %arg4[%c0_9, %c0_10] : memref<128x512xbf16, #tpu.memory_space<vmem>>, vector<128x512xbf16>
    %cst_11 = arith.constant 0.000000e+00 : f32
    %10 = vector.broadcast %cst_11 : f32 to vector<16x128xf32>
    %cst_12 = arith.constant 0.000000e+00 : f32
    %11 = vector.broadcast %cst_12 : f32 to vector<16x128xf32>
    %c0_i32 = arith.constant 0 : i32
    %12 = arith.index_cast %c0_i32 : i32 to index
    %c0_13 = arith.constant 0 : index
    %c0_14 = arith.constant 0 : index
    %13 = vector.load %arg14[%12, %c0_13, %c0_14] : memref<8x16x512xf32, #tpu.memory_space<vmem>>, vector<1x16x512xf32>
    %14 = vector.shape_cast %13 : vector<1x16x512xf32> to vector<16x512xf32>
    %15 = arith.truncf %10 : vector<16x128xf32> to vector<16x128xbf16>
    %cst_15 = arith.constant dense<0.000000e+00> : vector<16x512xf32>
    %16 = tpu.matmul %15, %9, %cst_15 {dimension_numbers = #tpu.dot_dimension_numbers<[1], [0], [0], [1], [0, 0, 1, 1], [], []>} : vector<16x128xbf16>, vector<128x512xbf16>, vector<16x512xf32> -> vector<16x512xf32>
    %17 = arith.addf %14, %16 : vector<16x512xf32>
    %18 = vector.extract_strided_slice %17 {offsets = [0, 0], sizes = [16, 128], strides = [1, 1]} : vector<16x512xf32> to vector<16x128xf32>
    %19 = arith.negf %18 : vector<16x128xf32>
    %20 = math.exp %19 : vector<16x128xf32>
    %cst_16 = arith.constant 1.000000e+00 : f32
    %21 = vector.broadcast %cst_16 : f32 to vector<16x128xf32>
    %22 = arith.addf %21, %20 : vector<16x128xf32>
    %23 = arith.divf %21, %22 : vector<16x128xf32>
    %24 = vector.extract_strided_slice %17 {offsets = [0, 128], sizes = [16, 128], strides = [1, 1]} : vector<16x512xf32> to vector<16x128xf32>
    %25 = arith.negf %24 : vector<16x128xf32>
    %26 = math.exp %25 : vector<16x128xf32>
    %cst_17 = arith.constant 1.000000e+00 : f32
    %27 = vector.broadcast %cst_17 : f32 to vector<16x128xf32>
    %28 = arith.addf %27, %26 : vector<16x128xf32>
    %29 = arith.divf %27, %28 : vector<16x128xf32>
    %30 = vector.extract_strided_slice %17 {offsets = [0, 256], sizes = [16, 128], strides = [1, 1]} : vector<16x512xf32> to vector<16x128xf32>
    %31 = math.tanh %30 : vector<16x128xf32>
    %32 = vector.extract_strided_slice %17 {offsets = [0, 384], sizes = [16, 128], strides = [1, 1]} : vector<16x512xf32> to vector<16x128xf32>
    %33 = arith.negf %32 : vector<16x128xf32>
    %34 = math.exp %33 : vector<16x128xf32>
    %cst_18 = arith.constant 1.000000e+00 : f32
    %35 = vector.broadcast %cst_18 : f32 to vector<16x128xf32>
    %36 = arith.addf %35, %34 : vector<16x128xf32>
    %37 = arith.divf %35, %36 : vector<16x128xf32>
    %38 = arith.mulf %29, %11 : vector<16x128xf32>
    %39 = arith.mulf %23, %31 : vector<16x128xf32>
    %40 = arith.addf %38, %39 : vector<16x128xf32>
    %41 = math.tanh %40 : vector<16x128xf32>
    %42 = arith.mulf %37, %41 : vector<16x128xf32>
    %c1_i32 = arith.constant 1 : i32
    %43 = arith.index_cast %c1_i32 : i32 to index
    %c0_19 = arith.constant 0 : index
    %c0_20 = arith.constant 0 : index
    %44 = vector.load %arg14[%43, %c0_19, %c0_20] : memref<8x16x512xf32, #tpu.memory_space<vmem>>, vector<1x16x512xf32>
    %45 = vector.shape_cast %44 : vector<1x16x512xf32> to vector<16x512xf32>
    %46 = arith.truncf %42 : vector<16x128xf32> to vector<16x128xbf16>
    %cst_21 = arith.constant dense<0.000000e+00> : vector<16x512xf32>
    %47 = tpu.matmul %46, %9, %cst_21 {dimension_numbers = #tpu.dot_dimension_numbers<[1], [0], [0], [1], [0, 0, 1, 1], [], []>} : vector<16x128xbf16>, vector<128x512xbf16>, vector<16x512xf32> -> vector<16x512xf32>
    %48 = arith.addf %45, %47 : vector<16x512xf32>
    %49 = vector.extract_strided_slice %48 {offsets = [0, 0], sizes = [16, 128], strides = [1, 1]} : vector<16x512xf32> to vector<16x128xf32>
    %50 = arith.negf %49 : vector<16x128xf32>
    %51 = math.exp %50 : vector<16x128xf32>
    %cst_22 = arith.constant 1.000000e+00 : f32
    %52 = vector.broadcast %cst_22 : f32 to vector<16x128xf32>
    %53 = arith.addf %52, %51 : vector<16x128xf32>
    %54 = arith.divf %52, %53 : vector<16x128xf32>
    %55 = vector.extract_strided_slice %48 {offsets = [0, 128], sizes = [16, 128], strides = [1, 1]} : vector<16x512xf32> to vector<16x128xf32>
    %56 = arith.negf %55 : vector<16x128xf32>
    %57 = math.exp %56 : vector<16x128xf32>
    %cst_23 = arith.constant 1.000000e+00 : f32
    %58 = vector.broadcast %cst_23 : f32 to vector<16x128xf32>
    %59 = arith.addf %58, %57 : vector<16x128xf32>
    %60 = arith.divf %58, %59 : vector<16x128xf32>
    %61 = vector.extract_strided_slice %48 {offsets = [0, 256], sizes = [16, 128], strides = [1, 1]} : vector<16x512xf32> to vector<16x128xf32>
    %62 = math.tanh %61 : vector<16x128xf32>
    %63 = vector.extract_strided_slice %48 {offsets = [0, 384], sizes = [16, 128], strides = [1, 1]} : vector<16x512xf32> to vector<16x128xf32>
    %64 = arith.negf %63 : vector<16x128xf32>
    %65 = math.exp %64 : vector<16x128xf32>
    %cst_24 = arith.constant 1.000000e+00 : f32
    %66 = vector.broadcast %cst_24 : f32 to vector<16x128xf32>
    %67 = arith.addf %66, %65 : vector<16x128xf32>
    %68 = arith.divf %66, %67 : vector<16x128xf32>
    %69 = arith.mulf %60, %40 : vector<16x128xf32>
    %70 = arith.mulf %54, %62 : vector<16x128xf32>
    %71 = arith.addf %69, %70 : vector<16x128xf32>
    %72 = math.tanh %71 : vector<16x128xf32>
    %73 = arith.mulf %68, %72 : vector<16x128xf32>
    %c2_i32 = arith.constant 2 : i32
    %74 = arith.index_cast %c2_i32 : i32 to index
    %c0_25 = arith.constant 0 : index
    %c0_26 = arith.constant 0 : index
    %75 = vector.load %arg14[%74, %c0_25, %c0_26] : memref<8x16x512xf32, #tpu.memory_space<vmem>>, vector<1x16x512xf32>
    %76 = vector.shape_cast %75 : vector<1x16x512xf32> to vector<16x512xf32>
    %77 = arith.truncf %73 : vector<16x128xf32> to vector<16x128xbf16>
    %cst_27 = arith.constant dense<0.000000e+00> : vector<16x512xf32>
    %78 = tpu.matmul %77, %9, %cst_27 {dimension_numbers = #tpu.dot_dimension_numbers<[1], [0], [0], [1], [0, 0, 1, 1], [], []>} : vector<16x128xbf16>, vector<128x512xbf16>, vector<16x512xf32> -> vector<16x512xf32>
    %79 = arith.addf %76, %78 : vector<16x512xf32>
    %80 = vector.extract_strided_slice %79 {offsets = [0, 0], sizes = [16, 128], strides = [1, 1]} : vector<16x512xf32> to vector<16x128xf32>
    %81 = arith.negf %80 : vector<16x128xf32>
    %82 = math.exp %81 : vector<16x128xf32>
    %cst_28 = arith.constant 1.000000e+00 : f32
    %83 = vector.broadcast %cst_28 : f32 to vector<16x128xf32>
    %84 = arith.addf %83, %82 : vector<16x128xf32>
    %85 = arith.divf %83, %84 : vector<16x128xf32>
    %86 = vector.extract_strided_slice %79 {offsets = [0, 128], sizes = [16, 128], strides = [1, 1]} : vector<16x512xf32> to vector<16x128xf32>
    %87 = arith.negf %86 : vector<16x128xf32>
    %88 = math.exp %87 : vector<16x128xf32>
    %cst_29 = arith.constant 1.000000e+00 : f32
    %89 = vector.broadcast %cst_29 : f32 to vector<16x128xf32>
    %90 = arith.addf %89, %88 : vector<16x128xf32>
    %91 = arith.divf %89, %90 : vector<16x128xf32>
    %92 = vector.extract_strided_slice %79 {offsets = [0, 256], sizes = [16, 128], strides = [1, 1]} : vector<16x512xf32> to vector<16x128xf32>
    %93 = math.tanh %92 : vector<16x128xf32>
    %94 = vector.extract_strided_slice %79 {offsets = [0, 384], sizes = [16, 128], strides = [1, 1]} : vector<16x512xf32> to vector<16x128xf32>
    %95 = arith.negf %94 : vector<16x128xf32>
    %96 = math.exp %95 : vector<16x128xf32>
    %cst_30 = arith.constant 1.000000e+00 : f32
    %97 = vector.broadcast %cst_30 : f32 to vector<16x128xf32>
    %98 = arith.addf %97, %96 : vector<16x128xf32>
    %99 = arith.divf %97, %98 : vector<16x128xf32>
    %100 = arith.mulf %91, %71 : vector<16x128xf32>
    %101 = arith.mulf %85, %93 : vector<16x128xf32>
    %102 = arith.addf %100, %101 : vector<16x128xf32>
    %103 = math.tanh %102 : vector<16x128xf32>
    %104 = arith.mulf %99, %103 : vector<16x128xf32>
    %c3_i32 = arith.constant 3 : i32
    %105 = arith.index_cast %c3_i32 : i32 to index
    %c0_31 = arith.constant 0 : index
    %c0_32 = arith.constant 0 : index
    %106 = vector.load %arg14[%105, %c0_31, %c0_32] : memref<8x16x512xf32, #tpu.memory_space<vmem>>, vector<1x16x512xf32>
    %107 = vector.shape_cast %106 : vector<1x16x512xf32> to vector<16x512xf32>
    %108 = arith.truncf %104 : vector<16x128xf32> to vector<16x128xbf16>
    %cst_33 = arith.constant dense<0.000000e+00> : vector<16x512xf32>
    %109 = tpu.matmul %108, %9, %cst_33 {dimension_numbers = #tpu.dot_dimension_numbers<[1], [0], [0], [1], [0, 0, 1, 1], [], []>} : vector<16x128xbf16>, vector<128x512xbf16>, vector<16x512xf32> -> vector<16x512xf32>
    %110 = arith.addf %107, %109 : vector<16x512xf32>
    %111 = vector.extract_strided_slice %110 {offsets = [0, 0], sizes = [16, 128], strides = [1, 1]} : vector<16x512xf32> to vector<16x128xf32>
    %112 = arith.negf %111 : vector<16x128xf32>
    %113 = math.exp %112 : vector<16x128xf32>
    %cst_34 = arith.constant 1.000000e+00 : f32
    %114 = vector.broadcast %cst_34 : f32 to vector<16x128xf32>
    %115 = arith.addf %114, %113 : vector<16x128xf32>
    %116 = arith.divf %114, %115 : vector<16x128xf32>
    %117 = vector.extract_strided_slice %110 {offsets = [0, 128], sizes = [16, 128], strides = [1, 1]} : vector<16x512xf32> to vector<16x128xf32>
    %118 = arith.negf %117 : vector<16x128xf32>
    %119 = math.exp %118 : vector<16x128xf32>
    %cst_35 = arith.constant 1.000000e+00 : f32
    %120 = vector.broadcast %cst_35 : f32 to vector<16x128xf32>
    %121 = arith.addf %120, %119 : vector<16x128xf32>
    %122 = arith.divf %120, %121 : vector<16x128xf32>
    %123 = vector.extract_strided_slice %110 {offsets = [0, 256], sizes = [16, 128], strides = [1, 1]} : vector<16x512xf32> to vector<16x128xf32>
    %124 = math.tanh %123 : vector<16x128xf32>
    %125 = vector.extract_strided_slice %110 {offsets = [0, 384], sizes = [16, 128], strides = [1, 1]} : vector<16x512xf32> to vector<16x128xf32>
    %126 = arith.negf %125 : vector<16x128xf32>
    %127 = math.exp %126 : vector<16x128xf32>
    %cst_36 = arith.constant 1.000000e+00 : f32
    %128 = vector.broadcast %cst_36 : f32 to vector<16x128xf32>
    %129 = arith.addf %128, %127 : vector<16x128xf32>
    %130 = arith.divf %128, %129 : vector<16x128xf32>
    %131 = arith.mulf %122, %102 : vector<16x128xf32>
    %132 = arith.mulf %116, %124 : vector<16x128xf32>
    %133 = arith.addf %131, %132 : vector<16x128xf32>
    %134 = math.tanh %133 : vector<16x128xf32>
    %135 = arith.mulf %130, %134 : vector<16x128xf32>
    %c4_i32 = arith.constant 4 : i32
    %136 = arith.index_cast %c4_i32 : i32 to index
    %c0_37 = arith.constant 0 : index
    %c0_38 = arith.constant 0 : index
    %137 = vector.load %arg14[%136, %c0_37, %c0_38] : memref<8x16x512xf32, #tpu.memory_space<vmem>>, vector<1x16x512xf32>
    %138 = vector.shape_cast %137 : vector<1x16x512xf32> to vector<16x512xf32>
    %139 = arith.truncf %135 : vector<16x128xf32> to vector<16x128xbf16>
    %cst_39 = arith.constant dense<0.000000e+00> : vector<16x512xf32>
    %140 = tpu.matmul %139, %9, %cst_39 {dimension_numbers = #tpu.dot_dimension_numbers<[1], [0], [0], [1], [0, 0, 1, 1], [], []>} : vector<16x128xbf16>, vector<128x512xbf16>, vector<16x512xf32> -> vector<16x512xf32>
    %141 = arith.addf %138, %140 : vector<16x512xf32>
    %142 = vector.extract_strided_slice %141 {offsets = [0, 0], sizes = [16, 128], strides = [1, 1]} : vector<16x512xf32> to vector<16x128xf32>
    %143 = arith.negf %142 : vector<16x128xf32>
    %144 = math.exp %143 : vector<16x128xf32>
    %cst_40 = arith.constant 1.000000e+00 : f32
    %145 = vector.broadcast %cst_40 : f32 to vector<16x128xf32>
    %146 = arith.addf %145, %144 : vector<16x128xf32>
    %147 = arith.divf %145, %146 : vector<16x128xf32>
    %148 = vector.extract_strided_slice %141 {offsets = [0, 128], sizes = [16, 128], strides = [1, 1]} : vector<16x512xf32> to vector<16x128xf32>
    %149 = arith.negf %148 : vector<16x128xf32>
    %150 = math.exp %149 : vector<16x128xf32>
    %cst_41 = arith.constant 1.000000e+00 : f32
    %151 = vector.broadcast %cst_41 : f32 to vector<16x128xf32>
    %152 = arith.addf %151, %150 : vector<16x128xf32>
    %153 = arith.divf %151, %152 : vector<16x128xf32>
    %154 = vector.extract_strided_slice %141 {offsets = [0, 256], sizes = [16, 128], strides = [1, 1]} : vector<16x512xf32> to vector<16x128xf32>
    %155 = math.tanh %154 : vector<16x128xf32>
    %156 = vector.extract_strided_slice %141 {offsets = [0, 384], sizes = [16, 128], strides = [1, 1]} : vector<16x512xf32> to vector<16x128xf32>
    %157 = arith.negf %156 : vector<16x128xf32>
    %158 = math.exp %157 : vector<16x128xf32>
    %cst_42 = arith.constant 1.000000e+00 : f32
    %159 = vector.broadcast %cst_42 : f32 to vector<16x128xf32>
    %160 = arith.addf %159, %158 : vector<16x128xf32>
    %161 = arith.divf %159, %160 : vector<16x128xf32>
    %162 = arith.mulf %153, %133 : vector<16x128xf32>
    %163 = arith.mulf %147, %155 : vector<16x128xf32>
    %164 = arith.addf %162, %163 : vector<16x128xf32>
    %165 = math.tanh %164 : vector<16x128xf32>
    %166 = arith.mulf %161, %165 : vector<16x128xf32>
    %c5_i32 = arith.constant 5 : i32
    %167 = arith.index_cast %c5_i32 : i32 to index
    %c0_43 = arith.constant 0 : index
    %c0_44 = arith.constant 0 : index
    %168 = vector.load %arg14[%167, %c0_43, %c0_44] : memref<8x16x512xf32, #tpu.memory_space<vmem>>, vector<1x16x512xf32>
    %169 = vector.shape_cast %168 : vector<1x16x512xf32> to vector<16x512xf32>
    %170 = arith.truncf %166 : vector<16x128xf32> to vector<16x128xbf16>
    %cst_45 = arith.constant dense<0.000000e+00> : vector<16x512xf32>
    %171 = tpu.matmul %170, %9, %cst_45 {dimension_numbers = #tpu.dot_dimension_numbers<[1], [0], [0], [1], [0, 0, 1, 1], [], []>} : vector<16x128xbf16>, vector<128x512xbf16>, vector<16x512xf32> -> vector<16x512xf32>
    %172 = arith.addf %169, %171 : vector<16x512xf32>
    %173 = vector.extract_strided_slice %172 {offsets = [0, 0], sizes = [16, 128], strides = [1, 1]} : vector<16x512xf32> to vector<16x128xf32>
    %174 = arith.negf %173 : vector<16x128xf32>
    %175 = math.exp %174 : vector<16x128xf32>
    %cst_46 = arith.constant 1.000000e+00 : f32
    %176 = vector.broadcast %cst_46 : f32 to vector<16x128xf32>
    %177 = arith.addf %176, %175 : vector<16x128xf32>
    %178 = arith.divf %176, %177 : vector<16x128xf32>
    %179 = vector.extract_strided_slice %172 {offsets = [0, 128], sizes = [16, 128], strides = [1, 1]} : vector<16x512xf32> to vector<16x128xf32>
    %180 = arith.negf %179 : vector<16x128xf32>
    %181 = math.exp %180 : vector<16x128xf32>
    %cst_47 = arith.constant 1.000000e+00 : f32
    %182 = vector.broadcast %cst_47 : f32 to vector<16x128xf32>
    %183 = arith.addf %182, %181 : vector<16x128xf32>
    %184 = arith.divf %182, %183 : vector<16x128xf32>
    %185 = vector.extract_strided_slice %172 {offsets = [0, 256], sizes = [16, 128], strides = [1, 1]} : vector<16x512xf32> to vector<16x128xf32>
    %186 = math.tanh %185 : vector<16x128xf32>
    %187 = vector.extract_strided_slice %172 {offsets = [0, 384], sizes = [16, 128], strides = [1, 1]} : vector<16x512xf32> to vector<16x128xf32>
    %188 = arith.negf %187 : vector<16x128xf32>
    %189 = math.exp %188 : vector<16x128xf32>
    %cst_48 = arith.constant 1.000000e+00 : f32
    %190 = vector.broadcast %cst_48 : f32 to vector<16x128xf32>
    %191 = arith.addf %190, %189 : vector<16x128xf32>
    %192 = arith.divf %190, %191 : vector<16x128xf32>
    %193 = arith.mulf %184, %164 : vector<16x128xf32>
    %194 = arith.mulf %178, %186 : vector<16x128xf32>
    %195 = arith.addf %193, %194 : vector<16x128xf32>
    %196 = math.tanh %195 : vector<16x128xf32>
    %197 = arith.mulf %192, %196 : vector<16x128xf32>
    %c6_i32 = arith.constant 6 : i32
    %198 = arith.index_cast %c6_i32 : i32 to index
    %c0_49 = arith.constant 0 : index
    %c0_50 = arith.constant 0 : index
    %199 = vector.load %arg14[%198, %c0_49, %c0_50] : memref<8x16x512xf32, #tpu.memory_space<vmem>>, vector<1x16x512xf32>
    %200 = vector.shape_cast %199 : vector<1x16x512xf32> to vector<16x512xf32>
    %201 = arith.truncf %197 : vector<16x128xf32> to vector<16x128xbf16>
    %cst_51 = arith.constant dense<0.000000e+00> : vector<16x512xf32>
    %202 = tpu.matmul %201, %9, %cst_51 {dimension_numbers = #tpu.dot_dimension_numbers<[1], [0], [0], [1], [0, 0, 1, 1], [], []>} : vector<16x128xbf16>, vector<128x512xbf16>, vector<16x512xf32> -> vector<16x512xf32>
    %203 = arith.addf %200, %202 : vector<16x512xf32>
    %204 = vector.extract_strided_slice %203 {offsets = [0, 0], sizes = [16, 128], strides = [1, 1]} : vector<16x512xf32> to vector<16x128xf32>
    %205 = arith.negf %204 : vector<16x128xf32>
    %206 = math.exp %205 : vector<16x128xf32>
    %cst_52 = arith.constant 1.000000e+00 : f32
    %207 = vector.broadcast %cst_52 : f32 to vector<16x128xf32>
    %208 = arith.addf %207, %206 : vector<16x128xf32>
    %209 = arith.divf %207, %208 : vector<16x128xf32>
    %210 = vector.extract_strided_slice %203 {offsets = [0, 128], sizes = [16, 128], strides = [1, 1]} : vector<16x512xf32> to vector<16x128xf32>
    %211 = arith.negf %210 : vector<16x128xf32>
    %212 = math.exp %211 : vector<16x128xf32>
    %cst_53 = arith.constant 1.000000e+00 : f32
    %213 = vector.broadcast %cst_53 : f32 to vector<16x128xf32>
    %214 = arith.addf %213, %212 : vector<16x128xf32>
    %215 = arith.divf %213, %214 : vector<16x128xf32>
    %216 = vector.extract_strided_slice %203 {offsets = [0, 256], sizes = [16, 128], strides = [1, 1]} : vector<16x512xf32> to vector<16x128xf32>
    %217 = math.tanh %216 : vector<16x128xf32>
    %218 = vector.extract_strided_slice %203 {offsets = [0, 384], sizes = [16, 128], strides = [1, 1]} : vector<16x512xf32> to vector<16x128xf32>
    %219 = arith.negf %218 : vector<16x128xf32>
    %220 = math.exp %219 : vector<16x128xf32>
    %cst_54 = arith.constant 1.000000e+00 : f32
    %221 = vector.broadcast %cst_54 : f32 to vector<16x128xf32>
    %222 = arith.addf %221, %220 : vector<16x128xf32>
    %223 = arith.divf %221, %222 : vector<16x128xf32>
    %224 = arith.mulf %215, %195 : vector<16x128xf32>
    %225 = arith.mulf %209, %217 : vector<16x128xf32>
    %226 = arith.addf %224, %225 : vector<16x128xf32>
    %227 = math.tanh %226 : vector<16x128xf32>
    %228 = arith.mulf %223, %227 : vector<16x128xf32>
    %c7_i32 = arith.constant 7 : i32
    %229 = arith.index_cast %c7_i32 : i32 to index
    %c0_55 = arith.constant 0 : index
    %c0_56 = arith.constant 0 : index
    %230 = vector.load %arg14[%229, %c0_55, %c0_56] : memref<8x16x512xf32, #tpu.memory_space<vmem>>, vector<1x16x512xf32>
    %231 = vector.shape_cast %230 : vector<1x16x512xf32> to vector<16x512xf32>
    %232 = arith.truncf %228 : vector<16x128xf32> to vector<16x128xbf16>
    %cst_57 = arith.constant dense<0.000000e+00> : vector<16x512xf32>
    %233 = tpu.matmul %232, %9, %cst_57 {dimension_numbers = #tpu.dot_dimension_numbers<[1], [0], [0], [1], [0, 0, 1, 1], [], []>} : vector<16x128xbf16>, vector<128x512xbf16>, vector<16x512xf32> -> vector<16x512xf32>
    %234 = arith.addf %231, %233 : vector<16x512xf32>
    %235 = vector.extract_strided_slice %234 {offsets = [0, 0], sizes = [16, 128], strides = [1, 1]} : vector<16x512xf32> to vector<16x128xf32>
    %236 = arith.negf %235 : vector<16x128xf32>
    %237 = math.exp %236 : vector<16x128xf32>
    %cst_58 = arith.constant 1.000000e+00 : f32
    %238 = vector.broadcast %cst_58 : f32 to vector<16x128xf32>
    %239 = arith.addf %238, %237 : vector<16x128xf32>
    %240 = arith.divf %238, %239 : vector<16x128xf32>
    %241 = vector.extract_strided_slice %234 {offsets = [0, 128], sizes = [16, 128], strides = [1, 1]} : vector<16x512xf32> to vector<16x128xf32>
    %242 = arith.negf %241 : vector<16x128xf32>
    %243 = math.exp %242 : vector<16x128xf32>
    %cst_59 = arith.constant 1.000000e+00 : f32
    %244 = vector.broadcast %cst_59 : f32 to vector<16x128xf32>
    %245 = arith.addf %244, %243 : vector<16x128xf32>
    %246 = arith.divf %244, %245 : vector<16x128xf32>
    %247 = vector.extract_strided_slice %234 {offsets = [0, 256], sizes = [16, 128], strides = [1, 1]} : vector<16x512xf32> to vector<16x128xf32>
    %248 = math.tanh %247 : vector<16x128xf32>
    %249 = vector.extract_strided_slice %234 {offsets = [0, 384], sizes = [16, 128], strides = [1, 1]} : vector<16x512xf32> to vector<16x128xf32>
    %250 = arith.negf %249 : vector<16x128xf32>
    %251 = math.exp %250 : vector<16x128xf32>
    %cst_60 = arith.constant 1.000000e+00 : f32
    %252 = vector.broadcast %cst_60 : f32 to vector<16x128xf32>
    %253 = arith.addf %252, %251 : vector<16x128xf32>
    %254 = arith.divf %252, %253 : vector<16x128xf32>
    %255 = arith.mulf %246, %226 : vector<16x128xf32>
    %256 = arith.mulf %240, %248 : vector<16x128xf32>
    %257 = arith.addf %255, %256 : vector<16x128xf32>
    %258 = math.tanh %257 : vector<16x128xf32>
    %259 = arith.mulf %254, %258 : vector<16x128xf32>
    %c8_i32 = arith.constant 8 : i32
    %260 = arith.truncf %259 : vector<16x128xf32> to vector<16x128xbf16>
    %c0_61 = arith.constant 0 : index
    %c0_62 = arith.constant 0 : index
    %261 = vector.load %arg6[%c0_61, %c0_62] : memref<128x256xbf16, #tpu.memory_space<vmem>>, vector<128x256xbf16>
    %cst_63 = arith.constant dense<0.000000e+00> : vector<16x256xf32>
    %262 = tpu.matmul %260, %261, %cst_63 {dimension_numbers = #tpu.dot_dimension_numbers<[1], [0], [0], [1], [0, 0, 1, 1], [], []>} : vector<16x128xbf16>, vector<128x256xbf16>, vector<16x256xf32> -> vector<16x256xf32>
    %c0_64 = arith.constant 0 : index
    %c0_65 = arith.constant 0 : index
    %263 = vector.load %arg2[%c0_64, %c0_65] : memref<16x40xbf16, #tpu.memory_space<vmem>>, vector<16x40xbf16>
    %c0_66 = arith.constant 0 : index
    %c0_67 = arith.constant 0 : index
    %264 = vector.load %arg7[%c0_66, %c0_67] : memref<40x256xbf16, #tpu.memory_space<vmem>>, vector<40x256xbf16>
    %cst_68 = arith.constant dense<0.000000e+00> : vector<16x256xf32>
    %265 = tpu.matmul %263, %264, %cst_68 {dimension_numbers = #tpu.dot_dimension_numbers<[1], [0], [0], [1], [0, 0, 1, 1], [], []>} : vector<16x40xbf16>, vector<40x256xbf16>, vector<16x256xf32> -> vector<16x256xf32>
    %266 = arith.addf %262, %265 : vector<16x256xf32>
    %c0_69 = arith.constant 0 : index
    %c0_70 = arith.constant 0 : index
    %267 = vector.load %arg8[%c0_69, %c0_70] : memref<1x256xf32, #tpu.memory_space<vmem>>, vector<1x256xf32>
    %268 = vector.broadcast %267 : vector<1x256xf32> to vector<16x256xf32>
    %269 = arith.addf %266, %268 : vector<16x256xf32>
    %cst_71 = arith.constant 0.000000e+00 : f32
    %270 = vector.broadcast %cst_71 : f32 to vector<16x256xf32>
    %271 = arith.maximumf %269, %270 : vector<16x256xf32>
    %272 = arith.truncf %271 : vector<16x256xf32> to vector<16x256xbf16>
    %c0_72 = arith.constant 0 : index
    %c0_73 = arith.constant 0 : index
    %273 = vector.load %arg9[%c0_72, %c0_73] : memref<256x128xbf16, #tpu.memory_space<vmem>>, vector<256x128xbf16>
    %cst_74 = arith.constant dense<0.000000e+00> : vector<16x128xf32>
    %274 = tpu.matmul %272, %273, %cst_74 {dimension_numbers = #tpu.dot_dimension_numbers<[1], [0], [0], [1], [0, 0, 1, 1], [], []>} : vector<16x256xbf16>, vector<256x128xbf16>, vector<16x128xf32> -> vector<16x128xf32>
    %c0_75 = arith.constant 0 : index
    %c0_76 = arith.constant 0 : index
    %275 = vector.load %arg10[%c0_75, %c0_76] : memref<1x128xf32, #tpu.memory_space<vmem>>, vector<1x128xf32>
    %276 = vector.broadcast %275 : vector<1x128xf32> to vector<16x128xf32>
    %277 = arith.addf %274, %276 : vector<16x128xf32>
    %cst_77 = arith.constant 0.000000e+00 : f32
    %278 = vector.broadcast %cst_77 : f32 to vector<16x128xf32>
    %279 = arith.maximumf %277, %278 : vector<16x128xf32>
    %280 = arith.truncf %279 : vector<16x128xf32> to vector<16x128xbf16>
    %c0_78 = arith.constant 0 : index
    %c0_79 = arith.constant 0 : index
    %281 = vector.load %arg11[%c0_78, %c0_79] : memref<128x128xbf16, #tpu.memory_space<vmem>>, vector<128x128xbf16>
    %cst_80 = arith.constant dense<0.000000e+00> : vector<16x128xf32>
    %282 = tpu.matmul %280, %281, %cst_80 {dimension_numbers = #tpu.dot_dimension_numbers<[1], [0], [0], [1], [0, 0, 1, 1], [], []>} : vector<16x128xbf16>, vector<128x128xbf16>, vector<16x128xf32> -> vector<16x128xf32>
    %c0_81 = arith.constant 0 : index
    %c0_82 = arith.constant 0 : index
    %283 = vector.load %arg12[%c0_81, %c0_82] : memref<1x128xf32, #tpu.memory_space<vmem>>, vector<1x128xf32>
    %284 = vector.broadcast %283 : vector<1x128xf32> to vector<16x128xf32>
    %285 = arith.addf %282, %284 : vector<16x128xf32>
    %c0_83 = arith.constant 0 : index
    %c0_84 = arith.constant 0 : index
    %286 = vector.load %arg13[%c0_83, %c0_84] : memref<16x128xf32, #tpu.memory_space<vmem>>, vector<16x128xf32>
    tpu.vector_store %arg13[%c0_83, %c0_84], %285 {strides = array<i32>} : memref<16x128xf32, #tpu.memory_space<vmem>>, vector<16x128xf32>,
    return
  }
  func.func @transform_0(%arg0: i32) -> (i32, i32, i32) {
    %c0_i32 = arith.constant 0 : i32
    %c0_i32_0 = arith.constant 0 : i32
    %c0_i32_1 = arith.constant 0 : i32
    return %c0_i32, %arg0, %c0_i32_0 : i32, i32, i32
  }
  func.func @transform_1(%arg0: i32) -> (i32, i32) {
    %c0_i32 = arith.constant 0 : i32
    %c0_i32_0 = arith.constant 0 : i32
    return %arg0, %c0_i32 : i32, i32
  }
  func.func @transform_2(%arg0: i32) -> (i32, i32) {
    %c0_i32 = arith.constant 0 : i32
    %c0_i32_0 = arith.constant 0 : i32
    %c0_i32_1 = arith.constant 0 : i32
    return %c0_i32, %c0_i32_0 : i32, i32
  }
  func.func @transform_3(%arg0: i32) -> (i32, i32) {
    %c0_i32 = arith.constant 0 : i32
    %c0_i32_0 = arith.constant 0 : i32
    %c0_i32_1 = arith.constant 0 : i32
    return %c0_i32, %c0_i32_0 : i32, i32
  }
  func.func @transform_4(%arg0: i32) -> (i32, i32) {
    %c0_i32 = arith.constant 0 : i32
    %c0_i32_0 = arith.constant 0 : i32
    %c0_i32_1 = arith.constant 0 : i32
    return %c0_i32, %c0_i32_0 : i32, i32
  }
  func.func @transform_5(%arg0: i32) -> (i32, i32) {
    %c0_i32 = arith.constant 0 : i32
    %c0_i32_0 = arith.constant 0 : i32
    %c0_i32_1 = arith.constant 0 : i32
    return %c0_i32, %c0_i32_0 : i32, i32
  }
  func.func @transform_6(%arg0: i32) -> (i32, i32) {
    %c0_i32 = arith.constant 0 : i32
    %c0_i32_0 = arith.constant 0 : i32
    %c0_i32_1 = arith.constant 0 : i32
    return %c0_i32, %c0_i32_0 : i32, i32
  }
  func.func @transform_7(%arg0: i32) -> (i32, i32) {
    %c0_i32 = arith.constant 0 : i32
    %c0_i32_0 = arith.constant 0 : i32
    %c0_i32_1 = arith.constant 0 : i32
    return %c0_i32, %c0_i32_0 : i32, i32
  }
  func.func @transform_8(%arg0: i32) -> (i32, i32) {
    %c0_i32 = arith.constant 0 : i32
    %c0_i32_0 = arith.constant 0 : i32
    %c0_i32_1 = arith.constant 0 : i32
    return %c0_i32, %c0_i32_0 : i32, i32
  }
  func.func @transform_9(%arg0: i32) -> (i32, i32) {
    %c0_i32 = arith.constant 0 : i32
    %c0_i32_0 = arith.constant 0 : i32
    %c0_i32_1 = arith.constant 0 : i32
    return %c0_i32, %c0_i32_0 : i32, i32
  }
  func.func @transform_10(%arg0: i32) -> (i32, i32) {
    %c0_i32 = arith.constant 0 : i32
    %c0_i32_0 = arith.constant 0 : i32
    %c0_i32_1 = arith.constant 0 : i32
    return %c0_i32, %c0_i32_0 : i32, i32
  }
  func.func @transform_11(%arg0: i32) -> (i32, i32) {
    %c0_i32 = arith.constant 0 : i32
    %c0_i32_0 = arith.constant 0 : i32
    %c0_i32_1 = arith.constant 0 : i32
    return %c0_i32, %c0_i32_0 : i32, i32
  }
  func.func @transform_12(%arg0: i32) -> (i32, i32) {
    %c0_i32 = arith.constant 0 : i32
    %c0_i32_0 = arith.constant 0 : i32
    return %arg0, %c0_i32 : i32, i32
  }
}

</mosaic_0001>

<bundles_post_ra>
// kernel: hangman_dqn_forward.1
= control target key start
LH: loop header
LB: loop body
LE: loop exit
PB: predicated region body
PF: predicated region fallthrough
CT: control target
= control target key end

     0   :  { %vm156_vm0 = vcmask 261120   ;;  %s5055_s2 = inlined_call_operand.vmem [shape: bf16[32,512], index: 2, kind: input, shape index: {}]   ;;  %s5056_s0 = inlined_call_operand.vmem [shape: bf16[8,16,32], index: 0, kind: input, shape index: {}]   ;;  %s5057_s3 = inlined_call_operand.vmem [shape: bf16[128,512], index: 3, kind: input, shape index: {}]   ;;  %s5058_s4 = inlined_call_operand.vmem [shape: f32[1,512], index: 4, kind: input, shape index: {}]   ;;  %s5059_s5 = inlined_call_operand.vmem [shape: bf16[128,256], index: 5, kind: input, shape index: {}]   ;;  %s5060_s6 = inlined_call_operand.vmem [shape: bf16[40,256], index: 6, kind: input, shape index: {}]   ;;  %s5061_s8 = inlined_call_operand.vmem [shape: bf16[256,128], index: 8, kind: input, shape index: {}]   ;;  %s5062_s1 = inlined_call_operand.vmem [shape: bf16[16,40], index: 1, kind: input, shape index: {}]   ;;  %s5063_s9 = inlined_call_operand.vmem [shape: f32[1,128], index: 9, kind: input, shape index: {}]   ;;  %s5064_s10 = inlined_call_operand.vmem [shape: bf16[128,128], index: 10, kind: input, shape index: {}]   ;;  %s5065_s7 = inlined_call_operand.vmem [shape: f32[1,256], index: 7, kind: input, shape index: {}]   ;;  %s5066_s11 = inlined_call_operand.vmem [shape: f32[1,128], index: 11, kind: input, shape index: {}]   ;;  %s5067_s12 = inlined_call_operand.vmem [shape: f32[16,128], index: 12, kind: output, shape index: {}]  }
   0x1   :  { %v2749_v0 = vld [vmem:[%s5055_s2 + $0x20] sm:$0xf]  ;;  %v3167_v1 = vld [vmem:[%s5055_s2 + $0x2c] sm:$0xf0]  ;;  %v3165_v2 = vld [vmem:[%s5055_s2 + $0x24] sm:$0xf] }
   0x2   :  { %v2750_v3 = vor.u32 %v3167_v1, %v2749_v0  ;;  %v2751_v4 = vld [vmem:[%s5055_s2 + $0x30] sm:$0xf0]  ;;  %v2757_v5 = vld [vmem:[%s5055_s2 + $0x28] sm:$0xf]  ;;  %v3168_v6 = vld [vmem:[%s5055_s2 + $0x34] sm:$0xf0] }
   0x3   :  { %v2754_v7 = vor.u32 %v3165_v2, %v2751_v4  ;;  %v2758_v8 = vor.u32 %v3168_v6, %v2757_v5  ;;  %v2733_v9 = vld [vmem:[%s5055_s2] sm:$0xf]  ;;  %v3163_v10 = vld [vmem:[%s5055_s2 + $0xc] sm:$0xf0]  ;;  %v3161_v11 = vld [vmem:[%s5055_s2 + $0x4] sm:$0xf] }
   0x4   :  { %187 = vmatpush.bf16.msra.mxu0 %v2750_v3  ;;  %v2734_v12 = vor.u32 %v3163_v10, %v2733_v9  ;;  %v2735_v13 = vld [vmem:[%s5055_s2 + $0x10] sm:$0xf0]  ;;  %v2741_v14 = vld [vmem:[%s5055_s2 + $0x8] sm:$0xf]  ;;  %v3164_v15 = vld [vmem:[%s5055_s2 + $0x14] sm:$0xf0] }
   0x5   :  { %236 = vmatpush.bf16.msra.mxu1 %v2754_v7  ;;  %285 = vmatpush.bf16.msra.mxu2 %v2758_v8  ;;  %v2738_v16 = vor.u32 %v3161_v11, %v2735_v13  ;;  %v2742_v17 = vor.u32 %v3164_v15, %v2741_v14  ;;  %v3166_v18 = vld [vmem:[%s5055_s2 + $0x2c] sm:$0xf]  ;;  %v3153_v19 = vld [vmem:[%s5056_s0] sm:$0xff]  ;;  %v2759_v20 = vld [vmem:[%s5055_s2 + $0x38] sm:$0xf0] }
   0x6   :  { %3246 = vmatpush.bf16.msra.mxu3 %v2758_v8  ;;  %v3162_v21 = vld [vmem:[%s5055_s2 + $0xc] sm:$0xf]  ;;  %v3624_v22 = vld [vmem:[%s5056_s0 + $0x38] sm:$0xff]  ;;  %v2762_v23 = vor.u32 %v3166_v18, %v2759_v20  ;;  %v2909_v24 = vld [vmem:[%s5057_s3 + $0xe0] sm:$0xf] }
   0x7   :  { %v3199_v25 = vld [vmem:[%s5057_s3 + $0xec] sm:$0xf0]  ;;  %v3197_v26 = vld [vmem:[%s5057_s3 + $0xe4] sm:$0xf]  ;;  %v2743_v27 = vld [vmem:[%s5055_s2 + $0x18] sm:$0xf0] }
   0x8   :  { %188 = vmatpush.bf16.msra.mxu0 %v2734_v12  ;;  %v3638_v28 = vor.u32 %v3199_v25, %v2909_v24  ;;  %v2911_v29 = vld [vmem:[%s5057_s3 + $0xf0] sm:$0xf0]  ;;  %v3198_v30 = vld [vmem:[%s5057_s3 + $0xec] sm:$0xf]  ;;  %v2919_v32 = vld [vmem:[%s5057_s3 + $0xf8] sm:$0xf0]  ;;  %v2746_v38 = vor.u32 %v3162_v21, %v2743_v27 }
   0x9   :  { %237 = vmatpush.bf16.msra.mxu1 %v2738_v16  ;;  %286 = vmatpush.bf16.msra.mxu2 %v2742_v17  ;;  %v3646_v31 = vor.u32 %v3197_v26, %v2911_v29  ;;  %v2893_v33 = vld [vmem:[%s5057_s3 + $0xc0] sm:$0xf]  ;;  %v3195_v34 = vld [vmem:[%s5057_s3 + $0xcc] sm:$0xf0]  ;;  %v3193_v36 = vld [vmem:[%s5057_s3 + $0xc4] sm:$0xf]  ;;  %v3669_v39 = vor.u32 %v3198_v30, %v2919_v32 }
   0xa   :  { %3247 = vmatpush.bf16.msra.mxu3 %v2742_v17  ;;  %v3658_v35 = vor.u32 %v3195_v34, %v2893_v33  ;;  %v2895_v37 = vld [vmem:[%s5057_s3 + $0xd0] sm:$0xf0]  ;;  %v3194_v41 = vld [vmem:[%s5057_s3 + $0xcc] sm:$0xf]  ;;  %v2903_v42 = vld [vmem:[%s5057_s3 + $0xd8] sm:$0xf0] }
   0xb   :  { %2763 = vmatmul.msk.bf16.vlgmr.msra.gmra.mxu0 %vm156_vm0, %v3153_v19  ;;  %v3674_v40 = vor.u32 %v3193_v36, %v2895_v37  ;;  %v2917_v43 = vld [vmem:[%s5057_s3 + $0xe8] sm:$0xf]  ;;  %v3200_v44 = vld [vmem:[%s5057_s3 + $0xf4] sm:$0xf0]  ;;  %v2877_v45 = vld [vmem:[%s5057_s3 + $0xa0] sm:$0xf]  ;;  %v3706_v51 = vor.u32 %v3194_v41, %v2903_v42 }
   0xc   :  { %641 = vmatpush.bf16.msrb.mxu0 %v3638_v28  ;;  %2771 = vmatmul.msk.bf16.vlgmr.msra.gmra.mxu1 %vm156_vm0, %v3153_v19  ;;  %v3191_v46 = vld [vmem:[%s5057_s3 + $0xac] sm:$0xf0]  ;;  %v3695_v47 = vor.u32 %v3200_v44, %v2917_v43  ;;  %v3189_v49 = vld [vmem:[%s5057_s3 + $0xa4] sm:$0xf]  ;;  %v2879_v50 = vld [vmem:[%s5057_s3 + $0xb0] sm:$0xf0] }
   0xd   :  { %2779 = vmatmul.msk.bf16.vlgmr.msra.gmra.mxu2 %vm156_vm0, %v3153_v19  ;;  %2786 = vmatmul.msk.bf16.vlgmr.msra.gmra.mxu3 %vm156_vm0, %v3624_v22  ;;  %v3697_v48 = vor.u32 %v3191_v46, %v2877_v45  ;;  %v3710_v52 = vor.u32 %v3189_v49, %v2879_v50  ;;  %v3154_v53 = vld [vmem:[%s5056_s0 + $0x8] sm:$0xff]  ;;  %v2887_v55 = vld [vmem:[%s5057_s3 + $0xb8] sm:$0xf0]  ;;  %v3196_v58 = vld [vmem:[%s5057_s3 + $0xd4] sm:$0xf0] }
   0xe   :  { %334 = vmatpush.bf16.msrb.mxu3 %v2762_v23  ;;  %655 = vmatpush.bf16.msrb.mxu1 %v3646_v31  ;;  %v3190_v54 = vld [vmem:[%s5057_s3 + $0xac] sm:$0xf]  ;;  %v2901_v56 = vld [vmem:[%s5057_s3 + $0xc8] sm:$0xf]  ;;  %v2861_v59 = vld [vmem:[%s5057_s3 + $0x80] sm:$0xf] }
   0xf   :  { %669 = vmatpush.bf16.msrb.mxu2 %v3695_v47  ;;  %v3731_v57 = vor.u32 %v3190_v54, %v2887_v55  ;;  %v3187_v60 = vld [vmem:[%s5057_s3 + $0x8c] sm:$0xf0]  ;;  %v3742_v61 = vor.u32 %v3196_v58, %v2901_v56  ;;  %v3185_v63 = vld [vmem:[%s5057_s3 + $0x84] sm:$0xf]  ;;  %v2863_v0 = vld [vmem:[%s5057_s3 + $0x90] sm:$0xf0] }
  0x10   :  { %642 = vmatpush.bf16.msrb.mxu0 %v3658_v35  ;;  %v3744_v62 = vor.u32 %v3187_v60, %v2861_v59  ;;  %v3753_v1 = vor.u32 %v3185_v63, %v2863_v0  ;;  %v3155_v2 = vld [vmem:[%s5056_s0 + $0x10] sm:$0xff]  ;;  %v3186_v3 = vld [vmem:[%s5057_s3 + $0x8c] sm:$0xf]  ;;  %v2871_v4 = vld [vmem:[%s5057_s3 + $0x98] sm:$0xf0] }
  0x11   :  { %v2885_v5 = vld [vmem:[%s5057_s3 + $0xa8] sm:$0xf]  ;;  %v3774_v6 = vor.u32 %v3186_v3, %v2871_v4  ;;  %v3192_v7 = vld [vmem:[%s5057_s3 + $0xb4] sm:$0xf0]  ;;  %v2845_v8 = vld [vmem:[%s5057_s3 + $0x60] sm:$0xf] }
  0x12   :  { %335 = vmatpush.bf16.msrb.mxu3 %v2746_v38  ;;  %656 = vmatpush.bf16.msrb.mxu1 %v3674_v40  ;;  %v3183_v9 = vld [vmem:[%s5057_s3 + $0x6c] sm:$0xf0]  ;;  %v3785_v10 = vor.u32 %v3192_v7, %v2885_v5  ;;  %v3181_v12 = vld [vmem:[%s5057_s3 + $0x64] sm:$0xf]  ;;  %v2847_v13 = vld [vmem:[%s5057_s3 + $0x70] sm:$0xf0] }
  0x13   :  { %670 = vmatpush.bf16.msrb.mxu2 %v3742_v61  ;;  %v3787_v11 = vor.u32 %v3183_v9, %v2845_v8  ;;  %v3796_v14 = vor.u32 %v3181_v12, %v2847_v13  ;;  %v3156_v15 = vld [vmem:[%s5056_s0 + $0x18] sm:$0xff]  ;;  %v3182_v16 = vld [vmem:[%s5057_s3 + $0x6c] sm:$0xf]  ;;  %v2869_v18 = vld [vmem:[%s5057_s3 + $0x88] sm:$0xf] }
  0x14   :  { %643 = vmatpush.bf16.msrb.mxu0 %v3697_v48  ;;  %v2855_v17 = vld [vmem:[%s5057_s3 + $0x78] sm:$0xf0]  ;;  %v3188_v20 = vld [vmem:[%s5057_s3 + $0x94] sm:$0xf0]  ;;  %v2829_v21 = vld [vmem:[%s5057_s3 + $0x40] sm:$0xf] }
  0x15   :  { %v3179_v23 = vld [vmem:[%s5057_s3 + $0x4c] sm:$0xf0]  ;;  %v3828_v24 = vor.u32 %v3188_v20, %v2869_v18  ;;  %v3177_v26 = vld [vmem:[%s5057_s3 + $0x44] sm:$0xf]  ;;  %v2831_v27 = vld [vmem:[%s5057_s3 + $0x50] sm:$0xf0] }
  0x16   :  { %683 = vmatpush.bf16.msra.mxu3 %v3669_v39  ;;  %657 = vmatpush.bf16.msrb.mxu1 %v3710_v52  ;;  %v3830_v25 = vor.u32 %v3179_v23, %v2829_v21  ;;  %v3839_v29 = vor.u32 %v3177_v26, %v2831_v27  ;;  %v3157_v30 = vld [vmem:[%s5056_s0 + $0x20] sm:$0xff]  ;;  %v2853_v32 = vld [vmem:[%s5057_s3 + $0x68] sm:$0xf]  ;;  %v3184_v33 = vld [vmem:[%s5057_s3 + $0x74] sm:$0xf0]  ;;  %v3507_v18 = vmov 0  }
  0x17   :  { %671 = vmatpush.bf16.msrb.mxu2 %v3785_v10  ;;  %v3856_v34 = vor.u32 %v3184_v33, %v2853_v32  ;;  %v3178_v36 = vld [vmem:[%s5057_s3 + $0x4c] sm:$0xf]  ;;  %v2839_v37 = vld [vmem:[%s5057_s3 + $0x58] sm:$0xf0]  ;;  %v2837_v38 = vld [vmem:[%s5057_s3 + $0x48] sm:$0xf] }
  0x18   :  { %644 = vmatpush.bf16.msrb.mxu0 %v3744_v62  ;;  %v3868_v41 = vor.u32 %v3178_v36, %v2839_v37  ;;  %v3180_v42 = vld [vmem:[%s5057_s3 + $0x54] sm:$0xf0]  ;;  %v2821_v43 = vld [vmem:[%s5057_s3 + $0x28] sm:$0xf]  ;;  %v2813_v46 = vld [vmem:[%s5057_s3 + $0x20] sm:$0xf] }
  0x19   :  { %v3176_v44 = vld [vmem:[%s5057_s3 + $0x34] sm:$0xf0]  ;;  %v3880_v45 = vor.u32 %v3180_v42, %v2837_v38  ;;  %v3175_v49 = vld [vmem:[%s5057_s3 + $0x2c] sm:$0xf0]  ;;  %v3173_v50 = vld [vmem:[%s5057_s3 + $0x24] sm:$0xf] }
  0x1a   :  { %684 = vmatpush.bf16.msra.mxu3 %v3706_v51  ;;  %658 = vmatpush.bf16.msrb.mxu1 %v3753_v1  ;;  %v2815_v54 = vld [vmem:[%s5057_s3 + $0x30] sm:$0xf0]  ;;  %v3900_v56 = vor.u32 %v3176_v44, %v2821_v43  ;;  %v2805_v58 = vld [vmem:[%s5057_s3 + $0x8] sm:$0xf]  ;;  %v3172_v59 = vld [vmem:[%s5057_s3 + $0x14] sm:$0xf0] }
  0x1b   :  { %2764 = vmatmul.msk.bf16.gmra.mxu0 %vm156_vm0, %v3154_v53  ;;  %672 = vmatpush.bf16.msrb.mxu2 %v3828_v24  ;;  %v3897_v55 = vor.u32 %v3173_v50, %v2815_v54  ;;  %v3911_v60 = vor.u32 %v3172_v59, %v2805_v58  ;;  %v3158_v63 = vld [vmem:[%s5056_s0 + $0x28] sm:$0xff]  ;;  %v2797_v3 = vld [vmem:[%s5057_s3] sm:$0xf]  ;;  %v3171_v5 = vld [vmem:[%s5057_s3 + $0xc] sm:$0xf0] }
  0x1c   :  { %2772 = vmatmul.msk.bf16.gmra.mxu1 %vm156_vm0, %v3154_v53  ;;  %645 = vmatpush.bf16.msrb.mxu0 %v3787_v11  ;;  %v3174_v0 = vld [vmem:[%s5057_s3 + $0x2c] sm:$0xf]  ;;  %v3169_v7 = vld [vmem:[%s5057_s3 + $0x4] sm:$0xf]  ;;  %v2799_v8 = vld [vmem:[%s5057_s3 + $0x10] sm:$0xf0]  ;;  %v3942_v9 = vor.u32 %v3171_v5, %v2797_v3 }
  0x1d   :  { %2780 = vmatmul.msk.bf16.gmra.mxu2 %vm156_vm0, %v3154_v53  ;;  %2787 = vmatmul.msk.bf16.vlgmr.msrb.gmra.mxu3 %vm156_vm0, %v3153_v19  ;;  %v3817_v19 = vor.u32 %v3182_v16, %v2855_v17  ;;  %v3944_v12 = vor.u32 %v3169_v7, %v2799_v8  ;;  %v3159_v13 = vld [vmem:[%s5056_s0 + $0x30] sm:$0xff]  ;;  %v2807_v16 = vld [vmem:[%s5057_s3 + $0x18] sm:$0xf0] }
  0x1e   :  { %685 = vmatpush.bf16.msra.mxu3 %v3731_v57  ;;  %659 = vmatpush.bf16.msrb.mxu1 %v3796_v14 }
  0x1f   :  { %673 = vmatpush.bf16.msrb.mxu2 %v3856_v34 }
  0x20   :  { %646 = vmatpush.bf16.msrb.mxu0 %v3830_v25 }
  0x22   :  { %686 = vmatpush.bf16.msra.mxu3 %v3774_v6  ;;  %660 = vmatpush.bf16.msrb.mxu1 %v3839_v29 }
  0x23   :  { %674 = vmatpush.bf16.msrb.mxu2 %v3880_v45 }
  0x26   :  { %687 = vmatpush.bf16.msra.mxu3 %v3817_v19  ;;  %661 = vmatpush.bf16.msrb.mxu1 %v3897_v55 }
  0x27   :  { %675 = vmatpush.bf16.msrb.mxu2 %v3900_v56 }
  0x2a   :  { %688 = vmatpush.bf16.msra.mxu3 %v3868_v41  ;;  %662 = vmatpush.bf16.msrb.mxu1 %v3944_v12 }
  0x2b   :  { %2765 = vmatmul.msk.bf16.gmra.mxu0 %vm156_vm0, %v3155_v2  ;;  %676 = vmatpush.bf16.msrb.mxu2 %v3911_v60 }
  0x2c   :  { %2773 = vmatmul.msk.bf16.gmra.mxu1 %vm156_vm0, %v3155_v2 }
  0x2d   :  { %2781 = vmatmul.msk.bf16.gmra.mxu2 %vm156_vm0, %v3155_v2  ;;  %2788 = vmatmul.msk.bf16.gmra.mxu3 %vm156_vm0, %v3154_v53  ;;  %v3892_v53 = vor.u32 %v3175_v49, %v2813_v46 }
  0x2e   :  { %855 = vmatpush.bf16.msra.mxu1 %v3646_v31 }
  0x2f   :  { %647 = vmatpush.bf16.msrb.mxu0 %v3892_v53  ;;  %869 = vmatpush.bf16.msra.mxu2 %v3695_v47 }
  0x32   :  { %856 = vmatpush.bf16.msra.mxu1 %v3674_v40 }
  0x33   :  { %870 = vmatpush.bf16.msra.mxu2 %v3742_v61  ;;  %648 = vmatpush.bf16.msrb.mxu0 %v3942_v9 }
  0x36   :  { %857 = vmatpush.bf16.msra.mxu1 %v3710_v52 }
  0x37   :  { %841 = vmatpush.bf16.msra.mxu0 %v3638_v28  ;;  %871 = vmatpush.bf16.msra.mxu2 %v3785_v10 }
  0x3a   :  { %858 = vmatpush.bf16.msra.mxu1 %v3753_v1 }
  0x3b   :  { %2766 = vmatmul.msk.bf16.gmra.mxu0 %vm156_vm0, %v3156_v15  ;;  %872 = vmatpush.bf16.msra.mxu2 %v3828_v24 }
  0x3c   :  { %2774 = vmatmul.msk.bf16.gmra.mxu1 %vm156_vm0, %v3156_v15  ;;  %842 = vmatpush.bf16.msra.mxu0 %v3658_v35 }
  0x3d   :  { %2782 = vmatmul.msk.bf16.gmra.mxu2 %vm156_vm0, %v3156_v15  ;;  %2789 = vmatmul.msk.bf16.gmra.mxu3 %vm156_vm0, %v3155_v2  ;;  %v2823_v2 = vld [vmem:[%s5057_s3 + $0x38] sm:$0xf0] }
  0x3e   :  { %v3931_v4 = vor.u32 %v3174_v0, %v2823_v2  ;;  %859 = vmatpush.bf16.msra.mxu1 %v3796_v14 }
  0x3f   :  { %873 = vmatpush.bf16.msra.mxu2 %v3856_v34 }
  0x40   :  { %689 = vmatpush.bf16.msra.mxu3 %v3931_v4  ;;  %843 = vmatpush.bf16.msra.mxu0 %v3697_v48 }
  0x42   :  { %860 = vmatpush.bf16.msra.mxu1 %v3839_v29 }
  0x43   :  { %874 = vmatpush.bf16.msra.mxu2 %v3880_v45 }
  0x44   :  { %844 = vmatpush.bf16.msra.mxu0 %v3744_v62 }
  0x46   :  { %861 = vmatpush.bf16.msra.mxu1 %v3897_v55 }
  0x47   :  { %875 = vmatpush.bf16.msra.mxu2 %v3900_v56 }
  0x48   :  { %845 = vmatpush.bf16.msra.mxu0 %v3787_v11 }
  0x4a   :  { %862 = vmatpush.bf16.msra.mxu1 %v3944_v12 }
  0x4b   :  { %2767 = vmatmul.msk.bf16.gmra.mxu0 %vm156_vm0, %v3157_v30  ;;  %876 = vmatpush.bf16.msra.mxu2 %v3911_v60 }
  0x4c   :  { %2775 = vmatmul.msk.bf16.gmra.mxu1 %vm156_vm0, %v3157_v30  ;;  %846 = vmatpush.bf16.msra.mxu0 %v3830_v25 }
  0x4d   :  { %2783 = vmatmul.msk.bf16.gmra.mxu2 %vm156_vm0, %v3157_v30  ;;  %2790 = vmatmul.msk.bf16.gmra.mxu3 %vm156_vm0, %v3156_v15  ;;  %v3170_v15 = vld [vmem:[%s5057_s3 + $0xc] sm:$0xf] }
  0x4e   :  { %v3972_v17 = vor.u32 %v3170_v15, %v2807_v16 }
  0x50   :  { %690 = vmatpush.bf16.msra.mxu3 %v3972_v17  ;;  %847 = vmatpush.bf16.msra.mxu0 %v3892_v53 }
  0x54   :  { %883 = vmatpush.bf16.msrb.mxu3 %v3669_v39  ;;  %848 = vmatpush.bf16.msra.mxu0 %v3942_v9 }
  0x58   :  { %884 = vmatpush.bf16.msrb.mxu3 %v3706_v51 }
  0x5b   :  { %2768 = vmatmul.msk.bf16.gmra.mxu0 %vm156_vm0, %v3158_v63 }
  0x5c   :  { %2776 = vmatmul.msk.bf16.gmra.mxu1 %vm156_vm0, %v3158_v63  ;;  %885 = vmatpush.bf16.msrb.mxu3 %v3731_v57 }
  0x5d   :  { %2784 = vmatmul.msk.bf16.gmra.mxu2 %vm156_vm0, %v3158_v63  ;;  %2791 = vmatmul.msk.bf16.gmra.mxu3 %vm156_vm0, %v3157_v30 }
  0x60   :  { %886 = vmatpush.bf16.msrb.mxu3 %v3774_v6 }
  0x64   :  { %887 = vmatpush.bf16.msrb.mxu3 %v3817_v19 }
  0x68   :  { %888 = vmatpush.bf16.msrb.mxu3 %v3868_v41 }
  0x6b   :  { %2769 = vmatmul.msk.bf16.gmra.mxu0 %vm156_vm0, %v3159_v13 }
  0x6c   :  { %2777 = vmatmul.msk.bf16.gmra.mxu1 %vm156_vm0, %v3159_v13  ;;  %889 = vmatpush.bf16.msrb.mxu3 %v3931_v4 }
  0x6d   :  { %2785 = vmatmul.msk.bf16.gmra.mxu2 %vm156_vm0, %v3159_v13  ;;  %2792 = vmatmul.msk.bf16.gmra.mxu3 %vm156_vm0, %v3158_v63 }
  0x70   :  { %890 = vmatpush.bf16.msrb.mxu3 %v3972_v17 }
  0x7b   :  { %2770 = vmatmul.msk.bf16.gmra.mxu0 %vm156_vm0, %v3624_v22 }
  0x7c   :  { %2778 = vmatmul.msk.bf16.gmra.mxu1 %vm156_vm0, %v3624_v22 }
  0x7d   :  { %677 = vmatmul.bf16.vlgmr.msrb.gmra.mxu2 %v3507_v18  ;;  %2793 = vmatmul.msk.bf16.gmra.mxu3 %vm156_vm0, %v3159_v13 }
  0x7e   :  { %1069 = vmatpush.bf16.msrb.mxu2 %v3695_v47 }
  0x82   :  { %1070 = vmatpush.bf16.msrb.mxu2 %v3742_v61 }
  0x86   :  { %1071 = vmatpush.bf16.msrb.mxu2 %v3785_v10 }
  0x88   :  { %v4002_v20 = vpop.f32.mrf.mxu0 }
  0x89   :  { %v4004_v21 = vpop.f32.mrf.mxu1 }
  0x8a   :  { %1072 = vmatpush.bf16.msrb.mxu2 %v3828_v24 }
  0x8b   :  { %649 = vmatmul.bf16.vlgmr.msrb.gmra.mxu0 %v3507_v18 }
  0x8c   :  { %663 = vmatmul.bf16.vlgmr.msrb.gmra.mxu1 %v3507_v18  ;;  %1041 = vmatpush.bf16.msrb.mxu0 %v3638_v28 }
  0x8d   :  { %2794 = vmatmul.msk.bf16.gmra.mxu3 %vm156_vm0, %v3624_v22  ;;  %1055 = vmatpush.bf16.msrb.mxu1 %v3646_v31 }
  0x8e   :  { %1073 = vmatpush.bf16.msrb.mxu2 %v3856_v34 }
  0x90   :  { %v4014_v23 = vpop.f32.mrf.mxu2  ;;  %v4016_v26 = vpop.f32.mrf.mxu3  ;;  %1042 = vmatpush.bf16.msrb.mxu0 %v3658_v35 }
  0x91   :  { %5082 = vst [vmem:[#allocation3_spill] sm:$0xff] %v4016_v26  ;;  %v4018_v27 = vpop.f32.mrf.mxu0  ;;  %v4021_v30 = vpop.f32.mrf.mxu1  ;;  %1056 = vmatpush.bf16.msrb.mxu1 %v3674_v40 }
  0x92   :  { %1074 = vmatpush.bf16.msrb.mxu2 %v3880_v45 }
  0x94   :  { %1043 = vmatpush.bf16.msrb.mxu0 %v3697_v48 }
  0x95   :  { %1057 = vmatpush.bf16.msrb.mxu1 %v3710_v52 }
  0x96   :  { %1075 = vmatpush.bf16.msrb.mxu2 %v3900_v56 }
  0x98   :  { %v4028_v22 = vpop.f32.mrf.mxu2  ;;  %v4030_v32 = vpop.f32.mrf.mxu3  ;;  %1044 = vmatpush.bf16.msrb.mxu0 %v3744_v62 }
  0x99   :  { %5083 = vst [vmem:[#allocation4_spill] sm:$0xff] %v4030_v32  ;;  %v4032_v33 = vpop.f32.mrf.mxu0  ;;  %v4035_v36 = vpop.f32.mrf.mxu1  ;;  %1058 = vmatpush.bf16.msrb.mxu1 %v3753_v1 }
  0x9a   :  { %5084 = vst [vmem:[#allocation5_spill] sm:$0xff] %v4032_v33  ;;  %1076 = vmatpush.bf16.msrb.mxu2 %v3911_v60 }
  0x9b   :  { %5085 = vst [vmem:[#allocation6_spill] sm:$0xff] %v4035_v36 }
  0x9c   :  { %1045 = vmatpush.bf16.msrb.mxu0 %v3787_v11 }
  0x9d   :  { %691 = vmatmul.bf16.vlgmr.msra.gmra.mxu3 %v3507_v18  ;;  %1059 = vmatpush.bf16.msrb.mxu1 %v3796_v14 }
  0x9e   :  { %1083 = vmatpush.bf16.msra.mxu3 %v3669_v39 }
  0xa0   :  { %v4042_v37 = vpop.f32.mrf.mxu3  ;;  %1046 = vmatpush.bf16.msrb.mxu0 %v3830_v25  ;;  %v4047_v42 = vpop.f32.mrf.mxu2 }
  0xa1   :  { %v4044_v38 = vpop.f32.mrf.mxu0  ;;  %5087 = vst [vmem:[#allocation8_spill] sm:$0xff] %v4047_v42  ;;  %v4049_v43 = vpop.f32.mrf.mxu1  ;;  %1060 = vmatpush.bf16.msrb.mxu1 %v3839_v29 }
  0xa2   :  { %5086 = vst [vmem:[#allocation7_spill] sm:$0xff] %v4044_v38  ;;  %1084 = vmatpush.bf16.msra.mxu3 %v3706_v51 }
  0xa3   :  { %5088 = vst [vmem:[#allocation9_spill] sm:$0xff] %v4049_v43 }
  0xa4   :  { %1047 = vmatpush.bf16.msrb.mxu0 %v3892_v53 }
  0xa5   :  { %1061 = vmatpush.bf16.msrb.mxu1 %v3897_v55 }
  0xa6   :  { %1085 = vmatpush.bf16.msra.mxu3 %v3731_v57 }
  0xa8   :  { %v4056_v44 = vpop.f32.mrf.mxu3  ;;  %1048 = vmatpush.bf16.msrb.mxu0 %v3942_v9  ;;  %v4065_v50 = vpop.f32.mrf.mxu2 }
  0xa9   :  { %v4058_v46 = vpop.f32.mrf.mxu0  ;;  %v4061_v49 = vpop.f32.mrf.mxu1  ;;  %1062 = vmatpush.bf16.msrb.mxu1 %v3944_v12  ;;  %5091 = vst [vmem:[#allocation12_spill] sm:$0xff] %v4065_v50 }
  0xaa   :  { %5089 = vst [vmem:[#allocation10_spill] sm:$0xff] %v4058_v46  ;;  %1086 = vmatpush.bf16.msra.mxu3 %v3774_v6 }
  0xab   :  { %5090 = vst [vmem:[#allocation11_spill] sm:$0xff] %v4061_v49 }
  0xae   :  { %1087 = vmatpush.bf16.msra.mxu3 %v3817_v19 }
  0xb0   :  { %v4068_v54 = vpop.f32.mrf.mxu3  ;;  %v4075_v63 = vpop.f32.mrf.mxu2 }
  0xb1   :  { %5092 = vst [vmem:[#allocation13_spill] sm:$0xff] %v4068_v54  ;;  %v4070_v58 = vpop.f32.mrf.mxu0  ;;  %v4072_v59 = vpop.f32.mrf.mxu1 }
  0xb2   :  { %5093 = vst [vmem:[#allocation14_spill] sm:$0xff] %v4070_v58  ;;  %1088 = vmatpush.bf16.msra.mxu3 %v3868_v41 }
  0xb3   :  { %5094 = vst [vmem:[#allocation15_spill] sm:$0xff] %v4072_v59 }
  0xb4   :  { %5095 = vst [vmem:[#allocation16_spill] sm:$0xff] %v4075_v63 }
  0xb6   :  { %1089 = vmatpush.bf16.msra.mxu3 %v3931_v4 }
  0xb8   :  { %v4078_v0 = vpop.f32.mrf.mxu3  ;;  %v4085_v5 = vpop.f32.mrf.mxu2 }
  0xb9   :  { %5096 = vst [vmem:[#allocation17_spill] sm:$0xff] %v4078_v0  ;;  %v4080_v2 = vpop.f32.mrf.mxu0  ;;  %v4082_v3 = vpop.f32.mrf.mxu1 }
  0xba   :  { %5097 = vst [vmem:[#allocation18_spill] sm:$0xff] %v4080_v2  ;;  %1090 = vmatpush.bf16.msra.mxu3 %v3972_v17 }
  0xbb   :  { %5098 = vst [vmem:[#allocation19_spill] sm:$0xff] %v4082_v3 }
  0xbc   :  { %5099 = vst [vmem:[#allocation20_spill] sm:$0xff] %v4085_v5 }
  0xc0   :  { %v4087_v7 = vpop.f32.mrf.mxu3  ;;  %v4097_v18 = vpop.f32.mrf.mxu2 }
  0xc1   :  { %5100 = vst [vmem:[#allocation21_spill] sm:$0xff] %v4087_v7  ;;  %v4089_v8 = vpop.f32.mrf.mxu0  ;;  %v4091_v13 = vpop.f32.mrf.mxu1 }
  0xc2   :  { %5101 = vst [vmem:[#allocation22_spill] sm:$0xff] %v4089_v8 }
  0xc3   :  { %5102 = vst [vmem:[#allocation23_spill] sm:$0xff] %v4091_v13 }
  0xc4   :  { %5105 = vst [vmem:[#allocation26_spill] sm:$0xff] %v4097_v18 }
  0xc8   :  { %v4093_v15 = vpop.f32.mrf.mxu3  ;;  %v4107_v5 = vpop.f32.mrf.mxu2 }
  0xc9   :  { %5103 = vst [vmem:[#allocation24_spill] sm:$0xff] %v4093_v15  ;;  %v4095_v16 = vpop.f32.mrf.mxu0  ;;  %v4099_v32 = vpop.f32.mrf.mxu1 }
  0xca   :  { %5104 = vst [vmem:[#allocation25_spill] sm:$0xff] %v4095_v16 }
  0xcb   :  { %5106 = vst [vmem:[#allocation27_spill] sm:$0xff] %v4099_v32 }
  0xcc   :  { %5110 = vst [vmem:[#allocation31_spill] sm:$0xff] %v4107_v5 }
  0xd0   :  { %v4101_v26 = vpop.f32.mrf.mxu3  ;;  %v4115_v15 = vpop.f32.mrf.mxu2 }
  0xd1   :  { %5107 = vst [vmem:[#allocation28_spill] sm:$0xff] %v4101_v26  ;;  %v4103_v3 = vpop.f32.mrf.mxu0  ;;  %v4105_v2 = vpop.f32.mrf.mxu1 }
  0xd2   :  { %5108 = vst [vmem:[#allocation29_spill] sm:$0xff] %v4103_v3 }
  0xd3   :  { %5109 = vst [vmem:[#allocation30_spill] sm:$0xff] %v4105_v2 }
  0xd4   :  { %5114 = vst [vmem:[#allocation35_spill] sm:$0xff] %v4115_v15 }
  0xd8   :  { %v4109_v63 = vpop.f32.mrf.mxu3  ;;  %v4123_v26 = vpop.f32.mrf.mxu2 }
  0xd9   :  { %5111 = vst [vmem:[#allocation32_spill] sm:$0xff] %v4109_v63  ;;  %v4111_v8 = vpop.f32.mrf.mxu0  ;;  %v4113_v13 = vpop.f32.mrf.mxu1 }
  0xda   :  { %5112 = vst [vmem:[#allocation33_spill] sm:$0xff] %v4111_v8 }
  0xdb   :  { %5113 = vst [vmem:[#allocation34_spill] sm:$0xff] %v4113_v13 }
  0xdc   :  { %5118 = vst [vmem:[#allocation39_spill] sm:$0xff] %v4123_v26 }
  0xe0   :  { %v4117_v16 = vpop.f32.mrf.mxu3  ;;  %v4135_v13 = vpop.f32.mrf.mxu2 }
  0xe1   :  { %5115 = vst [vmem:[#allocation36_spill] sm:$0xff] %v4117_v16  ;;  %v4119_v18 = vpop.f32.mrf.mxu0  ;;  %v4121_v32 = vpop.f32.mrf.mxu1 }
  0xe2   :  { %5116 = vst [vmem:[#allocation37_spill] sm:$0xff] %v4119_v18 }
  0xe3   :  { %5117 = vst [vmem:[#allocation38_spill] sm:$0xff] %v4121_v32 }
  0xe4   :  { %5124 = vst [vmem:[#allocation45_spill] sm:$0xff] %v4135_v13 }
  0xe8   :  { %v4125_v3 = vpop.f32.mrf.mxu3  ;;  %v4145_v26 = vpop.f32.mrf.mxu2 }
  0xe9   :  { %5119 = vst [vmem:[#allocation40_spill] sm:$0xff] %v4125_v3  ;;  %v4127_v2 = vpop.f32.mrf.mxu0  ;;  %v4129_v5 = vpop.f32.mrf.mxu1 }
  0xea   :  { %5120 = vst [vmem:[#allocation41_spill] sm:$0xff] %v4127_v2 }
  0xeb   :  { %5121 = vst [vmem:[#allocation42_spill] sm:$0xff] %v4129_v5 }
  0xec   :  { %5129 = vst [vmem:[#allocation50_spill] sm:$0xff] %v4145_v26 }
  0xf0   :  { %v4131_v63 = vpop.f32.mrf.mxu3 }
  0xf1   :  { %5122 = vst [vmem:[#allocation43_spill] sm:$0xff] %v4131_v63  ;;  %v4133_v8 = vpop.f32.mrf.mxu0  ;;  %v4137_v15 = vpop.f32.mrf.mxu1 }
  0xf2   :  { %5123 = vst [vmem:[#allocation44_spill] sm:$0xff] %v4133_v8  ;;  %v66_v8 = vld [vmem:[%s5058_s4] sm:$0xf] }
  0xf3   :  { %5125 = vst [vmem:[#allocation46_spill] sm:$0xff] %v4137_v15  ;;  %v4156_v13 = vperm.slane %v66_v8, 0  ;;  %v4158_v15 = vperm.slane %v66_v8, 1 }
  0xf5   :  { %5133 = vst [vmem:[#allocation54_spill] sm:$0xff] %v4158_v15  ;;  %v193_v7 = vadd.f32 %v4018_v27, %v4156_v13  ;;  %v4176_v27 = vperm.slane %v66_v8, 2 }
  0xf7   :  { %5138 = vst [vmem:[#allocation59_spill] sm:$0xff] %v4176_v27 }
  0xf8   :  { %v4139_v16 = vpop.f32.mrf.mxu3 }
  0xf9   :  { %5126 = vst [vmem:[#allocation47_spill] sm:$0xff] %v4139_v16  ;;  %v4141_v18 = vpop.f32.mrf.mxu0  ;;  %v4143_v32 = vpop.f32.mrf.mxu1 }
  0xfa   :  { %5127 = vst [vmem:[#allocation48_spill] sm:$0xff] %v4141_v18  ;;  %v4160_v16 = vpop.f32.mrf.mxu2  ;;  %v240_v18 = vadd.f32 %v4004_v21, %v4158_v15 }
  0xfb   :  { %5128 = vst [vmem:[#allocation49_spill] sm:$0xff] %v4143_v32  ;;  %v191_v32 = vadd.f32 %v4002_v20, %v4156_v13  ;;  %v242_v20 = vadd.f32 %v4021_v30, %v4158_v15 }
  0xfc   :  { %5134 = vst [vmem:[#allocation55_spill] sm:$0xff] %v4160_v16 }
 0x100   :  { %v4147_v3 = vpop.f32.mrf.mxu3 }
 0x101   :  { %5130 = vst [vmem:[#allocation51_spill] sm:$0xff] %v4147_v3  ;;  %v4149_v2 = vpop.f32.mrf.mxu0  ;;  %v4151_v5 = vpop.f32.mrf.mxu1 }
 0x102   :  { %5131 = vst [vmem:[#allocation52_spill] sm:$0xff] %v4149_v2  ;;  %v4170_v16 = vpop.f32.mrf.mxu2 }
 0x103   :  { %5132 = vst [vmem:[#allocation53_spill] sm:$0xff] %v4151_v5 }
 0x104   :  { %5136 = vst [vmem:[#allocation57_spill] sm:$0xff] %v4170_v16 }
 0x108   :  { %v4166_v3 = vpop.f32.mrf.mxu3 }
 0x109   :  { %5135 = vst [vmem:[#allocation56_spill] sm:$0xff] %v4166_v3  ;;  %v650_v2 = vpop.f32.mrf.mxu0  ;;  %v664_v26 = vpop.f32.mrf.mxu1 }
 0x10a   :  { %v697_v5 = vadd.f32 %v650_v2, %v191_v32  ;;  %v698_v63 = vadd.f32 %v664_v26, %v240_v18  ;;  %v678_v30 = vpop.f32.mrf.mxu2 }
 0x10c   :  { %v2923_v59 = vmul.f32 -1.442695, %v697_v5  ;;  %v2925_v58 = vmul.f32 -1.442695, %v698_v63 }
 0x10e   :  { %3251 = vpow2.f32 %v2923_v59 }
 0x10f   :  { %3253 = vpow2.f32 %v2925_v58 }
 0x110   :  { %v4174_v49 = vpop.f32.mrf.mxu3 }
 0x111   :  { %5137 = vst [vmem:[#allocation58_spill] sm:$0xff] %v4174_v49  ;;  %v652_v21 = vpop.f32.mrf.mxu0  ;;  %v666_v46 = vpop.f32.mrf.mxu1 }
 0x112   :  { %v701_v3 = vadd.f32 %v652_v21, %v193_v7  ;;  %v702_v32 = vadd.f32 %v666_v46, %v242_v20  ;;  %v289_v7 = vadd.f32 %v4014_v23, %v4176_v27  ;;  %v4182_v46 = vperm.slane %v66_v8, 3 }
 0x114   :  { %v3252_v2 = vpop.eup %3251  ;;  %v2924_v26 = vmul.f32 -1.442695, %v701_v3  ;;  %v2926_v59 = vmul.f32 -1.442695, %v702_v32  ;;  %5140 = vst [vmem:[#allocation61_spill] sm:$0xff] %v4182_v46  ;;  %v699_v20 = vadd.f32 %v678_v30, %v289_v7 }
 0x115   :  { %v3254_v5 = vpop.eup %3253  ;;  %v711_v63 = vadd.f32 1.0, %v3252_v2 }
 0x116   :  { %v749_v58 = vadd.f32 1.0, %v3254_v5  ;;  %3255 = vpow2.f32 %v2924_v26 }
 0x117   :  { %3257 = vrcp.f32 %v711_v63  ;;  %v722_v23 = vand.u32 2147483647, %v711_v63  ;;  %v724_v8 = vand.u32 2147483648, %v711_v63  ;;  %vm718_vm3 = vweird.f32 %v711_v63 }
 0x118   :  { %3259 = vrcp.f32 %v749_v58  ;;  %v4178_v18 = vpop.f32.mrf.mxu3  ;;  %v762_v7 = vand.u32 2147483648, %v749_v58  ;;  %v760_v42 = vand.u32 2147483647, %v749_v58  ;;  %vm756_vm6 = vweird.f32 %v749_v58 }
 0x119   :  { %3261 = vpow2.f32 %v2926_v59  ;;  %5139 = vst [vmem:[#allocation60_spill] sm:$0xff] %v4178_v18  ;;  %v338_v59 = vadd.f32 %v4042_v37, %v4182_v46  ;;  %vm723_vm5 = vcmp.eq.f32.partialorder %v722_v23, 8.507059e+37 }
 0x11a   :  { %vm761_vm8 = vcmp.eq.f32.partialorder %v760_v42, 8.507059e+37 }
 0x11c   :  { %v3256_v21 = vpop.eup %3255 }
 0x11d   :  { %v3258_v3 = vpop.eup %3257  ;;  %v4184_v2 = vadd.f32 1.0, %v3256_v21 }
 0x11e   :  { %v3260_v32 = vpop.eup %3259  ;;  %v714_v26 = vmul.f32 %v3258_v3, %v711_v63  ;;  %vm719_vm1 = vweird.f32 %v3258_v3 }
 0x11f   :  { %v3262_v5 = vpop.eup %3261  ;;  %v752_v49 = vmul.f32 %v3260_v32, %v749_v58  ;;  %3263 = vrcp.f32 %v4184_v2  ;;  %vm757_vm2 = vweird.f32 %v3260_v32  ;;  %vm720_vm4 = vmor %vm718_vm3, %vm719_vm1  ;;  %vm733_vm11 = vweird.f32 %v4184_v2 }
 0x120   :  { %v715_v18 = vsub.f32 1.0, %v714_v26  ;;  %v4189_v16 = vadd.f32 1.0, %v3262_v5  ;;  %3265 = vtanh.f32 %v699_v20  ;;  %v692_v0 = vpop.f32.mrf.mxu3  ;;  %v725_v26 = vor.u32 1.1754944e-38, %v724_v8  ;;  %vm758_vm7 = vmor %vm756_vm6, %vm757_vm2 }
 0x121   :  { %v753_v50 = vsub.f32 1.0, %v752_v49  ;;  %v700_v38 = vadd.f32 %v692_v0, %v338_v59  ;;  %v763_v49 = vor.u32 1.1754944e-38, %v762_v7  ;;  %v680_v7 = vpop.f32.mrf.mxu2 }
 0x122   :  { %v716_v30 = vmul.f32 %v3258_v3, %v715_v18  ;;  %3267 = vrcp.f32 %v4189_v16  ;;  %vm771_vm13 = vweird.f32 %v4189_v16 }
 0x123   :  { %v754_v21 = vmul.f32 %v3260_v32, %v753_v50  ;;  %v2927_v54 = vmul.f32 -1.442695, %v700_v38  ;;  %v340_v50 = vadd.f32 %v4056_v44, %v4182_v46  ;;  %v291_v44 = vadd.f32 %v4028_v22, %v4176_v27 }
 0x124   :  { %v717_v43 = vadd.f32 %v3258_v3, %v716_v30  ;;  %v737_v22 = vand.u32 2147483647, %v4184_v2 }
 0x125   :  { %v3264_v37 = vpop.eup %3263  ;;  %v755_v20 = vadd.f32 %v3260_v32, %v754_v21  ;;  %3269 = vpow2.f32 %v2927_v54 }
 0x126   :  { %v721_v5 = vsel %vm720_vm4, %v3258_v3, %v717_v43  ;;  %v729_v18 = vmul.f32 %v3264_v37, %v4184_v2  ;;  %v3266_v36 = vpop.eup %3265  ;;  %vm734_vm9 = vweird.f32 %v3264_v37  ;;  %vm738_vm15 = vcmp.eq.f32.partialorder %v737_v22, 8.507059e+37 }
 0x127   :  { %v726_v15 = vsel %vm723_vm5, %v725_v26, %v721_v5  ;;  %v759_v30 = vsel %vm758_vm7, %v3260_v32, %v755_v20  ;;  %v739_v5 = vand.u32 2147483648, %v4184_v2  ;;  %vm4203_vm12 = vmor %vm733_vm11, %vm734_vm9 }
 0x128   :  { %v3268_v0 = vpop.eup %3267  ;;  %v823_v63 = vmul.f32 %v3266_v36, %v726_v15  ;;  %v764_v59 = vsel %vm761_vm8, %v763_v49, %v759_v30  ;;  %v730_v23 = vsub.f32 1.0, %v729_v18  ;;  %v694_v58 = vpop.f32.mrf.mxu3  ;;  %v703_v36 = vadd.f32 %v680_v7, %v291_v44 }
 0x129   :  { %v821_v8 = vmul.f32 0.0, %v764_v59  ;;  %v767_v43 = vmul.f32 %v3268_v0, %v4189_v16  ;;  %v704_v3 = vadd.f32 %v694_v58, %v340_v50  ;;  %vm772_vm10 = vweird.f32 %v3268_v0 }
 0x12a   :  { %v731_v21 = vmul.f32 %v3264_v37, %v730_v23  ;;  %v777_v49 = vand.u32 2147483648, %v4189_v16  ;;  %v775_v50 = vand.u32 2147483647, %v4189_v16  ;;  %vm773_vm14 = vmor %vm771_vm13, %vm772_vm10  ;;  %v740_v23 = vor.u32 1.1754944e-38, %v739_v5 }
 0x12b   :  { %v768_v38 = vsub.f32 1.0, %v767_v43  ;;  %v4196_v33 = vadd.f32 %v823_v63, %v821_v8  ;;  %v2928_v32 = vmul.f32 -1.442695, %v704_v3  ;;  %v3270_v26 = vpop.eup %3269 }
 0x12c   :  { %v732_v54 = vadd.f32 %v3264_v37, %v731_v21  ;;  %v789_v20 = vadd.f32 1.0, %v3270_v26  ;;  %v778_v8 = vor.u32 1.1754944e-38, %v777_v49  ;;  %vm776_vm0 = vcmp.eq.f32.partialorder %v775_v50, 8.507059e+37 }
 0x12d   :  { %v769_v42 = vmul.f32 %v3268_v0, %v768_v38  ;;  %3271 = vpow2.f32 %v2928_v32 }
 0x12e   :  { %3273 = vrcp.f32 %v789_v20  ;;  %v736_v30 = vsel %vm4203_vm12, %v3264_v37, %v732_v54  ;;  %vm796_vm2 = vweird.f32 %v789_v20 }
 0x12f   :  { %v770_v15 = vadd.f32 %v3268_v0, %v769_v42  ;;  %3275 = vtanh.f32 %v703_v36  ;;  %v741_v58 = vsel %vm738_vm15, %v740_v23, %v736_v30  ;;  %v802_v36 = vand.u32 2147483648, %v789_v20 }
 0x131   :  { %v774_v63 = vsel %vm773_vm14, %v3268_v0, %v770_v15  ;;  %v800_v15 = vand.u32 2147483647, %v789_v20  ;;  %v803_v50 = vor.u32 1.1754944e-38, %v802_v36 }
 0x132   :  { %v779_v3 = vsel %vm776_vm0, %v778_v8, %v774_v63 }
 0x133   :  { %v3272_v59 = vpop.eup %3271  ;;  %v822_v38 = vmul.f32 0.0, %v779_v3  ;;  %vm801_vm6 = vcmp.eq.f32.partialorder %v800_v15, 8.507059e+37  ;;  %v5146_v15 = vld [vmem:[#allocation13_spill] sm:$0xff] }
 0x134   :  { %v790_v43 = vadd.f32 1.0, %v3272_v59  ;;  %v3274_v2 = vpop.eup %3273 }
 0x135   :  { %v3276_v7 = vpop.eup %3275  ;;  %v792_v21 = vmul.f32 %v3274_v2, %v789_v20  ;;  %vm797_vm1 = vweird.f32 %v3274_v2 }
 0x136   :  { %3277 = vrcp.f32 %v790_v43  ;;  %v824_v16 = vmul.f32 %v3276_v7, %v741_v58  ;;  %vm798_vm3 = vmor %vm796_vm2, %vm797_vm1  ;;  %v817_v5 = vand.u32 2147483648, %v790_v43  ;;  %v815_v22 = vand.u32 2147483647, %v790_v43 }
 0x137   :  { %v793_v44 = vsub.f32 1.0, %v792_v21  ;;  %3279 = vtanh.f32 %v4196_v33  ;;  %vm811_vm5 = vweird.f32 %v790_v43 }
 0x138   :  { %v4212_v26 = vadd.f32 %v824_v16, %v822_v38  ;;  %v818_v59 = vor.u32 1.1754944e-38, %v817_v5  ;;  %vm816_vm8 = vcmp.eq.f32.partialorder %v815_v22, 8.507059e+37  ;;  %v5144_v16 = vld [vmem:[#allocation54_spill] sm:$0xff]  ;;  %v343_v5 = vadd.f32 %v5146_v15, %v4182_v46  ;;  %v5148_v22 = vld [vmem:[#allocation9_spill] sm:$0xff] }
 0x139   :  { %v794_v32 = vmul.f32 %v3274_v2, %v793_v44  ;;  %v5145_v38 = vld [vmem:[#allocation6_spill] sm:$0xff] }
 0x13a   :  { %3281 = vtanh.f32 %v4212_v26  ;;  %v245_v44 = vadd.f32 %v5145_v38, %v5144_v16 }
 0x13b   :  { %v795_v0 = vadd.f32 %v3274_v2, %v794_v32 }
 0x13c   :  { %v3278_v42 = vpop.eup %3277 }
 0x13d   :  { %v807_v37 = vmul.f32 %v3278_v42, %v790_v43  ;;  %v799_v18 = vsel %vm798_vm3, %v3274_v2, %v795_v0  ;;  %vm812_vm4 = vweird.f32 %v3278_v42  ;;  %v3280_v23 = vpop.eup %3279  ;;  %v5143_v43 = vld [vmem:[#allocation5_spill] sm:$0xff] }
 0x13e   :  { %v804_v63 = vsel %vm801_vm6, %v803_v50, %v799_v18  ;;  %vm813_vm7 = vmor %vm811_vm5, %vm812_vm4  ;;  %v196_v2 = vadd.f32 %v5143_v43, %v4156_v13  ;;  %v247_v50 = vadd.f32 %v5148_v22, %v5144_v16 }
 0x13f   :  { %v808_v54 = vsub.f32 1.0, %v807_v37  ;;  %v829_v3 = vmul.f32 %v3280_v23, %v804_v63 }
 0x140   :  { %v3282_v20 = vpop.eup %3281 }
 0x141   :  { %v809_v49 = vmul.f32 %v3278_v42, %v808_v54 }
 0x143   :  { %v810_v30 = vadd.f32 %v3278_v42, %v809_v49  ;;  %v5147_v49 = vld [vmem:[#allocation7_spill] sm:$0xff] }
 0x144   :  { %v198_v18 = vadd.f32 %v5147_v49, %v4156_v13 }
 0x145   :  { %v814_v8 = vsel %vm813_vm7, %v3278_v42, %v810_v30 }
 0x146   :  { %v819_v58 = vsel %vm816_vm8, %v818_v59, %v814_v8 }
 0x147   :  { %v830_v7 = vmul.f32 %v3282_v20, %v819_v58 }
 0x149   :  { %v840_v21 = vpack.c.bf16 %v830_v7, %v829_v3 }
 0x14b   :  { %849 = vmatmul.bf16.vlgmr.msra.gmra.mxu0 %v840_v21  ;;  %863 = vmatmul.bf16.vlgmr.msra.gmra.mxu1 %v840_v21 }
 0x14c   :  { %877 = vmatmul.bf16.vlgmr.msra.gmra.mxu2 %v840_v21  ;;  %891 = vmatmul.bf16.vlgmr.msrb.gmra.mxu3 %v840_v21 }
 0x14d   :  { %1241 = vmatpush.bf16.msra.mxu0 %v3638_v28  ;;  %1255 = vmatpush.bf16.msra.mxu1 %v3646_v31 }
 0x14e   :  { %1269 = vmatpush.bf16.msra.mxu2 %v3695_v47  ;;  %1283 = vmatpush.bf16.msrb.mxu3 %v3669_v39 }
 0x151   :  { %1242 = vmatpush.bf16.msra.mxu0 %v3658_v35  ;;  %1256 = vmatpush.bf16.msra.mxu1 %v3674_v40 }
 0x152   :  { %1270 = vmatpush.bf16.msra.mxu2 %v3742_v61  ;;  %1284 = vmatpush.bf16.msrb.mxu3 %v3706_v51 }
 0x155   :  { %1243 = vmatpush.bf16.msra.mxu0 %v3697_v48  ;;  %1257 = vmatpush.bf16.msra.mxu1 %v3710_v52 }
 0x156   :  { %1271 = vmatpush.bf16.msra.mxu2 %v3785_v10  ;;  %1285 = vmatpush.bf16.msrb.mxu3 %v3731_v57 }
 0x159   :  { %1244 = vmatpush.bf16.msra.mxu0 %v3744_v62  ;;  %1258 = vmatpush.bf16.msra.mxu1 %v3753_v1 }
 0x15a   :  { %1272 = vmatpush.bf16.msra.mxu2 %v3828_v24  ;;  %1286 = vmatpush.bf16.msrb.mxu3 %v3774_v6 }
 0x15d   :  { %1245 = vmatpush.bf16.msra.mxu0 %v3787_v11  ;;  %1259 = vmatpush.bf16.msra.mxu1 %v3796_v14 }
 0x15e   :  { %1273 = vmatpush.bf16.msra.mxu2 %v3856_v34  ;;  %1287 = vmatpush.bf16.msrb.mxu3 %v3817_v19 }
 0x161   :  { %1246 = vmatpush.bf16.msra.mxu0 %v3830_v25  ;;  %1260 = vmatpush.bf16.msra.mxu1 %v3839_v29 }
 0x162   :  { %1274 = vmatpush.bf16.msra.mxu2 %v3880_v45  ;;  %1288 = vmatpush.bf16.msrb.mxu3 %v3868_v41 }
 0x165   :  { %1247 = vmatpush.bf16.msra.mxu0 %v3892_v53  ;;  %1261 = vmatpush.bf16.msra.mxu1 %v3897_v55 }
 0x166   :  { %1275 = vmatpush.bf16.msra.mxu2 %v3900_v56  ;;  %1289 = vmatpush.bf16.msrb.mxu3 %v3931_v4 }
 0x169   :  { %1248 = vmatpush.bf16.msra.mxu0 %v3942_v9  ;;  %1262 = vmatpush.bf16.msra.mxu1 %v3944_v12 }
 0x16a   :  { %1276 = vmatpush.bf16.msra.mxu2 %v3911_v60  ;;  %1290 = vmatpush.bf16.msrb.mxu3 %v3972_v17 }
 0x1c8   :  { %v850_v32 = vpop.f32.mrf.mxu0  ;;  %v864_v42 = vpop.f32.mrf.mxu1 }
 0x1c9   :  { %v897_v37 = vadd.f32 %v850_v32, %v196_v2  ;;  %v898_v0 = vadd.f32 %v864_v42, %v245_v44  ;;  %v5149_v32 = vld [vmem:[#allocation8_spill] sm:$0xff] }
 0x1ca   :  { %v294_v42 = vadd.f32 %v5149_v32, %v4176_v27 }
 0x1cb   :  { %v2929_v36 = vmul.f32 -1.442695, %v897_v37  ;;  %v2931_v54 = vmul.f32 -1.442695, %v898_v0  ;;  %v5150_v37 = vld [vmem:[#allocation17_spill] sm:$0xff] }
 0x1cc   :  { %v345_v0 = vadd.f32 %v5150_v37, %v4182_v46 }
 0x1cd   :  { %3283 = vpow2.f32 %v2929_v36 }
 0x1ce   :  { %3285 = vpow2.f32 %v2931_v54 }
 0x1cf   :  { %v892_v30 = vpop.f32.mrf.mxu3  ;;  %v878_v44 = vpop.f32.mrf.mxu2 }
 0x1d0   :  { %v900_v63 = vadd.f32 %v892_v30, %v343_v5  ;;  %v852_v59 = vpop.f32.mrf.mxu0  ;;  %v866_v23 = vpop.f32.mrf.mxu1  ;;  %v899_v54 = vadd.f32 %v878_v44, %v294_v42 }
 0x1d1   :  { %v901_v8 = vadd.f32 %v852_v59, %v198_v18  ;;  %v902_v20 = vadd.f32 %v866_v23, %v247_v50 }
 0x1d2   :  { %v2933_v58 = vmul.f32 -1.442695, %v900_v63 }
 0x1d3   :  { %v3284_v3 = vpop.eup %3283  ;;  %v2930_v7 = vmul.f32 -1.442695, %v901_v8  ;;  %v2932_v2 = vmul.f32 -1.442695, %v902_v20  ;;  %v5151_v20 = vld [vmem:[#allocation12_spill] sm:$0xff] }
 0x1d4   :  { %v3286_v21 = vpop.eup %3285  ;;  %v911_v43 = vadd.f32 1.0, %v3284_v3  ;;  %3287 = vpow2.f32 %v2933_v58  ;;  %v296_v58 = vadd.f32 %v5151_v20, %v4176_v27 }
 0x1d5   :  { %v949_v38 = vadd.f32 1.0, %v3286_v21  ;;  %3289 = vpow2.f32 %v2930_v7 }
 0x1d6   :  { %3291 = vrcp.f32 %v911_v43  ;;  %v922_v44 = vand.u32 2147483647, %v911_v43  ;;  %v924_v32 = vand.u32 2147483648, %v911_v43  ;;  %vm918_vm11 = vweird.f32 %v911_v43 }
 0x1d7   :  { %3293 = vrcp.f32 %v949_v38  ;;  %v894_v36 = vpop.f32.mrf.mxu3  ;;  %v880_v21 = vpop.f32.mrf.mxu2  ;;  %v962_v42 = vand.u32 2147483648, %v949_v38  ;;  %vm956_vm12 = vweird.f32 %v949_v38 }
 0x1d8   :  { %3295 = vpow2.f32 %v2932_v2  ;;  %v904_v15 = vadd.f32 %v894_v36, %v345_v0  ;;  %v960_v36 = vand.u32 2147483647, %v949_v38  ;;  %vm923_vm15 = vcmp.eq.f32.partialorder %v922_v44, 8.507059e+37 }
 0x1d9   :  { %3297 = vtanh.f32 %v899_v54  ;;  %v903_v54 = vadd.f32 %v880_v21, %v296_v58 }
 0x1da   :  { %v3288_v5 = vpop.eup %3287  ;;  %v2934_v30 = vmul.f32 -1.442695, %v904_v15  ;;  %vm961_vm0 = vcmp.eq.f32.partialorder %v960_v36, 8.507059e+37 }
 0x1db   :  { %v3290_v49 = vpop.eup %3289  ;;  %v4262_v18 = vadd.f32 1.0, %v3288_v5 }
 0x1dc   :  { %v3292_v22 = vpop.eup %3291  ;;  %v4264_v50 = vadd.f32 1.0, %v3290_v49 }
 0x1dd   :  { %v3294_v63 = vpop.eup %3293  ;;  %v914_v59 = vmul.f32 %v3292_v22, %v911_v43  ;;  %vm919_vm9 = vweird.f32 %v3292_v22 }
 0x1de   :  { %v3296_v23 = vpop.eup %3295  ;;  %v952_v8 = vmul.f32 %v3294_v63, %v949_v38  ;;  %3299 = vrcp.f32 %v4264_v50  ;;  %vm957_vm10 = vweird.f32 %v3294_v63  ;;  %vm920_vm13 = vmor %vm918_vm11, %vm919_vm9  ;;  %vm933_vm2 = vweird.f32 %v4264_v50 }
 0x1df   :  { %v915_v3 = vsub.f32 1.0, %v914_v59  ;;  %3301 = vrcp.f32 %v4262_v18  ;;  %v4270_v7 = vadd.f32 1.0, %v3296_v23  ;;  %v3298_v15 = vpop.eup %3297  ;;  %v925_v59 = vor.u32 1.1754944e-38, %v924_v32  ;;  %vm958_vm14 = vmor %vm956_vm12, %vm957_vm10 }
 0x1e0   :  { %v953_v2 = vsub.f32 1.0, %v952_v8  ;;  %3303 = vpow2.f32 %v2934_v30  ;;  %v963_v30 = vor.u32 1.1754944e-38, %v962_v42  ;;  %v937_v42 = vand.u32 2147483647, %v4264_v50 }
 0x1e1   :  { %v916_v37 = vmul.f32 %v3292_v22, %v915_v3  ;;  %3305 = vrcp.f32 %v4270_v7  ;;  %vm971_vm6 = vweird.f32 %v4270_v7  ;;  %vm996_vm10 = vweird.f32 %v4262_v18 }
 0x1e2   :  { %v954_v0 = vmul.f32 %v3294_v63, %v953_v2  ;;  %3307 = vtanh.f32 %v903_v54  ;;  %vm938_vm5 = vcmp.eq.f32.partialorder %v937_v42, 8.507059e+37  ;;  %v1002_v42 = vand.u32 2147483648, %v4262_v18 }
 0x1e3   :  { %v917_v5 = vadd.f32 %v3292_v22, %v916_v37 }
 0x1e4   :  { %v3300_v49 = vpop.eup %3299  ;;  %v955_v23 = vadd.f32 %v3294_v63, %v954_v0 }
 0x1e5   :  { %v4273_v8 = vpop.eup %3301  ;;  %v921_v20 = vsel %vm920_vm13, %v3292_v22, %v917_v5  ;;  %v929_v3 = vmul.f32 %v3300_v49, %v4264_v50  ;;  %v939_v22 = vand.u32 2147483648, %v4264_v50  ;;  %vm934_vm1 = vweird.f32 %v3300_v49 }
 0x1e6   :  { %v3304_v2 = vpop.eup %3303  ;;  %v926_v27 = vsel %vm923_vm15, %v925_v59, %v921_v20  ;;  %v959_v46 = vsel %vm958_vm14, %v3294_v63, %v955_v23  ;;  %v992_v44 = vmul.f32 %v4273_v8, %v4262_v18  ;;  %vm935_vm4 = vmor %vm933_vm2, %vm934_vm1  ;;  %v975_v59 = vand.u32 2147483647, %v4270_v7 }
 0x1e7   :  { %v3306_v58 = vpop.eup %3305  ;;  %v964_v43 = vsel %vm961_vm0, %v963_v30, %v959_v46  ;;  %v1023_v21 = vmul.f32 %v3298_v15, %v926_v27  ;;  %v930_v38 = vsub.f32 1.0, %v929_v3  ;;  %v990_v37 = vadd.f32 1.0, %v3304_v2 }
 0x1e8   :  { %v1021_v32 = vmul.f32 %v964_v43, %v4196_v33  ;;  %v967_v0 = vmul.f32 %v3306_v58, %v4270_v7  ;;  %v977_v27 = vand.u32 2147483648, %v4270_v7  ;;  %v3308_v33 = vpop.eup %3307  ;;  %vm972_vm3 = vweird.f32 %v3306_v58 }
 0x1e9   :  { %v931_v5 = vmul.f32 %v3300_v49, %v930_v38  ;;  %3309 = vrcp.f32 %v990_v37  ;;  %v940_v15 = vor.u32 1.1754944e-38, %v939_v22  ;;  %v993_v23 = vsub.f32 1.0, %v992_v44  ;;  %vm973_vm7 = vmor %vm971_vm6, %vm972_vm3 }
 0x1ea   :  { %v4282_v63 = vadd.f32 %v1023_v21, %v1021_v32  ;;  %v968_v46 = vsub.f32 1.0, %v967_v0  ;;  %v978_v43 = vor.u32 1.1754944e-38, %v977_v27  ;;  %vm976_vm8 = vcmp.eq.f32.partialorder %v975_v59, 8.507059e+37 }
 0x1eb   :  { %v932_v36 = vadd.f32 %v3300_v49, %v931_v5  ;;  %v994_v32 = vmul.f32 %v4273_v8, %v993_v23  ;;  %vm997_vm9 = vweird.f32 %v4273_v8  ;;  %vm1011_vm12 = vweird.f32 %v990_v37 }
 0x1ec   :  { %v969_v54 = vmul.f32 %v3306_v58, %v968_v46  ;;  %3311 = vtanh.f32 %v4282_v63  ;;  %v1017_v46 = vand.u32 2147483648, %v990_v37  ;;  %vm998_vm13 = vmor %vm996_vm10, %vm997_vm9  ;;  %v1015_v27 = vand.u32 2147483647, %v990_v37 }
 0x1ed   :  { %v936_v30 = vsel %vm935_vm4, %v3300_v49, %v932_v36 }
 0x1ee   :  { %v941_v20 = vsel %vm938_vm5, %v940_v15, %v936_v30  ;;  %v970_v3 = vadd.f32 %v3306_v58, %v969_v54  ;;  %v1003_v15 = vor.u32 1.1754944e-38, %v1002_v42  ;;  %v1018_v59 = vor.u32 1.1754944e-38, %v1017_v46 }
 0x1ef   :  { %v3310_v2 = vpop.eup %3309  ;;  %v1024_v50 = vmul.f32 %v3308_v33, %v941_v20  ;;  %vm1016_vm0 = vcmp.eq.f32.partialorder %v1015_v27, 8.507059e+37 }
 0x1f0   :  { %v974_v21 = vsel %vm973_vm7, %v3306_v58, %v970_v3  ;;  %v1007_v38 = vmul.f32 %v3310_v2, %v990_v37  ;;  %v995_v58 = vadd.f32 %v4273_v8, %v994_v32  ;;  %vm1012_vm11 = vweird.f32 %v3310_v2  ;;  %v5153_v37 = vld [vmem:[#allocation11_spill] sm:$0xff] }
 0x1f1   :  { %v979_v0 = vsel %vm976_vm8, %v978_v43, %v974_v21  ;;  %vm1013_vm14 = vmor %vm1011_vm12, %vm1012_vm11 }
 0x1f2   :  { %v1022_v22 = vmul.f32 %v979_v0, %v4212_v26  ;;  %v1008_v5 = vsub.f32 1.0, %v1007_v38  ;;  %v1000_v26 = vand.u32 2147483647, %v4262_v18  ;;  %v999_v36 = vsel %vm998_vm13, %v4273_v8, %v995_v58  ;;  %v3312_v54 = vpop.eup %3311  ;;  %v5152_v18 = vld [vmem:[#allocation10_spill] sm:$0xff]  ;;  %v5155_v58 = vld [vmem:[#allocation21_spill] sm:$0xff] }
 0x1f3   :  { %v201_v8 = vadd.f32 %v5152_v18, %v4156_v13 }
 0x1f4   :  { %v4291_v49 = vadd.f32 %v1024_v50, %v1022_v22  ;;  %v1009_v7 = vmul.f32 %v3310_v2, %v1008_v5  ;;  %vm1001_vm15 = vcmp.eq.f32.partialorder %v1000_v26, 8.507059e+37  ;;  %v5157_v26 = vld [vmem:[#allocation15_spill] sm:$0xff] }
 0x1f5   :  { %v1004_v30 = vsel %vm1001_vm15, %v1003_v15, %v999_v36  ;;  %v252_v27 = vadd.f32 %v5157_v26, %v5144_v16 }
 0x1f6   :  { %3313 = vtanh.f32 %v4291_v49  ;;  %v1010_v44 = vadd.f32 %v3310_v2, %v1009_v7  ;;  %v1029_v3 = vmul.f32 %v3312_v54, %v1004_v30  ;;  %v5154_v7 = vld [vmem:[#allocation61_spill] sm:$0xff] }
 0x1f7   :  { %v348_v42 = vadd.f32 %v5155_v58, %v5154_v7 }
 0x1f8   :  { %v1014_v33 = vsel %vm1013_vm14, %v3310_v2, %v1010_v44  ;;  %v250_v2 = vadd.f32 %v5153_v37, %v5144_v16  ;;  %v5156_v44 = vld [vmem:[#allocation14_spill] sm:$0xff] }
 0x1f9   :  { %v1019_v20 = vsel %vm1016_vm0, %v1018_v59, %v1014_v33  ;;  %v203_v46 = vadd.f32 %v5156_v44, %v4156_v13 }
 0x1fc   :  { %v3314_v23 = vpop.eup %3313 }
 0x1fd   :  { %v1030_v43 = vmul.f32 %v3314_v23, %v1019_v20 }
 0x1ff   :  { %v1040_v21 = vpack.c.bf16 %v1030_v43, %v1029_v3 }
 0x201   :  { %1049 = vmatmul.bf16.vlgmr.msrb.gmra.mxu0 %v1040_v21  ;;  %1063 = vmatmul.bf16.vlgmr.msrb.gmra.mxu1 %v1040_v21 }
 0x202   :  { %1077 = vmatmul.bf16.vlgmr.msrb.gmra.mxu2 %v1040_v21  ;;  %1091 = vmatmul.bf16.vlgmr.msra.gmra.mxu3 %v1040_v21 }
 0x203   :  { %1441 = vmatpush.bf16.msrb.mxu0 %v3638_v28  ;;  %1455 = vmatpush.bf16.msrb.mxu1 %v3646_v31 }
 0x204   :  { %1469 = vmatpush.bf16.msrb.mxu2 %v3695_v47  ;;  %1483 = vmatpush.bf16.msra.mxu3 %v3669_v39 }
 0x207   :  { %1442 = vmatpush.bf16.msrb.mxu0 %v3658_v35  ;;  %1456 = vmatpush.bf16.msrb.mxu1 %v3674_v40 }
 0x208   :  { %1470 = vmatpush.bf16.msrb.mxu2 %v3742_v61  ;;  %1484 = vmatpush.bf16.msra.mxu3 %v3706_v51 }
 0x20b   :  { %1443 = vmatpush.bf16.msrb.mxu0 %v3697_v48  ;;  %1457 = vmatpush.bf16.msrb.mxu1 %v3710_v52 }
 0x20c   :  { %1471 = vmatpush.bf16.msrb.mxu2 %v3785_v10  ;;  %1485 = vmatpush.bf16.msra.mxu3 %v3731_v57 }
 0x20f   :  { %1444 = vmatpush.bf16.msrb.mxu0 %v3744_v62  ;;  %1458 = vmatpush.bf16.msrb.mxu1 %v3753_v1 }
 0x210   :  { %1472 = vmatpush.bf16.msrb.mxu2 %v3828_v24  ;;  %1486 = vmatpush.bf16.msra.mxu3 %v3774_v6 }
 0x213   :  { %1445 = vmatpush.bf16.msrb.mxu0 %v3787_v11  ;;  %1459 = vmatpush.bf16.msrb.mxu1 %v3796_v14 }
 0x214   :  { %1473 = vmatpush.bf16.msrb.mxu2 %v3856_v34  ;;  %1487 = vmatpush.bf16.msra.mxu3 %v3817_v19 }
 0x217   :  { %1446 = vmatpush.bf16.msrb.mxu0 %v3830_v25  ;;  %1460 = vmatpush.bf16.msrb.mxu1 %v3839_v29 }
 0x218   :  { %1474 = vmatpush.bf16.msrb.mxu2 %v3880_v45  ;;  %1488 = vmatpush.bf16.msra.mxu3 %v3868_v41 }
 0x21b   :  { %1447 = vmatpush.bf16.msrb.mxu0 %v3892_v53  ;;  %1461 = vmatpush.bf16.msrb.mxu1 %v3897_v55 }
 0x21c   :  { %1475 = vmatpush.bf16.msrb.mxu2 %v3900_v56  ;;  %1489 = vmatpush.bf16.msra.mxu3 %v3931_v4 }
 0x21f   :  { %1448 = vmatpush.bf16.msrb.mxu0 %v3942_v9  ;;  %1462 = vmatpush.bf16.msrb.mxu1 %v3944_v12 }
 0x220   :  { %1476 = vmatpush.bf16.msrb.mxu2 %v3911_v60  ;;  %1490 = vmatpush.bf16.msra.mxu3 %v3972_v17 }
 0x27e   :  { %v1050_v50 = vpop.f32.mrf.mxu0  ;;  %v1064_v38 = vpop.f32.mrf.mxu1 }
 0x27f   :  { %v1097_v32 = vadd.f32 %v1050_v50, %v201_v8  ;;  %v1098_v0 = vadd.f32 %v1064_v38, %v250_v2  ;;  %v5158_v2 = vld [vmem:[#allocation59_spill] sm:$0xff]  ;;  %v5159_v50 = vld [vmem:[#allocation16_spill] sm:$0xff] }
 0x280   :  { %v299_v38 = vadd.f32 %v5159_v50, %v5158_v2 }
 0x281   :  { %v2935_v22 = vmul.f32 -1.442695, %v1097_v32  ;;  %v2937_v5 = vmul.f32 -1.442695, %v1098_v0  ;;  %v5160_v32 = vld [vmem:[#allocation24_spill] sm:$0xff] }
 0x282   :  { %v350_v0 = vadd.f32 %v5160_v32, %v5154_v7 }
 0x283   :  { %3315 = vpow2.f32 %v2935_v22 }
 0x284   :  { %3317 = vpow2.f32 %v2937_v5 }
 0x285   :  { %v1092_v36 = vpop.f32.mrf.mxu3  ;;  %v1078_v37 = vpop.f32.mrf.mxu2 }
 0x286   :  { %v1100_v33 = vadd.f32 %v1092_v36, %v348_v42  ;;  %v1052_v54 = vpop.f32.mrf.mxu0  ;;  %v1066_v15 = vpop.f32.mrf.mxu1  ;;  %v1099_v5 = vadd.f32 %v1078_v37, %v299_v38 }
 0x287   :  { %v1101_v59 = vadd.f32 %v1052_v54, %v203_v46  ;;  %v1102_v23 = vadd.f32 %v1066_v15, %v252_v27 }
 0x288   :  { %v2939_v30 = vmul.f32 -1.442695, %v1100_v33 }
 0x289   :  { %v3316_v20 = vpop.eup %3315  ;;  %v2936_v3 = vmul.f32 -1.442695, %v1101_v59  ;;  %v2938_v18 = vmul.f32 -1.442695, %v1102_v23  ;;  %v5161_v23 = vld [vmem:[#allocation20_spill] sm:$0xff] }
 0x28a   :  { %v3318_v43 = vpop.eup %3317  ;;  %v1111_v21 = vadd.f32 1.0, %v3316_v20  ;;  %3319 = vpow2.f32 %v2939_v30  ;;  %v301_v30 = vadd.f32 %v5161_v23, %v5158_v2 }
 0x28b   :  { %v1149_v8 = vadd.f32 1.0, %v3318_v43  ;;  %3321 = vpow2.f32 %v2936_v3 }
 0x28c   :  { %3323 = vrcp.f32 %v1111_v21  ;;  %v1122_v37 = vand.u32 2147483647, %v1111_v21  ;;  %v1124_v50 = vand.u32 2147483648, %v1111_v21  ;;  %vm1118_vm3 = vweird.f32 %v1111_v21 }
 0x28d   :  { %3325 = vrcp.f32 %v1149_v8  ;;  %v1094_v22 = vpop.f32.mrf.mxu3  ;;  %v1080_v43 = vpop.f32.mrf.mxu2  ;;  %v1162_v38 = vand.u32 2147483648, %v1149_v8  ;;  %vm1156_vm4 = vweird.f32 %v1149_v8 }
 0x28e   :  { %3327 = vpow2.f32 %v2938_v18  ;;  %v1104_v58 = vadd.f32 %v1094_v22, %v350_v0  ;;  %v1160_v22 = vand.u32 2147483647, %v1149_v8  ;;  %vm1123_vm7 = vcmp.eq.f32.partialorder %v1122_v37, 8.507059e+37 }
 0x28f   :  { %3329 = vtanh.f32 %v1099_v5  ;;  %v1103_v5 = vadd.f32 %v1080_v43, %v301_v30 }
 0x290   :  { %v3320_v42 = vpop.eup %3319  ;;  %v2940_v36 = vmul.f32 -1.442695, %v1104_v58  ;;  %vm1161_vm8 = vcmp.eq.f32.partialorder %v1160_v22, 8.507059e+37 }
 0x291   :  { %v3322_v44 = vpop.eup %3321  ;;  %v4346_v46 = vadd.f32 1.0, %v3320_v42 }
 0x292   :  { %v3324_v26 = vpop.eup %3323  ;;  %v4348_v27 = vadd.f32 1.0, %v3322_v44 }
 0x293   :  { %v3326_v33 = vpop.eup %3325  ;;  %v1114_v54 = vmul.f32 %v3324_v26, %v1111_v21  ;;  %vm1119_vm1 = vweird.f32 %v3324_v26 }
 0x294   :  { %v3328_v15 = vpop.eup %3327  ;;  %v1152_v59 = vmul.f32 %v3326_v33, %v1149_v8  ;;  %3331 = vrcp.f32 %v4348_v27  ;;  %vm1157_vm2 = vweird.f32 %v3326_v33  ;;  %vm1120_vm5 = vmor %vm1118_vm3, %vm1119_vm1  ;;  %vm1133_vm10 = vweird.f32 %v4348_v27 }
 0x295   :  { %v1115_v20 = vsub.f32 1.0, %v1114_v54  ;;  %3333 = vrcp.f32 %v4346_v46  ;;  %v4354_v3 = vadd.f32 1.0, %v3328_v15  ;;  %v3330_v58 = vpop.eup %3329  ;;  %v1125_v54 = vor.u32 1.1754944e-38, %v1124_v50  ;;  %vm1158_vm6 = vmor %vm1156_vm4, %vm1157_vm2 }
 0x296   :  { %v1153_v18 = vsub.f32 1.0, %v1152_v59  ;;  %3335 = vpow2.f32 %v2940_v36  ;;  %v1163_v36 = vor.u32 1.1754944e-38, %v1162_v38  ;;  %v1137_v38 = vand.u32 2147483647, %v4348_v27 }
 0x297   :  { %v1116_v32 = vmul.f32 %v3324_v26, %v1115_v20  ;;  %3337 = vrcp.f32 %v4354_v3  ;;  %vm1171_vm14 = vweird.f32 %v4354_v3  ;;  %vm1196_vm2 = vweird.f32 %v4346_v46 }
 0x298   :  { %v1154_v0 = vmul.f32 %v3326_v33, %v1153_v18  ;;  %3339 = vtanh.f32 %v1103_v5  ;;  %vm1138_vm13 = vcmp.eq.f32.partialorder %v1137_v38, 8.507059e+37  ;;  %v1202_v38 = vand.u32 2147483648, %v4346_v46 }
 0x299   :  { %v1117_v42 = vadd.f32 %v3324_v26, %v1116_v32 }
 0x29a   :  { %v3332_v44 = vpop.eup %3331  ;;  %v1155_v15 = vadd.f32 %v3326_v33, %v1154_v0 }
 0x29b   :  { %v4357_v59 = vpop.eup %3333  ;;  %v1121_v23 = vsel %vm1120_vm5, %v3324_v26, %v1117_v42  ;;  %v1129_v20 = vmul.f32 %v3332_v44, %v4348_v27  ;;  %v1139_v26 = vand.u32 2147483648, %v4348_v27  ;;  %vm1134_vm9 = vweird.f32 %v3332_v44 }
 0x29c   :  { %v3336_v18 = vpop.eup %3335  ;;  %v1126_v2 = vsel %vm1123_vm7, %v1125_v54, %v1121_v23  ;;  %v1159_v7 = vsel %vm1158_vm6, %v3326_v33, %v1155_v15  ;;  %v1192_v37 = vmul.f32 %v4357_v59, %v4346_v46  ;;  %vm1135_vm12 = vmor %vm1133_vm10, %vm1134_vm9  ;;  %v1175_v54 = vand.u32 2147483647, %v4354_v3 }
 0x29d   :  { %v3338_v30 = vpop.eup %3337  ;;  %v1164_v21 = vsel %vm1161_vm8, %v1163_v36, %v1159_v7  ;;  %v1223_v43 = vmul.f32 %v3330_v58, %v1126_v2  ;;  %v1130_v8 = vsub.f32 1.0, %v1129_v20  ;;  %v1190_v32 = vadd.f32 1.0, %v3336_v18 }
 0x29e   :  { %v1221_v50 = vmul.f32 %v1164_v21, %v4282_v63  ;;  %v1167_v0 = vmul.f32 %v3338_v30, %v4354_v3  ;;  %v1177_v2 = vand.u32 2147483648, %v4354_v3  ;;  %v3340_v63 = vpop.eup %3339  ;;  %vm1172_vm11 = vweird.f32 %v3338_v30 }
 0x29f   :  { %v1131_v42 = vmul.f32 %v3332_v44, %v1130_v8  ;;  %3341 = vrcp.f32 %v1190_v32  ;;  %v1140_v58 = vor.u32 1.1754944e-38, %v1139_v26  ;;  %v1193_v15 = vsub.f32 1.0, %v1192_v37  ;;  %vm1173_vm15 = vmor %vm1171_vm14, %vm1172_vm11 }
 0x2a0   :  { %v4366_v33 = vadd.f32 %v1223_v43, %v1221_v50  ;;  %v1168_v7 = vsub.f32 1.0, %v1167_v0  ;;  %v1178_v21 = vor.u32 1.1754944e-38, %v1177_v2  ;;  %vm1176_vm0 = vcmp.eq.f32.partialorder %v1175_v54, 8.507059e+37 }
 0x2a1   :  { %v1132_v22 = vadd.f32 %v3332_v44, %v1131_v42  ;;  %v1194_v50 = vmul.f32 %v4357_v59, %v1193_v15  ;;  %vm1197_vm1 = vweird.f32 %v4357_v59  ;;  %vm1211_vm4 = vweird.f32 %v1190_v32 }
 0x2a2   :  { %v1169_v5 = vmul.f32 %v3338_v30, %v1168_v7  ;;  %3343 = vtanh.f32 %v4366_v33  ;;  %v1217_v7 = vand.u32 2147483648, %v1190_v32  ;;  %vm1198_vm5 = vmor %vm1196_vm2, %vm1197_vm1  ;;  %v1215_v2 = vand.u32 2147483647, %v1190_v32 }
 0x2a3   :  { %v1136_v36 = vsel %vm1135_vm12, %v3332_v44, %v1132_v22 }
 0x2a4   :  { %v1141_v23 = vsel %vm1138_vm13, %v1140_v58, %v1136_v36  ;;  %v1170_v20 = vadd.f32 %v3338_v30, %v1169_v5  ;;  %v1203_v58 = vor.u32 1.1754944e-38, %v1202_v38  ;;  %v1218_v54 = vor.u32 1.1754944e-38, %v1217_v7 }
 0x2a5   :  { %v3342_v18 = vpop.eup %3341  ;;  %v1224_v27 = vmul.f32 %v3340_v63, %v1141_v23  ;;  %vm1216_vm8 = vcmp.eq.f32.partialorder %v1215_v2, 8.507059e+37 }
 0x2a6   :  { %v1174_v43 = vsel %vm1173_vm15, %v3338_v30, %v1170_v20  ;;  %v1207_v8 = vmul.f32 %v3342_v18, %v1190_v32  ;;  %v1195_v30 = vadd.f32 %v4357_v59, %v1194_v50  ;;  %vm1212_vm3 = vweird.f32 %v3342_v18  ;;  %v5163_v32 = vld [vmem:[#allocation19_spill] sm:$0xff] }
 0x2a7   :  { %v1179_v0 = vsel %vm1176_vm0, %v1178_v21, %v1174_v43  ;;  %vm1213_vm6 = vmor %vm1211_vm4, %vm1212_vm3 }
 0x2a8   :  { %v1222_v26 = vmul.f32 %v1179_v0, %v4291_v49  ;;  %v1208_v42 = vsub.f32 1.0, %v1207_v8  ;;  %v1200_v49 = vand.u32 2147483647, %v4346_v46  ;;  %v1199_v22 = vsel %vm1198_vm5, %v4357_v59, %v1195_v30  ;;  %v3344_v5 = vpop.eup %3343  ;;  %v5162_v46 = vld [vmem:[#allocation18_spill] sm:$0xff]  ;;  %v5165_v30 = vld [vmem:[#allocation28_spill] sm:$0xff] }
 0x2a9   :  { %v206_v59 = vadd.f32 %v5162_v46, %v4156_v13 }
 0x2aa   :  { %v4375_v44 = vadd.f32 %v1224_v27, %v1222_v26  ;;  %v1209_v3 = vmul.f32 %v3342_v18, %v1208_v42  ;;  %vm1201_vm7 = vcmp.eq.f32.partialorder %v1200_v49, 8.507059e+37  ;;  %v5167_v49 = vld [vmem:[#allocation23_spill] sm:$0xff] }
 0x2ab   :  { %v1204_v36 = vsel %vm1201_vm7, %v1203_v58, %v1199_v22  ;;  %v257_v2 = vadd.f32 %v5167_v49, %v5144_v16 }
 0x2ac   :  { %3345 = vtanh.f32 %v4375_v44  ;;  %v1210_v37 = vadd.f32 %v3342_v18, %v1209_v3  ;;  %v1229_v20 = vmul.f32 %v3344_v5, %v1204_v36  ;;  %v5164_v3 = vld [vmem:[#allocation61_spill] sm:$0xff] }
 0x2ad   :  { %v353_v38 = vadd.f32 %v5165_v30, %v5164_v3 }
 0x2ae   :  { %v1214_v63 = vsel %vm1213_vm6, %v3342_v18, %v1210_v37  ;;  %v255_v18 = vadd.f32 %v5163_v32, %v5144_v16  ;;  %v5166_v37 = vld [vmem:[#allocation22_spill] sm:$0xff] }
 0x2af   :  { %v1219_v23 = vsel %vm1216_vm8, %v1218_v54, %v1214_v63  ;;  %v208_v7 = vadd.f32 %v5166_v37, %v4156_v13 }
 0x2b2   :  { %v3346_v15 = vpop.eup %3345 }
 0x2b3   :  { %v1230_v21 = vmul.f32 %v3346_v15, %v1219_v23 }
 0x2b5   :  { %v1240_v43 = vpack.c.bf16 %v1230_v21, %v1229_v20 }
 0x2b7   :  { %1249 = vmatmul.bf16.vlgmr.msra.gmra.mxu0 %v1240_v43  ;;  %1263 = vmatmul.bf16.vlgmr.msra.gmra.mxu1 %v1240_v43 }
 0x2b8   :  { %1277 = vmatmul.bf16.vlgmr.msra.gmra.mxu2 %v1240_v43  ;;  %1291 = vmatmul.bf16.vlgmr.msrb.gmra.mxu3 %v1240_v43 }
 0x2b9   :  { %1641 = vmatpush.bf16.msra.mxu0 %v3638_v28  ;;  %1655 = vmatpush.bf16.msra.mxu1 %v3646_v31 }
 0x2ba   :  { %1669 = vmatpush.bf16.msra.mxu2 %v3695_v47  ;;  %1683 = vmatpush.bf16.msrb.mxu3 %v3669_v39 }
 0x2bd   :  { %1642 = vmatpush.bf16.msra.mxu0 %v3658_v35  ;;  %1656 = vmatpush.bf16.msra.mxu1 %v3674_v40 }
 0x2be   :  { %1670 = vmatpush.bf16.msra.mxu2 %v3742_v61  ;;  %1684 = vmatpush.bf16.msrb.mxu3 %v3706_v51 }
 0x2c1   :  { %1643 = vmatpush.bf16.msra.mxu0 %v3697_v48  ;;  %1657 = vmatpush.bf16.msra.mxu1 %v3710_v52 }
 0x2c2   :  { %1671 = vmatpush.bf16.msra.mxu2 %v3785_v10  ;;  %1685 = vmatpush.bf16.msrb.mxu3 %v3731_v57 }
 0x2c5   :  { %1644 = vmatpush.bf16.msra.mxu0 %v3744_v62  ;;  %1658 = vmatpush.bf16.msra.mxu1 %v3753_v1 }
 0x2c6   :  { %1672 = vmatpush.bf16.msra.mxu2 %v3828_v24  ;;  %1686 = vmatpush.bf16.msrb.mxu3 %v3774_v6 }
 0x2c9   :  { %1645 = vmatpush.bf16.msra.mxu0 %v3787_v11  ;;  %1659 = vmatpush.bf16.msra.mxu1 %v3796_v14 }
 0x2ca   :  { %1673 = vmatpush.bf16.msra.mxu2 %v3856_v34  ;;  %1687 = vmatpush.bf16.msrb.mxu3 %v3817_v19 }
 0x2cd   :  { %1646 = vmatpush.bf16.msra.mxu0 %v3830_v25  ;;  %1660 = vmatpush.bf16.msra.mxu1 %v3839_v29 }
 0x2ce   :  { %1674 = vmatpush.bf16.msra.mxu2 %v3880_v45  ;;  %1688 = vmatpush.bf16.msrb.mxu3 %v3868_v41 }
 0x2d1   :  { %1647 = vmatpush.bf16.msra.mxu0 %v3892_v53  ;;  %1661 = vmatpush.bf16.msra.mxu1 %v3897_v55 }
 0x2d2   :  { %1675 = vmatpush.bf16.msra.mxu2 %v3900_v56  ;;  %1689 = vmatpush.bf16.msrb.mxu3 %v3931_v4 }
 0x2d5   :  { %1648 = vmatpush.bf16.msra.mxu0 %v3942_v9  ;;  %1662 = vmatpush.bf16.msra.mxu1 %v3944_v12 }
 0x2d6   :  { %1676 = vmatpush.bf16.msra.mxu2 %v3911_v60  ;;  %1690 = vmatpush.bf16.msrb.mxu3 %v3972_v17 }
 0x334   :  { %v1250_v27 = vpop.f32.mrf.mxu0  ;;  %v1264_v8 = vpop.f32.mrf.mxu1 }
 0x335   :  { %v1297_v50 = vadd.f32 %v1250_v27, %v206_v59  ;;  %v1298_v0 = vadd.f32 %v1264_v8, %v255_v18  ;;  %v5168_v18 = vld [vmem:[#allocation59_spill] sm:$0xff]  ;;  %v5169_v27 = vld [vmem:[#allocation26_spill] sm:$0xff] }
 0x336   :  { %v304_v8 = vadd.f32 %v5169_v27, %v5168_v18 }
 0x337   :  { %v2941_v26 = vmul.f32 -1.442695, %v1297_v50  ;;  %v2943_v42 = vmul.f32 -1.442695, %v1298_v0  ;;  %v5170_v0 = vld [vmem:[#allocation32_spill] sm:$0xff] }
 0x339   :  { %3347 = vpow2.f32 %v2941_v26  ;;  %v355_v26 = vadd.f32 %v5170_v0, %v5164_v3  ;;  %v5171_v0 = vld [vmem:[#allocation31_spill] sm:$0xff] }
 0x33a   :  { %3349 = vpow2.f32 %v2943_v42 }
 0x33b   :  { %v1292_v22 = vpop.f32.mrf.mxu3  ;;  %v1278_v32 = vpop.f32.mrf.mxu2 }
 0x33c   :  { %v1300_v63 = vadd.f32 %v1292_v22, %v353_v38  ;;  %v1252_v5 = vpop.f32.mrf.mxu0  ;;  %v1266_v58 = vpop.f32.mrf.mxu1  ;;  %v1299_v30 = vadd.f32 %v1278_v32, %v304_v8 }
 0x33d   :  { %v1301_v54 = vadd.f32 %v1252_v5, %v208_v7  ;;  %v1302_v15 = vadd.f32 %v1266_v58, %v257_v2 }
 0x33e   :  { %v2945_v36 = vmul.f32 -1.442695, %v1300_v63 }
 0x33f   :  { %v3348_v23 = vpop.eup %3347  ;;  %v2942_v20 = vmul.f32 -1.442695, %v1301_v54  ;;  %v2944_v46 = vmul.f32 -1.442695, %v1302_v15 }
 0x340   :  { %v3350_v21 = vpop.eup %3349  ;;  %v1311_v43 = vadd.f32 1.0, %v3348_v23  ;;  %3351 = vpow2.f32 %v2945_v36 }
 0x341   :  { %v1349_v59 = vadd.f32 1.0, %v3350_v21  ;;  %3353 = vpow2.f32 %v2942_v20 }
 0x342   :  { %3355 = vrcp.f32 %v1311_v43  ;;  %v1322_v20 = vand.u32 2147483647, %v1311_v43  ;;  %v1324_v21 = vand.u32 2147483648, %v1311_v43  ;;  %vm1318_vm11 = vweird.f32 %v1311_v43 }
 0x343   :  { %3357 = vrcp.f32 %v1349_v59  ;;  %v1294_v50 = vpop.f32.mrf.mxu3  ;;  %v1360_v8 = vand.u32 2147483647, %v1349_v59  ;;  %vm1356_vm12 = vweird.f32 %v1349_v59 }
 0x344   :  { %3359 = vpow2.f32 %v2944_v46  ;;  %v1304_v37 = vadd.f32 %v1294_v50, %v355_v26  ;;  %v1362_v46 = vand.u32 2147483648, %v1349_v59  ;;  %v1280_v50 = vpop.f32.mrf.mxu2  ;;  %v306_v26 = vadd.f32 %v5171_v0, %v5168_v18 }
 0x345   :  { %3361 = vtanh.f32 %v1299_v30  ;;  %vm1323_vm15 = vcmp.eq.f32.partialorder %v1322_v20, 8.507059e+37  ;;  %vm1361_vm0 = vcmp.eq.f32.partialorder %v1360_v8, 8.507059e+37 }
 0x346   :  { %v3352_v42 = vpop.eup %3351  ;;  %v2946_v36 = vmul.f32 -1.442695, %v1304_v37 }
 0x347   :  { %v3354_v38 = vpop.eup %3353  ;;  %v4430_v49 = vadd.f32 1.0, %v3352_v42 }
 0x348   :  { %v3356_v7 = vpop.eup %3355  ;;  %v4432_v2 = vadd.f32 1.0, %v3354_v38  ;;  %v1325_v38 = vor.u32 1.1754944e-38, %v1324_v21 }
 0x349   :  { %v3358_v22 = vpop.eup %3357  ;;  %v1314_v63 = vmul.f32 %v3356_v7, %v1311_v43  ;;  %vm1319_vm9 = vweird.f32 %v3356_v7 }
 0x34a   :  { %v3360_v5 = vpop.eup %3359  ;;  %v1352_v58 = vmul.f32 %v3358_v22, %v1349_v59  ;;  %3363 = vrcp.f32 %v4432_v2  ;;  %vm1357_vm10 = vweird.f32 %v3358_v22  ;;  %vm1320_vm13 = vmor %vm1318_vm11, %vm1319_vm9  ;;  %v1337_v20 = vand.u32 2147483647, %v4432_v2 }
 0x34b   :  { %v1315_v54 = vsub.f32 1.0, %v1314_v63  ;;  %v4435_v15 = vadd.f32 1.0, %v3360_v5  ;;  %3365 = vrcp.f32 %v4430_v49  ;;  %v3362_v30 = vpop.eup %3361  ;;  %vm1358_vm14 = vmor %vm1356_vm12, %vm1357_vm10  ;;  %v1363_v5 = vor.u32 1.1754944e-38, %v1362_v46 }
 0x34c   :  { %v1353_v23 = vsub.f32 1.0, %v1352_v58  ;;  %v1339_v46 = vand.u32 2147483648, %v4432_v2  ;;  %vm1333_vm2 = vweird.f32 %v4432_v2  ;;  %vm1338_vm6 = vcmp.eq.f32.partialorder %v1337_v20, 8.507059e+37 }
 0x34d   :  { %v1316_v32 = vmul.f32 %v3356_v7, %v1315_v54  ;;  %3367 = vrcp.f32 %v4435_v15  ;;  %v1303_v54 = vadd.f32 %v1280_v50, %v306_v26  ;;  %vm1371_vm4 = vweird.f32 %v4435_v15 }
 0x34e   :  { %v1354_v27 = vmul.f32 %v3358_v22, %v1353_v23  ;;  %3369 = vpow2.f32 %v2946_v36  ;;  %vm1396_vm10 = vweird.f32 %v4430_v49 }
 0x34f   :  { %v1317_v42 = vadd.f32 %v3356_v7, %v1316_v32  ;;  %3371 = vtanh.f32 %v1303_v54 }
 0x350   :  { %v1355_v37 = vadd.f32 %v3358_v22, %v1354_v27  ;;  %v3364_v63 = vpop.eup %3363 }
 0x351   :  { %v1321_v58 = vsel %vm1320_vm13, %v3356_v7, %v1317_v42  ;;  %v4441_v23 = vpop.eup %3365  ;;  %v1329_v32 = vmul.f32 %v3364_v63, %v4432_v2  ;;  %vm1334_vm1 = vweird.f32 %v3364_v63  ;;  %v1375_v42 = vand.u32 2147483647, %v4435_v15 }
 0x352   :  { %v1326_v3 = vsel %vm1323_vm15, %v1325_v38, %v1321_v58  ;;  %v1359_v16 = vsel %vm1358_vm14, %v3358_v22, %v1355_v37  ;;  %v1392_v7 = vmul.f32 %v4441_v23, %v4430_v49  ;;  %vm1335_vm5 = vmor %vm1333_vm2, %vm1334_vm1  ;;  %vm1397_vm9 = vweird.f32 %v4441_v23 }
 0x353   :  { %v3368_v43 = vpop.eup %3367  ;;  %v1364_v36 = vsel %vm1361_vm0, %v1363_v5, %v1359_v16  ;;  %v1423_v0 = vmul.f32 %v3362_v30, %v1326_v3  ;;  %v1330_v21 = vsub.f32 1.0, %v1329_v32  ;;  %v1377_v16 = vand.u32 2147483648, %v4435_v15  ;;  %vm1398_vm12 = vmor %vm1396_vm10, %vm1397_vm9 }
 0x354   :  { %v1421_v59 = vmul.f32 %v1364_v36, %v4366_v33  ;;  %v1367_v27 = vmul.f32 %v3368_v43, %v4435_v15  ;;  %v3370_v18 = vpop.eup %3369  ;;  %vm1372_vm3 = vweird.f32 %v3368_v43  ;;  %v1340_v30 = vor.u32 1.1754944e-38, %v1339_v46 }
 0x355   :  { %v1331_v50 = vmul.f32 %v3364_v63, %v1330_v21  ;;  %v1390_v33 = vadd.f32 1.0, %v3370_v18  ;;  %v1393_v38 = vsub.f32 1.0, %v1392_v7  ;;  %v3372_v58 = vpop.eup %3371  ;;  %vm1373_vm7 = vmor %vm1371_vm4, %vm1372_vm3  ;;  %v1378_v54 = vor.u32 1.1754944e-38, %v1377_v16 }
 0x356   :  { %v4450_v22 = vadd.f32 %v1423_v0, %v1421_v59  ;;  %v1368_v8 = vsub.f32 1.0, %v1367_v27  ;;  %vm1376_vm8 = vcmp.eq.f32.partialorder %v1375_v42, 8.507059e+37  ;;  %v1402_v7 = vand.u32 2147483648, %v4430_v49 }
 0x357   :  { %v1332_v26 = vadd.f32 %v3364_v63, %v1331_v50  ;;  %3373 = vrcp.f32 %v1390_v33  ;;  %v1394_v0 = vmul.f32 %v4441_v23, %v1393_v38  ;;  %v1417_v20 = vand.u32 2147483648, %v1390_v33 }
 0x358   :  { %v1369_v3 = vmul.f32 %v3368_v43, %v1368_v8  ;;  %3375 = vtanh.f32 %v4450_v22  ;;  %v1415_v8 = vand.u32 2147483647, %v1390_v33  ;;  %vm1411_vm13 = vweird.f32 %v1390_v33 }
 0x359   :  { %v1336_v37 = vsel %vm1335_vm5, %v3364_v63, %v1332_v26  ;;  %v1395_v63 = vadd.f32 %v4441_v23, %v1394_v0  ;;  %v1403_v26 = vor.u32 1.1754944e-38, %v1402_v7  ;;  %v1418_v42 = vor.u32 1.1754944e-38, %v1417_v20  ;;  %v5176_v7 = vld [vmem:[#allocation36_spill] sm:$0xff] }
 0x35a   :  { %v1370_v5 = vadd.f32 %v3368_v43, %v1369_v3  ;;  %v1341_v32 = vsel %vm1338_vm6, %v1340_v30, %v1336_v37  ;;  %vm1416_vm0 = vcmp.eq.f32.partialorder %v1415_v8, 8.507059e+37  ;;  %v5178_v8 = vld [vmem:[#allocation30_spill] sm:$0xff] }
 0x35b   :  { %v1424_v18 = vmul.f32 %v3372_v58, %v1341_v32  ;;  %v1399_v16 = vsel %vm1398_vm12, %v4441_v23, %v1395_v63  ;;  %v5172_v23 = vld [vmem:[#allocation25_spill] sm:$0xff]  ;;  %v5173_v32 = vld [vmem:[#allocation54_spill] sm:$0xff] }
 0x35c   :  { %v1374_v2 = vsel %vm1373_vm7, %v3368_v43, %v1370_v5 }
 0x35d   :  { %v1379_v36 = vsel %vm1376_vm8, %v1378_v54, %v1374_v2  ;;  %v3374_v15 = vpop.eup %3373  ;;  %v5174_v2 = vld [vmem:[#allocation27_spill] sm:$0xff] }
 0x35e   :  { %v1422_v59 = vmul.f32 %v1379_v36, %v4375_v44  ;;  %v1407_v27 = vmul.f32 %v3374_v15, %v1390_v33  ;;  %v1400_v44 = vand.u32 2147483647, %v4430_v49  ;;  %vm1412_vm11 = vweird.f32 %v3374_v15  ;;  %v3376_v3 = vpop.eup %3375 }
 0x35f   :  { %vm1413_vm14 = vmor %vm1411_vm13, %vm1412_vm11  ;;  %v211_v33 = vadd.f32 %v5172_v23, %v4156_v13 }
 0x360   :  { %v4458_v21 = vadd.f32 %v1424_v18, %v1422_v59  ;;  %v1408_v43 = vsub.f32 1.0, %v1407_v27  ;;  %vm1401_vm15 = vcmp.eq.f32.partialorder %v1400_v44, 8.507059e+37  ;;  %v260_v18 = vadd.f32 %v5174_v2, %v5173_v32  ;;  %v5177_v44 = vld [vmem:[#allocation29_spill] sm:$0xff] }
 0x361   :  { %v1404_v37 = vsel %vm1401_vm15, %v1403_v26, %v1399_v16 }
 0x362   :  { %3377 = vtanh.f32 %v4458_v21  ;;  %v1409_v46 = vmul.f32 %v3374_v15, %v1408_v43  ;;  %v1429_v58 = vmul.f32 %v3376_v3, %v1404_v37  ;;  %v5175_v43 = vld [vmem:[#allocation61_spill] sm:$0xff] }
 0x363   :  { %v358_v20 = vadd.f32 %v5176_v7, %v5175_v43 }
 0x364   :  { %v1410_v50 = vadd.f32 %v3374_v15, %v1409_v46  ;;  %v213_v46 = vadd.f32 %v5177_v44, %v4156_v13 }
 0x366   :  { %v1414_v38 = vsel %vm1413_vm14, %v3374_v15, %v1410_v50  ;;  %v262_v50 = vadd.f32 %v5178_v8, %v5173_v32 }
 0x367   :  { %v1419_v5 = vsel %vm1416_vm0, %v1418_v42, %v1414_v38 }
 0x368   :  { %v3378_v30 = vpop.eup %3377 }
 0x369   :  { %v1430_v49 = vmul.f32 %v3378_v30, %v1419_v5 }
 0x36b   :  { %v1440_v54 = vpack.c.bf16 %v1430_v49, %v1429_v58 }
 0x36d   :  { %1449 = vmatmul.bf16.vlgmr.msrb.gmra.mxu0 %v1440_v54  ;;  %1463 = vmatmul.bf16.vlgmr.msrb.gmra.mxu1 %v1440_v54 }
 0x36e   :  { %1477 = vmatmul.bf16.vlgmr.msrb.gmra.mxu2 %v1440_v54  ;;  %1491 = vmatmul.bf16.vlgmr.msra.gmra.mxu3 %v1440_v54 }
 0x36f   :  { %1841 = vmatpush.bf16.msrb.mxu0 %v3638_v28  ;;  %1855 = vmatpush.bf16.msrb.mxu1 %v3646_v31 }
 0x370   :  { %1869 = vmatpush.bf16.msrb.mxu2 %v3695_v47  ;;  %1883 = vmatpush.bf16.msra.mxu3 %v3669_v39 }
 0x373   :  { %1842 = vmatpush.bf16.msrb.mxu0 %v3658_v35  ;;  %1856 = vmatpush.bf16.msrb.mxu1 %v3674_v40 }
 0x374   :  { %1870 = vmatpush.bf16.msrb.mxu2 %v3742_v61  ;;  %1884 = vmatpush.bf16.msra.mxu3 %v3706_v51 }
 0x377   :  { %1843 = vmatpush.bf16.msrb.mxu0 %v3697_v48  ;;  %1857 = vmatpush.bf16.msrb.mxu1 %v3710_v52 }
 0x378   :  { %1871 = vmatpush.bf16.msrb.mxu2 %v3785_v10  ;;  %1885 = vmatpush.bf16.msra.mxu3 %v3731_v57 }
 0x37b   :  { %1844 = vmatpush.bf16.msrb.mxu0 %v3744_v62  ;;  %1858 = vmatpush.bf16.msrb.mxu1 %v3753_v1 }
 0x37c   :  { %1872 = vmatpush.bf16.msrb.mxu2 %v3828_v24  ;;  %1886 = vmatpush.bf16.msra.mxu3 %v3774_v6 }
 0x37f   :  { %1845 = vmatpush.bf16.msrb.mxu0 %v3787_v11  ;;  %1859 = vmatpush.bf16.msrb.mxu1 %v3796_v14 }
 0x380   :  { %1873 = vmatpush.bf16.msrb.mxu2 %v3856_v34  ;;  %1887 = vmatpush.bf16.msra.mxu3 %v3817_v19 }
 0x383   :  { %1846 = vmatpush.bf16.msrb.mxu0 %v3830_v25  ;;  %1860 = vmatpush.bf16.msrb.mxu1 %v3839_v29 }
 0x384   :  { %1874 = vmatpush.bf16.msrb.mxu2 %v3880_v45  ;;  %1888 = vmatpush.bf16.msra.mxu3 %v3868_v41 }
 0x387   :  { %1847 = vmatpush.bf16.msrb.mxu0 %v3892_v53  ;;  %1861 = vmatpush.bf16.msrb.mxu1 %v3897_v55 }
 0x388   :  { %1875 = vmatpush.bf16.msrb.mxu2 %v3900_v56  ;;  %1889 = vmatpush.bf16.msra.mxu3 %v3931_v4 }
 0x38b   :  { %1848 = vmatpush.bf16.msrb.mxu0 %v3942_v9  ;;  %1862 = vmatpush.bf16.msrb.mxu1 %v3944_v12 }
 0x38c   :  { %1876 = vmatpush.bf16.msrb.mxu2 %v3911_v60  ;;  %1890 = vmatpush.bf16.msra.mxu3 %v3972_v17 }
 0x3ea   :  { %v1450_v36 = vpop.f32.mrf.mxu0  ;;  %v1464_v0 = vpop.f32.mrf.mxu1 }
 0x3eb   :  { %v1497_v59 = vadd.f32 %v1450_v36, %v211_v33  ;;  %v1498_v15 = vadd.f32 %v1464_v0, %v260_v18  ;;  %v5179_v18 = vld [vmem:[#allocation59_spill] sm:$0xff] }
 0x3ec   :  { %v5180_v36 = vld [vmem:[#allocation35_spill] sm:$0xff] }
 0x3ed   :  { %v2947_v27 = vmul.f32 -1.442695, %v1497_v59  ;;  %v2949_v63 = vmul.f32 -1.442695, %v1498_v15  ;;  %v309_v0 = vadd.f32 %v5180_v36, %v5179_v18  ;;  %v5181_v15 = vld [vmem:[#allocation40_spill] sm:$0xff] }
 0x3ef   :  { %3379 = vpow2.f32 %v2947_v27  ;;  %v360_v27 = vadd.f32 %v5181_v15, %v5175_v43  ;;  %v5182_v15 = vld [vmem:[#allocation39_spill] sm:$0xff] }
 0x3f0   :  { %3381 = vpow2.f32 %v2949_v63 }
 0x3f1   :  { %v1492_v16 = vpop.f32.mrf.mxu3  ;;  %v1478_v2 = vpop.f32.mrf.mxu2 }
 0x3f2   :  { %v1500_v3 = vadd.f32 %v1492_v16, %v358_v20  ;;  %v1452_v26 = vpop.f32.mrf.mxu0  ;;  %v1466_v42 = vpop.f32.mrf.mxu1  ;;  %v1499_v7 = vadd.f32 %v1478_v2, %v309_v0 }
 0x3f3   :  { %v1501_v30 = vadd.f32 %v1452_v26, %v213_v46  ;;  %v1502_v38 = vadd.f32 %v1466_v42, %v262_v50 }
 0x3f4   :  { %v2951_v37 = vmul.f32 -1.442695, %v1500_v3 }
 0x3f5   :  { %v3380_v5 = vpop.eup %3379  ;;  %v2948_v58 = vmul.f32 -1.442695, %v1501_v30  ;;  %v2950_v23 = vmul.f32 -1.442695, %v1502_v38 }
 0x3f6   :  { %v3382_v49 = vpop.eup %3381  ;;  %v1511_v54 = vadd.f32 1.0, %v3380_v5  ;;  %3383 = vpow2.f32 %v2951_v37 }
 0x3f7   :  { %v1549_v33 = vadd.f32 1.0, %v3382_v49  ;;  %3385 = vpow2.f32 %v2948_v58 }
 0x3f8   :  { %3387 = vrcp.f32 %v1511_v54  ;;  %v1522_v58 = vand.u32 2147483647, %v1511_v54  ;;  %v1524_v49 = vand.u32 2147483648, %v1511_v54  ;;  %vm1518_vm3 = vweird.f32 %v1511_v54 }
 0x3f9   :  { %3389 = vrcp.f32 %v1549_v33  ;;  %v1494_v59 = vpop.f32.mrf.mxu3  ;;  %v1560_v0 = vand.u32 2147483647, %v1549_v33  ;;  %vm1556_vm4 = vweird.f32 %v1549_v33 }
 0x3fa   :  { %3391 = vpow2.f32 %v2950_v23  ;;  %v1504_v44 = vadd.f32 %v1494_v59, %v360_v27  ;;  %v1562_v23 = vand.u32 2147483648, %v1549_v33  ;;  %v1480_v59 = vpop.f32.mrf.mxu2  ;;  %v311_v27 = vadd.f32 %v5182_v15, %v5179_v18 }
 0x3fb   :  { %3393 = vtanh.f32 %v1499_v7  ;;  %vm1523_vm7 = vcmp.eq.f32.partialorder %v1522_v58, 8.507059e+37  ;;  %vm1561_vm8 = vcmp.eq.f32.partialorder %v1560_v0, 8.507059e+37 }
 0x3fc   :  { %v3384_v63 = vpop.eup %3383  ;;  %v2952_v37 = vmul.f32 -1.442695, %v1504_v44 }
 0x3fd   :  { %v3386_v20 = vpop.eup %3385  ;;  %v4514_v8 = vadd.f32 1.0, %v3384_v63 }
 0x3fe   :  { %v3388_v46 = vpop.eup %3387  ;;  %v4516_v50 = vadd.f32 1.0, %v3386_v20  ;;  %v1525_v20 = vor.u32 1.1754944e-38, %v1524_v49 }
 0x3ff   :  { %v3390_v16 = vpop.eup %3389  ;;  %v1514_v3 = vmul.f32 %v3388_v46, %v1511_v54  ;;  %vm1519_vm1 = vweird.f32 %v3388_v46 }
 0x400   :  { %v3392_v26 = vpop.eup %3391  ;;  %v1552_v42 = vmul.f32 %v3390_v16, %v1549_v33  ;;  %3395 = vrcp.f32 %v4516_v50  ;;  %vm1557_vm2 = vweird.f32 %v3390_v16  ;;  %vm1520_vm5 = vmor %vm1518_vm3, %vm1519_vm1  ;;  %v1537_v58 = vand.u32 2147483647, %v4516_v50 }
 0x401   :  { %v1515_v30 = vsub.f32 1.0, %v1514_v3  ;;  %v4519_v38 = vadd.f32 1.0, %v3392_v26  ;;  %3397 = vrcp.f32 %v4514_v8  ;;  %v3394_v7 = vpop.eup %3393  ;;  %vm1558_vm6 = vmor %vm1556_vm4, %vm1557_vm2  ;;  %v1563_v26 = vor.u32 1.1754944e-38, %v1562_v23 }
 0x402   :  { %v1553_v5 = vsub.f32 1.0, %v1552_v42  ;;  %v1539_v23 = vand.u32 2147483648, %v4516_v50  ;;  %vm1533_vm10 = vweird.f32 %v4516_v50  ;;  %vm1538_vm14 = vcmp.eq.f32.partialorder %v1537_v58, 8.507059e+37 }
 0x403   :  { %v1516_v2 = vmul.f32 %v3388_v46, %v1515_v30  ;;  %3399 = vrcp.f32 %v4519_v38  ;;  %v1503_v30 = vadd.f32 %v1480_v59, %v311_v27  ;;  %vm1571_vm12 = vweird.f32 %v4519_v38 }
 0x404   :  { %v1554_v36 = vmul.f32 %v3390_v16, %v1553_v5  ;;  %3401 = vpow2.f32 %v2952_v37  ;;  %vm1596_vm2 = vweird.f32 %v4514_v8 }
 0x405   :  { %v1517_v63 = vadd.f32 %v3388_v46, %v1516_v2  ;;  %3403 = vtanh.f32 %v1503_v30 }
 0x406   :  { %v1555_v44 = vadd.f32 %v3390_v16, %v1554_v36  ;;  %v3396_v3 = vpop.eup %3395 }
 0x407   :  { %v1521_v42 = vsel %vm1520_vm5, %v3388_v46, %v1517_v63  ;;  %v4525_v5 = vpop.eup %3397  ;;  %v1529_v2 = vmul.f32 %v3396_v3, %v4516_v50  ;;  %vm1534_vm9 = vweird.f32 %v3396_v3  ;;  %v1575_v63 = vand.u32 2147483647, %v4519_v38 }
 0x408   :  { %v1526_v43 = vsel %vm1523_vm7, %v1525_v20, %v1521_v42  ;;  %v1559_v32 = vsel %vm1558_vm6, %v3390_v16, %v1555_v44  ;;  %v1592_v46 = vmul.f32 %v4525_v5, %v4514_v8  ;;  %vm1535_vm13 = vmor %vm1533_vm10, %vm1534_vm9  ;;  %vm1597_vm1 = vweird.f32 %v4525_v5 }
 0x409   :  { %v3400_v54 = vpop.eup %3399  ;;  %v1564_v37 = vsel %vm1561_vm8, %v1563_v26, %v1559_v32  ;;  %v1623_v15 = vmul.f32 %v3394_v7, %v1526_v43  ;;  %v1530_v49 = vsub.f32 1.0, %v1529_v2  ;;  %v1577_v32 = vand.u32 2147483648, %v4519_v38  ;;  %vm1598_vm4 = vmor %vm1596_vm2, %vm1597_vm1 }
 0x40a   :  { %v1621_v33 = vmul.f32 %v1564_v37, %v4450_v22  ;;  %v1567_v36 = vmul.f32 %v3400_v54, %v4519_v38  ;;  %v3402_v18 = vpop.eup %3401  ;;  %vm1572_vm11 = vweird.f32 %v3400_v54  ;;  %v1540_v7 = vor.u32 1.1754944e-38, %v1539_v23 }
 0x40b   :  { %v1531_v59 = vmul.f32 %v3396_v3, %v1530_v49  ;;  %v1590_v22 = vadd.f32 1.0, %v3402_v18  ;;  %v1593_v20 = vsub.f32 1.0, %v1592_v46  ;;  %v3404_v42 = vpop.eup %3403  ;;  %vm1573_vm15 = vmor %vm1571_vm12, %vm1572_vm11  ;;  %v1578_v30 = vor.u32 1.1754944e-38, %v1577_v32 }
 0x40c   :  { %v4534_v16 = vadd.f32 %v1623_v15, %v1621_v33  ;;  %v1568_v0 = vsub.f32 1.0, %v1567_v36  ;;  %vm1576_vm0 = vcmp.eq.f32.partialorder %v1575_v63, 8.507059e+37  ;;  %v1602_v46 = vand.u32 2147483648, %v4514_v8 }
 0x40d   :  { %v1532_v27 = vadd.f32 %v3396_v3, %v1531_v59  ;;  %3405 = vrcp.f32 %v1590_v22  ;;  %v1594_v15 = vmul.f32 %v4525_v5, %v1593_v20  ;;  %v1617_v58 = vand.u32 2147483648, %v1590_v22 }
 0x40e   :  { %v1569_v43 = vmul.f32 %v3400_v54, %v1568_v0  ;;  %3407 = vtanh.f32 %v4534_v16  ;;  %v1615_v0 = vand.u32 2147483647, %v1590_v22  ;;  %vm1611_vm5 = vweird.f32 %v1590_v22 }
 0x40f   :  { %v1536_v44 = vsel %vm1535_vm13, %v3396_v3, %v1532_v27  ;;  %v1595_v3 = vadd.f32 %v4525_v5, %v1594_v15  ;;  %v1603_v27 = vor.u32 1.1754944e-38, %v1602_v46  ;;  %v1618_v63 = vor.u32 1.1754944e-38, %v1617_v58 }
 0x410   :  { %v1570_v26 = vadd.f32 %v3400_v54, %v1569_v43  ;;  %v1541_v2 = vsel %vm1538_vm14, %v1540_v7, %v1536_v44  ;;  %vm1616_vm8 = vcmp.eq.f32.partialorder %v1615_v0, 8.507059e+37 }
 0x411   :  { %v1624_v18 = vmul.f32 %v3404_v42, %v1541_v2  ;;  %v1599_v32 = vsel %vm1598_vm4, %v4525_v5, %v1595_v3  ;;  %v5190_v5 = vld [vmem:[#allocation59_spill] sm:$0xff] }
 0x412   :  { %v1574_v50 = vsel %vm1573_vm15, %v3400_v54, %v1570_v26 }
 0x413   :  { %v1579_v37 = vsel %vm1576_vm0, %v1578_v30, %v1574_v50  ;;  %v3406_v38 = vpop.eup %3405 }
 0x414   :  { %v1622_v33 = vmul.f32 %v1579_v37, %v4458_v21  ;;  %v1607_v36 = vmul.f32 %v3406_v38, %v1590_v22  ;;  %v1600_v21 = vand.u32 2147483647, %v4514_v8  ;;  %vm1612_vm3 = vweird.f32 %v3406_v38  ;;  %v3408_v43 = vpop.eup %3407  ;;  %v5191_v22 = vld [vmem:[#allocation45_spill] sm:$0xff] }
 0x415   :  { %vm1613_vm6 = vmor %vm1611_vm5, %vm1612_vm3  ;;  %v314_v2 = vadd.f32 %v5191_v22, %v5190_v5 }
 0x416   :  { %v4542_v49 = vadd.f32 %v1624_v18, %v1622_v33  ;;  %v1608_v54 = vsub.f32 1.0, %v1607_v36  ;;  %vm1601_vm7 = vcmp.eq.f32.partialorder %v1600_v21, 8.507059e+37  ;;  %v5192_v18 = vld [vmem:[#allocation47_spill] sm:$0xff] }
 0x417   :  { %v1604_v44 = vsel %vm1601_vm7, %v1603_v27, %v1599_v32 }
 0x418   :  { %3409 = vtanh.f32 %v4542_v49  ;;  %v1609_v23 = vmul.f32 %v3406_v38, %v1608_v54  ;;  %v1629_v42 = vmul.f32 %v3408_v43, %v1604_v44 }
 0x41a   :  { %v1610_v59 = vadd.f32 %v3406_v38, %v1609_v23 }
 0x41c   :  { %v1614_v20 = vsel %vm1613_vm6, %v3406_v38, %v1610_v59 }
 0x41d   :  { %v1619_v26 = vsel %vm1616_vm8, %v1618_v63, %v1614_v20 }
 0x41e   :  { %v3410_v7 = vpop.eup %3409 }
 0x41f   :  { %v1630_v8 = vmul.f32 %v3410_v7, %v1619_v26 }
 0x421   :  { %v1640_v30 = vpack.c.bf16 %v1630_v8, %v1629_v42 }
 0x423   :  { %1649 = vmatmul.bf16.vlgmr.msra.gmra.mxu0 %v1640_v30  ;;  %1663 = vmatmul.bf16.vlgmr.msra.gmra.mxu1 %v1640_v30 }
 0x424   :  { %1677 = vmatmul.bf16.vlgmr.msra.gmra.mxu2 %v1640_v30  ;;  %1691 = vmatmul.bf16.vlgmr.msrb.gmra.mxu3 %v1640_v30  ;;  %v5193_v30 = vld [vmem:[#allocation50_spill] sm:$0xff] }
 0x425   :  { %2041 = vmatpush.bf16.msra.mxu0 %v3638_v28  ;;  %2055 = vmatpush.bf16.msra.mxu1 %v3646_v31  ;;  %v5183_v28 = vld [vmem:[#allocation33_spill] sm:$0xff] }
 0x426   :  { %2069 = vmatpush.bf16.msra.mxu2 %v3695_v47  ;;  %2083 = vmatpush.bf16.msrb.mxu3 %v3669_v39  ;;  %v216_v31 = vadd.f32 %v5183_v28, %v4156_v13  ;;  %v5185_v39 = vld [vmem:[#allocation34_spill] sm:$0xff]  ;;  %v316_v28 = vadd.f32 %v5193_v30, %v5190_v5 }
 0x429   :  { %2042 = vmatpush.bf16.msra.mxu0 %v3658_v35  ;;  %2056 = vmatpush.bf16.msra.mxu1 %v3674_v40  ;;  %v5184_v35 = vld [vmem:[#allocation54_spill] sm:$0xff] }
 0x42a   :  { %2070 = vmatpush.bf16.msra.mxu2 %v3742_v61  ;;  %2084 = vmatpush.bf16.msrb.mxu3 %v3706_v51  ;;  %v265_v40 = vadd.f32 %v5185_v39, %v5184_v35 }
 0x42d   :  { %2043 = vmatpush.bf16.msra.mxu0 %v3697_v48  ;;  %2057 = vmatpush.bf16.msra.mxu1 %v3710_v52 }
 0x42e   :  { %2071 = vmatpush.bf16.msra.mxu2 %v3785_v10  ;;  %2085 = vmatpush.bf16.msrb.mxu3 %v3731_v57  ;;  %v5188_v10 = vld [vmem:[#allocation37_spill] sm:$0xff] }
 0x431   :  { %2044 = vmatpush.bf16.msra.mxu0 %v3744_v62  ;;  %2058 = vmatpush.bf16.msra.mxu1 %v3753_v1  ;;  %v5186_v62 = vld [vmem:[#allocation61_spill] sm:$0xff]  ;;  %v5187_v1 = vld [vmem:[#allocation43_spill] sm:$0xff] }
 0x432   :  { %2072 = vmatpush.bf16.msra.mxu2 %v3828_v24  ;;  %2086 = vmatpush.bf16.msrb.mxu3 %v3774_v6  ;;  %v363_v6 = vadd.f32 %v5187_v1, %v5186_v62  ;;  %v365_v37 = vadd.f32 %v5192_v18, %v5186_v62 }
 0x435   :  { %2045 = vmatpush.bf16.msra.mxu0 %v3787_v11  ;;  %2059 = vmatpush.bf16.msra.mxu1 %v3796_v14  ;;  %v218_v11 = vadd.f32 %v5188_v10, %v4156_v13  ;;  %v5189_v14 = vld [vmem:[#allocation38_spill] sm:$0xff] }
 0x436   :  { %2073 = vmatpush.bf16.msra.mxu2 %v3856_v34  ;;  %2087 = vmatpush.bf16.msrb.mxu3 %v3817_v19  ;;  %v267_v19 = vadd.f32 %v5189_v14, %v5184_v35 }
 0x439   :  { %2046 = vmatpush.bf16.msra.mxu0 %v3830_v25  ;;  %2060 = vmatpush.bf16.msra.mxu1 %v3839_v29 }
 0x43a   :  { %2074 = vmatpush.bf16.msra.mxu2 %v3880_v45  ;;  %2088 = vmatpush.bf16.msrb.mxu3 %v3868_v41 }
 0x43d   :  { %2047 = vmatpush.bf16.msra.mxu0 %v3892_v53  ;;  %2061 = vmatpush.bf16.msra.mxu1 %v3897_v55 }
 0x43e   :  { %2075 = vmatpush.bf16.msra.mxu2 %v3900_v56  ;;  %2089 = vmatpush.bf16.msrb.mxu3 %v3931_v4 }
 0x441   :  { %2048 = vmatpush.bf16.msra.mxu0 %v3942_v9  ;;  %2062 = vmatpush.bf16.msra.mxu1 %v3944_v12 }
 0x442   :  { %2076 = vmatpush.bf16.msra.mxu2 %v3911_v60  ;;  %2090 = vmatpush.bf16.msrb.mxu3 %v3972_v17 }
 0x4a0   :  { %v1650_v47 = vpop.f32.mrf.mxu0  ;;  %v1664_v48 = vpop.f32.mrf.mxu1 }
 0x4a1   :  { %v1697_v51 = vadd.f32 %v1650_v47, %v216_v31  ;;  %v1698_v52 = vadd.f32 %v1664_v48, %v265_v40 }
 0x4a3   :  { %v2953_v57 = vmul.f32 -1.442695, %v1697_v51  ;;  %v2955_v61 = vmul.f32 -1.442695, %v1698_v52 }
 0x4a5   :  { %3411 = vpow2.f32 %v2953_v57 }
 0x4a6   :  { %3413 = vpow2.f32 %v2955_v61 }
 0x4a7   :  { %v1692_v24 = vpop.f32.mrf.mxu3  ;;  %v1678_v17 = vpop.f32.mrf.mxu2 }
 0x4a8   :  { %v1700_v25 = vadd.f32 %v1692_v24, %v363_v6  ;;  %v1652_v29 = vpop.f32.mrf.mxu0  ;;  %v1666_v34 = vpop.f32.mrf.mxu1  ;;  %v1699_v33 = vadd.f32 %v1678_v17, %v314_v2 }
 0x4a9   :  { %v1701_v41 = vadd.f32 %v1652_v29, %v218_v11  ;;  %v1702_v45 = vadd.f32 %v1666_v34, %v267_v19 }
 0x4aa   :  { %v2957_v53 = vmul.f32 -1.442695, %v1700_v25 }
 0x4ab   :  { %v3412_v55 = vpop.eup %3411  ;;  %v2954_v56 = vmul.f32 -1.442695, %v1701_v41  ;;  %v2956_v9 = vmul.f32 -1.442695, %v1702_v45 }
 0x4ac   :  { %v3414_v60 = vpop.eup %3413  ;;  %v1711_v4 = vadd.f32 1.0, %v3412_v55  ;;  %3415 = vpow2.f32 %v2957_v53 }
 0x4ad   :  { %v1749_v12 = vadd.f32 1.0, %v3414_v60  ;;  %3417 = vpow2.f32 %v2954_v56 }
 0x4ae   :  { %3419 = vrcp.f32 %v1711_v4  ;;  %v1722_v63 = vand.u32 2147483647, %v1711_v4  ;;  %v1724_v7 = vand.u32 2147483648, %v1711_v4  ;;  %vm1718_vm11 = vweird.f32 %v1711_v4 }
 0x4af   :  { %3421 = vrcp.f32 %v1749_v12  ;;  %v1694_v50 = vpop.f32.mrf.mxu3  ;;  %v1762_v20 = vand.u32 2147483648, %v1749_v12  ;;  %v1760_v42 = vand.u32 2147483647, %v1749_v12  ;;  %v1680_v8 = vpop.f32.mrf.mxu2  ;;  %vm1756_vm12 = vweird.f32 %v1749_v12 }
 0x4b0   :  { %3423 = vpow2.f32 %v2956_v9  ;;  %v1704_v36 = vadd.f32 %v1694_v50, %v365_v37  ;;  %v1725_v40 = vor.u32 1.1754944e-38, %v1724_v7  ;;  %vm1723_vm15 = vcmp.eq.f32.partialorder %v1722_v63, 8.507059e+37 }
 0x4b1   :  { %3425 = vtanh.f32 %v1699_v33  ;;  %v1763_v51 = vor.u32 1.1754944e-38, %v1762_v20  ;;  %v1703_v57 = vadd.f32 %v1680_v8, %v316_v28  ;;  %vm1761_vm0 = vcmp.eq.f32.partialorder %v1760_v42, 8.507059e+37 }
 0x4b2   :  { %v3416_v15 = vpop.eup %3415  ;;  %v2958_v43 = vmul.f32 -1.442695, %v1704_v36 }
 0x4b3   :  { %v3418_v38 = vpop.eup %3417  ;;  %v4598_v54 = vadd.f32 1.0, %v3416_v15 }
 0x4b4   :  { %v3420_v3 = vpop.eup %3419  ;;  %v4600_v46 = vadd.f32 1.0, %v3418_v38 }
 0x4b5   :  { %v3422_v58 = vpop.eup %3421  ;;  %v1714_v21 = vmul.f32 %v3420_v3, %v1711_v4  ;;  %vm1719_vm9 = vweird.f32 %v3420_v3 }
 0x4b6   :  { %v3424_v23 = vpop.eup %3423  ;;  %v1752_v0 = vmul.f32 %v3422_v58, %v1749_v12  ;;  %3427 = vrcp.f32 %v4600_v46  ;;  %vm1757_vm10 = vweird.f32 %v3422_v58  ;;  %vm1720_vm13 = vmor %vm1718_vm11, %vm1719_vm9  ;;  %v1737_v45 = vand.u32 2147483647, %v4600_v46 }
 0x4b7   :  { %v1715_v59 = vsub.f32 1.0, %v1714_v21  ;;  %v4603_v32 = vadd.f32 1.0, %v3424_v23  ;;  %3429 = vrcp.f32 %v4598_v54  ;;  %v3426_v39 = vpop.eup %3425  ;;  %vm1758_vm14 = vmor %vm1756_vm12, %vm1757_vm10  ;;  %v1739_v53 = vand.u32 2147483648, %v4600_v46 }
 0x4b8   :  { %v1753_v27 = vsub.f32 1.0, %v1752_v0  ;;  %vm1733_vm2 = vweird.f32 %v4600_v46  ;;  %vm1738_vm6 = vcmp.eq.f32.partialorder %v1737_v45, 8.507059e+37  ;;  %vm1796_vm10 = vweird.f32 %v4598_v54 }
 0x4b9   :  { %v1716_v44 = vmul.f32 %v3420_v3, %v1715_v59  ;;  %3431 = vrcp.f32 %v4603_v32  ;;  %v1777_v4 = vand.u32 2147483648, %v4603_v32  ;;  %v1775_v17 = vand.u32 2147483647, %v4603_v32 }
 0x4ba   :  { %v1754_v26 = vmul.f32 %v3422_v58, %v1753_v27  ;;  %3433 = vpow2.f32 %v2958_v43  ;;  %vm1771_vm4 = vweird.f32 %v4603_v32  ;;  %v1740_v22 = vor.u32 1.1754944e-38, %v1739_v53 }
 0x4bb   :  { %v1717_v31 = vadd.f32 %v3420_v3, %v1716_v44  ;;  %3435 = vtanh.f32 %v1703_v57  ;;  %v1778_v15 = vor.u32 1.1754944e-38, %v1777_v4  ;;  %vm1776_vm8 = vcmp.eq.f32.partialorder %v1775_v17, 8.507059e+37 }
 0x4bc   :  { %v1755_v47 = vadd.f32 %v3422_v58, %v1754_v26  ;;  %v3428_v48 = vpop.eup %3427  ;;  %v1802_v43 = vand.u32 2147483648, %v4598_v54 }
 0x4bd   :  { %v1721_v52 = vsel %vm1720_vm13, %v3420_v3, %v1717_v31  ;;  %v4609_v61 = vpop.eup %3429  ;;  %v1729_v10 = vmul.f32 %v3428_v48, %v4600_v46  ;;  %vm1734_vm1 = vweird.f32 %v3428_v48 }
 0x4be   :  { %v1726_v1 = vsel %vm1723_vm15, %v1725_v40, %v1721_v52  ;;  %v1759_v6 = vsel %vm1758_vm14, %v3422_v58, %v1755_v47  ;;  %v1792_v41 = vmul.f32 %v4609_v61, %v4598_v54  ;;  %vm1735_vm5 = vmor %vm1733_vm2, %vm1734_vm1  ;;  %vm1797_vm9 = vweird.f32 %v4609_v61  ;;  %v5195_v52 = vld [vmem:[#allocation42_spill] sm:$0xff] }
 0x4bf   :  { %v3432_v11 = vpop.eup %3431  ;;  %v1764_v14 = vsel %vm1761_vm0, %v1763_v51, %v1759_v6  ;;  %v1823_v19 = vmul.f32 %v3426_v39, %v1726_v1  ;;  %v1730_v25 = vsub.f32 1.0, %v1729_v10  ;;  %vm1798_vm12 = vmor %vm1796_vm10, %vm1797_vm9  ;;  %v1803_v42 = vor.u32 1.1754944e-38, %v1802_v43 }
 0x4c0   :  { %v1821_v24 = vmul.f32 %v1764_v14, %v4534_v16  ;;  %v1767_v29 = vmul.f32 %v3432_v11, %v4603_v32  ;;  %v3434_v34 = vpop.eup %3433  ;;  %vm1772_vm3 = vweird.f32 %v3432_v11  ;;  %v1793_v2 = vsub.f32 1.0, %v1792_v41 }
 0x4c1   :  { %v1731_v60 = vmul.f32 %v3428_v48, %v1730_v25  ;;  %v1790_v16 = vadd.f32 1.0, %v3434_v34  ;;  %v3436_v37 = vpop.eup %3435  ;;  %vm1773_vm7 = vmor %vm1771_vm4, %vm1772_vm3  ;;  %v270_v57 = vadd.f32 %v5195_v52, %v5184_v35  ;;  %v5197_v25 = vld [vmem:[#allocation44_spill] sm:$0xff]  ;;  %v5198_v34 = vld [vmem:[#allocation46_spill] sm:$0xff] }
 0x4c2   :  { %v4618_v55 = vadd.f32 %v1823_v19, %v1821_v24  ;;  %v1768_v56 = vsub.f32 1.0, %v1767_v29  ;;  %v1794_v46 = vmul.f32 %v4609_v61, %v1793_v2  ;;  %v5196_v19 = vld [vmem:[#allocation51_spill] sm:$0xff]  ;;  %v223_v29 = vadd.f32 %v5197_v25, %v4156_v13 }
 0x4c3   :  { %v1732_v12 = vadd.f32 %v3428_v48, %v1731_v60  ;;  %3437 = vrcp.f32 %v1790_v16  ;;  %v1817_v27 = vand.u32 2147483648, %v1790_v16  ;;  %v1815_v7 = vand.u32 2147483647, %v1790_v16 }
 0x4c4   :  { %v1769_v9 = vmul.f32 %v3432_v11, %v1768_v56  ;;  %3439 = vtanh.f32 %v4618_v55  ;;  %v1795_v59 = vadd.f32 %v4609_v61, %v1794_v46  ;;  %vm1811_vm13 = vweird.f32 %v1790_v16 }
 0x4c5   :  { %v1736_v50 = vsel %vm1735_vm5, %v3428_v48, %v1732_v12  ;;  %v1818_v8 = vor.u32 1.1754944e-38, %v1817_v27  ;;  %vm1816_vm0 = vcmp.eq.f32.partialorder %v1815_v7, 8.507059e+37  ;;  %v5194_v48 = vld [vmem:[#allocation41_spill] sm:$0xff]  ;;  %v368_v24 = vadd.f32 %v5196_v19, %v5186_v62 }
 0x4c6   :  { %v1770_v18 = vadd.f32 %v3432_v11, %v1769_v9  ;;  %v1741_v33 = vsel %vm1738_vm6, %v1740_v22, %v1736_v50  ;;  %v1799_v44 = vsel %vm1798_vm12, %v4609_v61, %v1795_v59  ;;  %v221_v51 = vadd.f32 %v5194_v48, %v4156_v13 }
 0x4c7   :  { %v1824_v36 = vmul.f32 %v3436_v37, %v1741_v33  ;;  %v272_v41 = vadd.f32 %v5198_v34, %v5184_v35 }
 0x4c8   :  { %v1774_v38 = vsel %vm1773_vm7, %v3432_v11, %v1770_v18 }
 0x4c9   :  { %v1779_v3 = vsel %vm1776_vm8, %v1778_v15, %v1774_v38  ;;  %v3438_v21 = vpop.eup %3437  ;;  %v5199_v15 = vld [vmem:[#allocation55_spill] sm:$0xff] }
 0x4ca   :  { %v1822_v58 = vmul.f32 %v1779_v3, %v4542_v49  ;;  %v1807_v0 = vmul.f32 %v3438_v21, %v1790_v16  ;;  %v1800_v49 = vand.u32 2147483647, %v4598_v54  ;;  %vm1812_vm11 = vweird.f32 %v3438_v21  ;;  %v3440_v26 = vpop.eup %3439 }
 0x4cb   :  { %vm1813_vm14 = vmor %vm1811_vm13, %vm1812_vm11  ;;  %v319_v33 = vadd.f32 %v5199_v15, %v5190_v5 }
 0x4cc   :  { %v4626_v23 = vadd.f32 %v1824_v36, %v1822_v58  ;;  %v1808_v32 = vsub.f32 1.0, %v1807_v0  ;;  %vm1801_vm15 = vcmp.eq.f32.partialorder %v1800_v49, 8.507059e+37  ;;  %v5200_v36 = vld [vmem:[#allocation56_spill] sm:$0xff] }
 0x4cd   :  { %v1804_v31 = vsel %vm1801_vm15, %v1803_v42, %v1799_v44  ;;  %v370_v3 = vadd.f32 %v5200_v36, %v5186_v62 }
 0x4ce   :  { %3441 = vtanh.f32 %v4626_v23  ;;  %v1809_v63 = vmul.f32 %v3438_v21, %v1808_v32  ;;  %v1829_v40 = vmul.f32 %v3440_v26, %v1804_v31 }
 0x4d0   :  { %v1810_v20 = vadd.f32 %v3438_v21, %v1809_v63 }
 0x4d2   :  { %v1814_v28 = vsel %vm1813_vm14, %v3438_v21, %v1810_v20 }
 0x4d3   :  { %v1819_v39 = vsel %vm1816_vm0, %v1818_v8, %v1814_v28 }
 0x4d4   :  { %v3442_v30 = vpop.eup %3441 }
 0x4d5   :  { %v1830_v54 = vmul.f32 %v3442_v30, %v1819_v39 }
 0x4d7   :  { %v1840_v47 = vpack.c.bf16 %v1830_v54, %v1829_v40 }
 0x4d9   :  { %1849 = vmatmul.bf16.vlgmr.msrb.gmra.mxu0 %v1840_v47  ;;  %1863 = vmatmul.bf16.vlgmr.msrb.gmra.mxu1 %v1840_v47 }
 0x4da   :  { %1877 = vmatmul.bf16.vlgmr.msrb.gmra.mxu2 %v1840_v47  ;;  %1891 = vmatmul.bf16.vlgmr.msra.gmra.mxu3 %v1840_v47  ;;  %v5201_v47 = vld [vmem:[#allocation57_spill] sm:$0xff] }
 0x4db   :  { %v321_v48 = vadd.f32 %v5201_v47, %v5190_v5 }
 0x556   :  { %v1850_v61 = vpop.f32.mrf.mxu0  ;;  %v1864_v1 = vpop.f32.mrf.mxu1 }
 0x557   :  { %v1897_v6 = vadd.f32 %v1850_v61, %v221_v51  ;;  %v1898_v10 = vadd.f32 %v1864_v1, %v270_v57 }
 0x559   :  { %v2959_v11 = vmul.f32 -1.442695, %v1897_v6  ;;  %v2961_v14 = vmul.f32 -1.442695, %v1898_v10 }
 0x55b   :  { %3443 = vpow2.f32 %v2959_v11 }
 0x55c   :  { %3445 = vpow2.f32 %v2961_v14 }
 0x55d   :  { %v1892_v45 = vpop.f32.mrf.mxu3  ;;  %v1878_v37 = vpop.f32.mrf.mxu2 }
 0x55e   :  { %v1900_v53 = vadd.f32 %v1892_v45, %v368_v24  ;;  %v1852_v56 = vpop.f32.mrf.mxu0  ;;  %v1866_v60 = vpop.f32.mrf.mxu1  ;;  %v1899_v58 = vadd.f32 %v1878_v37, %v319_v33 }
 0x55f   :  { %v1901_v4 = vadd.f32 %v1852_v56, %v223_v29  ;;  %v1902_v16 = vadd.f32 %v1866_v60, %v272_v41 }
 0x560   :  { %v2963_v9 = vmul.f32 -1.442695, %v1900_v53 }
 0x561   :  { %v3444_v12 = vpop.eup %3443  ;;  %v2960_v17 = vmul.f32 -1.442695, %v1901_v4  ;;  %v2962_v50 = vmul.f32 -1.442695, %v1902_v16 }
 0x562   :  { %v3446_v22 = vpop.eup %3445  ;;  %v1911_v2 = vadd.f32 1.0, %v3444_v12  ;;  %3447 = vpow2.f32 %v2963_v9 }
 0x563   :  { %v1949_v18 = vadd.f32 1.0, %v3446_v22  ;;  %3449 = vpow2.f32 %v2960_v17 }
 0x564   :  { %3451 = vrcp.f32 %v1911_v2  ;;  %v1922_v8 = vand.u32 2147483647, %v1911_v2  ;;  %v1924_v30 = vand.u32 2147483648, %v1911_v2  ;;  %vm1918_vm3 = vweird.f32 %v1911_v2 }
 0x565   :  { %3453 = vrcp.f32 %v1949_v18  ;;  %v1894_v38 = vpop.f32.mrf.mxu3  ;;  %v1962_v28 = vand.u32 2147483648, %v1949_v18  ;;  %v1960_v40 = vand.u32 2147483647, %v1949_v18  ;;  %v1880_v54 = vpop.f32.mrf.mxu2  ;;  %vm1956_vm4 = vweird.f32 %v1949_v18 }
 0x566   :  { %3455 = vpow2.f32 %v2962_v50  ;;  %v1904_v0 = vadd.f32 %v1894_v38, %v370_v3  ;;  %v1925_v57 = vor.u32 1.1754944e-38, %v1924_v30  ;;  %vm1923_vm7 = vcmp.eq.f32.partialorder %v1922_v8, 8.507059e+37 }
 0x567   :  { %3457 = vtanh.f32 %v1899_v58  ;;  %v1963_v6 = vor.u32 1.1754944e-38, %v1962_v28  ;;  %v1903_v11 = vadd.f32 %v1880_v54, %v321_v48  ;;  %vm1961_vm8 = vcmp.eq.f32.partialorder %v1960_v40, 8.507059e+37 }
 0x568   :  { %v3448_v46 = vpop.eup %3447  ;;  %v2964_v26 = vmul.f32 -1.442695, %v1904_v0 }
 0x569   :  { %v3450_v21 = vpop.eup %3449  ;;  %v4650_v32 = vadd.f32 1.0, %v3448_v46 }
 0x56a   :  { %v3452_v59 = vpop.eup %3451  ;;  %v4652_v43 = vadd.f32 1.0, %v3450_v21 }
 0x56b   :  { %v3454_v27 = vpop.eup %3453  ;;  %v1914_v49 = vmul.f32 %v3452_v59, %v1911_v2  ;;  %vm1919_vm1 = vweird.f32 %v3452_v59 }
 0x56c   :  { %v3456_v63 = vpop.eup %3455  ;;  %v1952_v7 = vmul.f32 %v3454_v27, %v1949_v18  ;;  %3459 = vrcp.f32 %v4652_v43  ;;  %vm1957_vm2 = vweird.f32 %v3454_v27  ;;  %vm1920_vm5 = vmor %vm1918_vm3, %vm1919_vm1  ;;  %v1937_v16 = vand.u32 2147483647, %v4652_v43 }
 0x56d   :  { %v1915_v20 = vsub.f32 1.0, %v1914_v49  ;;  %v4655_v44 = vadd.f32 1.0, %v3456_v63  ;;  %3461 = vrcp.f32 %v4650_v32  ;;  %v3458_v52 = vpop.eup %3457  ;;  %vm1958_vm6 = vmor %vm1956_vm4, %vm1957_vm2  ;;  %v1939_v9 = vand.u32 2147483648, %v4652_v43 }
 0x56e   :  { %v1953_v42 = vsub.f32 1.0, %v1952_v7  ;;  %vm1933_vm10 = vweird.f32 %v4652_v43  ;;  %vm1938_vm14 = vcmp.eq.f32.partialorder %v1937_v16, 8.507059e+37  ;;  %vm1996_vm2 = vweird.f32 %v4650_v32  ;;  %v3213_v16 = vld [vmem:[%s5059_s5 + $0x64] sm:$0xf] }
 0x56f   :  { %v1916_v31 = vmul.f32 %v3452_v59, %v1915_v20  ;;  %3463 = vrcp.f32 %v4655_v44  ;;  %v1977_v2 = vand.u32 2147483648, %v4655_v44  ;;  %v1975_v37 = vand.u32 2147483647, %v4655_v44 }
 0x570   :  { %v1954_v39 = vmul.f32 %v3454_v27, %v1953_v42  ;;  %3465 = vpow2.f32 %v2964_v26  ;;  %vm1971_vm12 = vweird.f32 %v4655_v44  ;;  %v1940_v15 = vor.u32 1.1754944e-38, %v1939_v9 }
 0x571   :  { %v1917_v51 = vadd.f32 %v3452_v59, %v1916_v31  ;;  %3467 = vtanh.f32 %v1903_v11  ;;  %v1978_v46 = vor.u32 1.1754944e-38, %v1977_v2  ;;  %vm1976_vm0 = vcmp.eq.f32.partialorder %v1975_v37, 8.507059e+37  ;;  %v3211_v37 = vld [vmem:[%s5059_s5 + $0x54] sm:$0xf] }
 0x572   :  { %v1955_v61 = vadd.f32 %v3454_v27, %v1954_v39  ;;  %v3460_v1 = vpop.eup %3459  ;;  %v2002_v26 = vand.u32 2147483648, %v4650_v32 }
 0x573   :  { %v1921_v10 = vsel %vm1920_vm5, %v3452_v59, %v1917_v51  ;;  %v4661_v14 = vpop.eup %3461  ;;  %v1929_v25 = vmul.f32 %v3460_v1, %v4652_v43  ;;  %vm1934_vm9 = vweird.f32 %v3460_v1 }
 0x574   :  { %v1926_v19 = vsel %vm1923_vm7, %v1925_v57, %v1921_v10  ;;  %v1959_v24 = vsel %vm1958_vm6, %v3454_v27, %v1955_v61  ;;  %v1992_v4 = vmul.f32 %v4661_v14, %v4650_v32  ;;  %vm1935_vm13 = vmor %vm1933_vm10, %vm1934_vm9  ;;  %vm1997_vm1 = vweird.f32 %v4661_v14  ;;  %v3215_v10 = vld [vmem:[%s5059_s5 + $0x74] sm:$0xf] }
 0x575   :  { %v3464_v29 = vpop.eup %3463  ;;  %v1964_v34 = vsel %vm1961_vm8, %v1963_v6, %v1959_v24  ;;  %v2023_v41 = vmul.f32 %v3458_v52, %v1926_v19  ;;  %v1930_v53 = vsub.f32 1.0, %v1929_v25  ;;  %vm1998_vm4 = vmor %vm1996_vm2, %vm1997_vm1  ;;  %v2003_v40 = vor.u32 1.1754944e-38, %v2002_v26  ;;  %v3216_v6 = vld [vmem:[%s5059_s5 + $0x74] sm:$0xf0]  ;;  %v5202_v19 = vld [vmem:[#allocation48_spill] sm:$0xff] }
 0x576   :  { %v2021_v45 = vmul.f32 %v1964_v34, %v4618_v55  ;;  %v1967_v56 = vmul.f32 %v3464_v29, %v4655_v44  ;;  %v3466_v60 = vpop.eup %3465  ;;  %vm1972_vm11 = vweird.f32 %v3464_v29  ;;  %v1993_v33 = vsub.f32 1.0, %v1992_v4  ;;  %v5203_v25 = vld [vmem:[#allocation49_spill] sm:$0xff]  ;;  %v3214_v4 = vld [vmem:[%s5059_s5 + $0x64] sm:$0xf0]  ;;  %v3027_v26 = vld [vmem:[%s5059_s5 + $0x40] sm:$0xf] }
 0x577   :  { %v1931_v22 = vmul.f32 %v3460_v1, %v1930_v53  ;;  %v1990_v55 = vadd.f32 1.0, %v3466_v60  ;;  %v3468_v3 = vpop.eup %3467  ;;  %vm1973_vm15 = vmor %vm1971_vm12, %vm1972_vm11  ;;  %v226_v24 = vadd.f32 %v5202_v19, %v4156_v13  ;;  %v3043_v60 = vld [vmem:[%s5059_s5 + $0x60] sm:$0xf]  ;;  %vm2289_vm9 = vcmask 1043456  }
 0x578   :  { %v4670_v12 = vadd.f32 %v2023_v41, %v2021_v45  ;;  %v1968_v17 = vsub.f32 1.0, %v1967_v56  ;;  %v1994_v43 = vmul.f32 %v4661_v14, %v1993_v33  ;;  %v3044_v9 = vor.u32 %v3214_v4, %v3043_v60 }
 0x579   :  { %v1932_v18 = vadd.f32 %v3460_v1, %v1931_v22  ;;  %3469 = vrcp.f32 %v1990_v55  ;;  %v2017_v42 = vand.u32 2147483648, %v1990_v55  ;;  %v2015_v30 = vand.u32 2147483647, %v1990_v55 }
 0x57a   :  { %v1969_v50 = vmul.f32 %v3464_v29, %v1968_v17  ;;  %3471 = vtanh.f32 %v4670_v12  ;;  %v1995_v20 = vadd.f32 %v4661_v14, %v1994_v43  ;;  %vm2011_vm5 = vweird.f32 %v1990_v55  ;;  %v3045_v17 = vld [vmem:[%s5059_s5 + $0x68] sm:$0xf0] }
 0x57b   :  { %v1936_v38 = vsel %vm1935_vm13, %v3460_v1, %v1932_v18  ;;  %v2018_v54 = vor.u32 1.1754944e-38, %v2017_v42  ;;  %vm2016_vm8 = vcmp.eq.f32.partialorder %v2015_v30, 8.507059e+37  ;;  %v3051_v1 = vld [vmem:[%s5059_s5 + $0x70] sm:$0xf]  ;;  %v3212_v18 = vld [vmem:[%s5059_s5 + $0x54] sm:$0xf0] }
 0x57c   :  { %v1970_v36 = vadd.f32 %v3464_v29, %v1969_v50  ;;  %v1941_v58 = vsel %vm1938_vm14, %v1940_v15, %v1936_v38  ;;  %v1999_v31 = vsel %vm1998_vm4, %v4661_v14, %v1995_v20  ;;  %v3052_v11 = vor.u32 %v3216_v6, %v3051_v1  ;;  %v3053_v14 = vld [vmem:[%s5059_s5 + $0x78] sm:$0xf0]  ;;  %v3035_v50 = vld [vmem:[%s5059_s5 + $0x50] sm:$0xf] }
 0x57d   :  { %v2024_v0 = vmul.f32 %v3468_v3, %v1941_v58  ;;  %v3056_v34 = vor.u32 %v3215_v10, %v3053_v14  ;;  %v5204_v15 = vld [vmem:[#allocation58_spill] sm:$0xff]  ;;  %v3036_v38 = vor.u32 %v3212_v18, %v3035_v50  ;;  %v5205_v3 = vld [vmem:[#allocation52_spill] sm:$0xff]  ;;  %v5206_v58 = vld [vmem:[#allocation53_spill] sm:$0xff] }
 0x57e   :  { %v1974_v21 = vsel %vm1973_vm15, %v3464_v29, %v1970_v36  ;;  %v275_v29 = vadd.f32 %v5203_v25, %v5184_v35  ;;  %2404 = vmatpush.bf16.msrb.mxu2 %v3052_v11  ;;  %v373_v33 = vadd.f32 %v5204_v15, %v5186_v62  ;;  %v3037_v36 = vld [vmem:[%s5059_s5 + $0x58] sm:$0xf0]  ;;  %v3207_v10 = vld [vmem:[%s5059_s5 + $0x34] sm:$0xf]  ;;  %v5208_v14 = vld [vmem:[#allocation60_spill] sm:$0xff] }
 0x57f   :  { %v1979_v59 = vsel %vm1976_vm0, %v1978_v46, %v1974_v21  ;;  %v3470_v49 = vpop.eup %3469  ;;  %2418 = vmatpush.bf16.msra.mxu3 %v3056_v34  ;;  %v228_v46 = vadd.f32 %v5205_v3, %v4156_v13  ;;  %v277_v21 = vadd.f32 %v5206_v58, %v5184_v35  ;;  %v3210_v13 = vld [vmem:[%s5059_s5 + $0x44] sm:$0xf0]  ;;  %v3209_v35 = vld [vmem:[%s5059_s5 + $0x44] sm:$0xf]  ;;  %v3021_v11 = vld [vmem:[%s5059_s5 + $0x38] sm:$0xf0]  ;;  %v375_v19 = vadd.f32 %v5208_v14, %v5186_v62 }
 0x580   :  { %v2022_v27 = vmul.f32 %v1979_v59, %v4626_v23  ;;  %v2007_v7 = vmul.f32 %v3470_v49, %v1990_v55  ;;  %v2000_v23 = vand.u32 2147483647, %v4650_v32  ;;  %vm2012_vm3 = vweird.f32 %v3470_v49  ;;  %v3472_v39 = vpop.eup %3471  ;;  %v3011_v34 = vld [vmem:[%s5059_s5 + $0x20] sm:$0xf]  ;;  %v3205_v62 = vld [vmem:[%s5059_s5 + $0x24] sm:$0xf] }
 0x581   :  { %vm2013_vm6 = vmor %vm2011_vm5, %vm2012_vm3  ;;  %v3048_v55 = vor.u32 %v3213_v16, %v3045_v17  ;;  %v3040_v59 = vor.u32 %v3211_v37, %v3037_v36 }
 0x582   :  { %v4678_v63 = vadd.f32 %v2024_v0, %v2022_v27  ;;  %v2008_v44 = vsub.f32 1.0, %v2007_v7  ;;  %vm2001_vm7 = vcmp.eq.f32.partialorder %v2000_v23, 8.507059e+37  ;;  %2405 = vmatpush.bf16.msrb.mxu2 %v3044_v9  ;;  %v3028_v23 = vor.u32 %v3210_v13, %v3027_v26 }
 0x583   :  { %v2004_v51 = vsel %vm2001_vm7, %v2003_v40, %v1999_v31  ;;  %2419 = vmatpush.bf16.msra.mxu3 %v3048_v55 }
 0x584   :  { %3473 = vtanh.f32 %v4678_v63  ;;  %v2009_v8 = vmul.f32 %v3470_v49, %v2008_v44  ;;  %v2029_v57 = vmul.f32 %v3472_v39, %v2004_v51  ;;  %v4753_v51 = vld [vmem:[%s5060_s6 + $0x20] sm:$0xff] }
 0x585   :  { %v2273_v1 = vunpack.c.l.b16 %v4753_v51 }
 0x586   :  { %v2010_v28 = vadd.f32 %v3470_v49, %v2009_v8  ;;  %2406 = vmatpush.bf16.msrb.mxu2 %v3036_v38  ;;  %v3029_v8 = vld [vmem:[%s5059_s5 + $0x48] sm:$0xf0] }
 0x587   :  { %2420 = vmatpush.bf16.msra.mxu3 %v3040_v59  ;;  %v3032_v40 = vor.u32 %v3209_v35, %v3029_v8  ;;  %v2279_v60 = vpack.c.b16 %v2273_v1, %v2273_v1  ;;  %v3221_v8 = vld [vmem:[%s5060_s6 + $0x14] sm:$0xf0]  ;;  %v3003_v1 = vld [vmem:[%s5059_s5 + $0x10] sm:$0xf] }
 0x588   :  { %v2014_v48 = vsel %vm2013_vm6, %v3470_v49, %v2010_v28  ;;  %v5207_v28 = vld [vmem:[#allocation3_spill] sm:$0xff] }
 0x589   :  { %v2019_v52 = vsel %vm2016_vm8, %v2018_v54, %v2014_v48  ;;  %v324_v31 = vadd.f32 %v5207_v28, %v5190_v5  ;;  %v2291_v37 = vsel %vm2289_vm9, %v2279_v60, 0  ;;  %v3218_v60 = vld [vmem:[%s5060_s6 + $0x4] sm:$0xf]  ;;  %vm2285_vm8 = vcmask 326656  }
 0x58a   :  { %v3474_v47 = vpop.eup %3473  ;;  %2407 = vmatpush.bf16.msrb.mxu2 %v3028_v23  ;;  %2301 = vmatpush.bf16.msrb.mxu0 %v2291_v37  ;;  %v2985_v23 = vld [vmem:[%s5060_s6 + $0x10] sm:$0xf] }
 0x58b   :  { %v2030_v32 = vmul.f32 %v3474_v47, %v2019_v52  ;;  %2421 = vmatpush.bf16.msra.mxu3 %v3032_v40  ;;  %v3220_v40 = vld [vmem:[%s5060_s6 + $0x14] sm:$0xf] }
 0x58d   :  { %v2040_v61 = vpack.c.bf16 %v2030_v32, %v2029_v57  ;;  %v3019_v32 = vld [vmem:[%s5059_s5 + $0x30] sm:$0xf] }
 0x58f   :  { %2049 = vmatmul.bf16.vlgmr.msra.gmra.mxu0 %v2040_v61  ;;  %2063 = vmatmul.bf16.vlgmr.msra.gmra.mxu1 %v2040_v61 }
 0x590   :  { %2077 = vmatmul.bf16.vlgmr.msra.gmra.mxu2 %v2040_v61  ;;  %2091 = vmatmul.bf16.vlgmr.msrb.gmra.mxu3 %v2040_v61  ;;  %v3208_v61 = vld [vmem:[%s5059_s5 + $0x34] sm:$0xf0] }
 0x60c   :  { %v2050_v41 = vpop.f32.mrf.mxu0  ;;  %v2064_v45 = vpop.f32.mrf.mxu1 }
 0x60d   :  { %v2097_v53 = vadd.f32 %v2050_v41, %v226_v24  ;;  %v2098_v56 = vadd.f32 %v2064_v45, %v275_v29  ;;  %v5209_v24 = vld [vmem:[#allocation4_spill] sm:$0xff]  ;;  %v3020_v29 = vor.u32 %v3208_v61, %v3019_v32 }
 0x60e   :  { %v326_v25 = vadd.f32 %v5209_v24, %v5190_v5  ;;  %v3206_v41 = vld [vmem:[%s5059_s5 + $0x24] sm:$0xf0]  ;;  %v3013_v5 = vld [vmem:[%s5059_s5 + $0x28] sm:$0xf0] }
 0x60f   :  { %v2965_v22 = vmul.f32 -1.442695, %v2097_v53  ;;  %v2967_v2 = vmul.f32 -1.442695, %v2098_v56  ;;  %v3024_v56 = vor.u32 %v3207_v10, %v3021_v11  ;;  %2408 = vmatpush.bf16.msrb.mxu2 %v3020_v29  ;;  %v3016_v15 = vor.u32 %v3205_v62, %v3013_v5  ;;  %v3005_v10 = vld [vmem:[%s5059_s5 + $0x18] sm:$0xf0] }
 0x610   :  { %v2986_v29 = vor.u32 %v3221_v8, %v2985_v23  ;;  %v3217_v23 = vld [vmem:[%s5062_s1] sm:$0xff]  ;;  %v3237_v8 = vld [vmem:[%s5061_s8 + $0x78] sm:$0xff] }
 0x611   :  { %3475 = vpow2.f32 %v2965_v22  ;;  %2422 = vmatpush.bf16.msra.mxu3 %v3024_v56  ;;  %v3219_v56 = vld [vmem:[%s5060_s6 + $0x4] sm:$0xf0] }
 0x612   :  { %3477 = vpow2.f32 %v2967_v2  ;;  %v3012_v2 = vor.u32 %v3206_v41, %v3011_v34  ;;  %v2977_v34 = vld [vmem:[%s5060_s6] sm:$0xf]  ;;  %2302 = vmatpush.bf16.msrb.mxu0 %v2986_v29 }
 0x613   :  { %v2092_v0 = vpop.f32.mrf.mxu3  ;;  %v2078_v7 = vpop.f32.mrf.mxu2 }
 0x614   :  { %v2100_v43 = vadd.f32 %v2092_v0, %v373_v33  ;;  %v2052_v27 = vpop.f32.mrf.mxu0  ;;  %v2066_v49 = vpop.f32.mrf.mxu1  ;;  %v2099_v57 = vadd.f32 %v2078_v7, %v324_v31  ;;  %2409 = vmatpush.bf16.msrb.mxu2 %v3012_v2  ;;  %v3202_v2 = vld [vmem:[%s5059_s5 + $0x4] sm:$0xf0] }
 0x615   :  { %v2101_v20 = vadd.f32 %v2052_v27, %v228_v46  ;;  %v2102_v44 = vadd.f32 %v2066_v49, %v277_v21  ;;  %v2274_v27 = vunpack.c.h.b16 %v4753_v51  ;;  %2423 = vmatpush.bf16.msra.mxu3 %v3016_v15 }
 0x616   :  { %v2969_v42 = vmul.f32 -1.442695, %v2100_v43 }
 0x617   :  { %v3476_v30 = vpop.eup %3475  ;;  %v2966_v39 = vmul.f32 -1.442695, %v2101_v20  ;;  %v2968_v48 = vmul.f32 -1.442695, %v2102_v44 }
 0x618   :  { %v3478_v54 = vpop.eup %3477  ;;  %v4748_v47 = vadd.f32 1.0, %v3476_v30  ;;  %3479 = vpow2.f32 %v2969_v42 }
 0x619   :  { %v4755_v52 = vadd.f32 1.0, %v3478_v54  ;;  %3481 = vpow2.f32 %v2966_v39  ;;  %v2280_v39 = vpack.c.b16 %v2274_v27, %v2274_v27  ;;  %v2987_v54 = vld [vmem:[%s5060_s6 + $0x18] sm:$0xf0] }
 0x61a   :  { %3483 = vrcp.f32 %v4748_v47  ;;  %v2122_v16 = vand.u32 2147483647, %v4748_v47  ;;  %v2124_v9 = vand.u32 2147483648, %v4748_v47  ;;  %vm2118_vm10 = vweird.f32 %v4748_v47 }
 0x61b   :  { %3485 = vrcp.f32 %v4755_v52  ;;  %v2094_v6 = vpop.f32.mrf.mxu3  ;;  %v2080_v22 = vpop.f32.mrf.mxu2  ;;  %v2162_v50 = vand.u32 2147483648, %v4755_v52  ;;  %v2160_v36 = vand.u32 2147483647, %v4755_v52  ;;  %vm2156_vm11 = vweird.f32 %v4755_v52 }
 0x61c   :  { %3487 = vpow2.f32 %v2968_v48  ;;  %v2104_v53 = vadd.f32 %v2094_v6, %v375_v19  ;;  %v2103_v58 = vadd.f32 %v2080_v22, %v326_v25  ;;  %vm4812_vm12 = vcmp.eq.f32.partialorder %v2122_v16, 8.507059e+37  ;;  %v3203_v6 = vld [vmem:[%s5059_s5 + $0x14] sm:$0xf]  ;;  %v2995_v22 = vld [vmem:[%s5059_s5] sm:$0xf] }
 0x61d   :  { %3489 = vtanh.f32 %v2099_v57  ;;  %v2163_v7 = vor.u32 1.1754944e-38, %v2162_v50  ;;  %v2125_v44 = vor.u32 1.1754944e-38, %v2124_v9  ;;  %vm4818_vm14 = vcmp.eq.f32.partialorder %v2160_v36, 8.507059e+37  ;;  %v2979_v9 = vld [vmem:[%s5060_s6 + $0x8] sm:$0xf0] }
 0x61e   :  { %v3480_v45 = vpop.eup %3479  ;;  %v2970_v21 = vmul.f32 -1.442695, %v2104_v53  ;;  %v2294_v25 = vsel %vm2289_vm9, %v2280_v39, 0  ;;  %v2990_v16 = vor.u32 %v3220_v40, %v2987_v54  ;;  %v2997_v36 = vld [vmem:[%s5059_s5 + $0x8] sm:$0xf0]  ;;  %v2982_v20 = vor.u32 %v3218_v60, %v2979_v9  ;;  %v3228_v40 = vld [vmem:[%s5061_s8 + $0x30] sm:$0xff] }
 0x61f   :  { %v3482_v4 = vpop.eup %3481  ;;  %v4790_v17 = vadd.f32 1.0, %v3480_v45  ;;  %2315 = vmatpush.bf16.msrb.mxu1 %v2294_v25  ;;  %v3227_v60 = vld [vmem:[%s5061_s8 + $0x28] sm:$0xff]  ;;  %v3233_v9 = vld [vmem:[%s5061_s8 + $0x58] sm:$0xff] }
 0x620   :  { %v4792_v55 = vpop.eup %3483  ;;  %v4795_v18 = vadd.f32 1.0, %v3482_v4 }
 0x621   :  { %v4798_v33 = vpop.eup %3485  ;;  %v2114_v38 = vmul.f32 %v4792_v55, %v4748_v47  ;;  %3491 = vrcp.f32 %v4790_v17  ;;  %vm2119_vm13 = vweird.f32 %v4792_v55  ;;  %v2202_v42 = vand.u32 2147483648, %v4790_v17  ;;  %v3204_v47 = vld [vmem:[%s5059_s5 + $0x14] sm:$0xf0] }
 0x622   :  { %v3488_v3 = vpop.eup %3487  ;;  %v2152_v46 = vmul.f32 %v4798_v33, %v4755_v52  ;;  %3493 = vrcp.f32 %v4795_v18  ;;  %vm2157_vm15 = vweird.f32 %v4798_v33  ;;  %v2137_v31 = vand.u32 2147483647, %v4795_v18  ;;  %vm4846_vm0 = vmor %vm2118_vm10, %vm2119_vm13 }
 0x623   :  { %v3490_v0 = vpop.eup %3489  ;;  %v2115_v59 = vsub.f32 1.0, %v2114_v38  ;;  %v4809_v43 = vadd.f32 1.0, %v3488_v3  ;;  %vm2133_vm1 = vweird.f32 %v4795_v18  ;;  %v2139_v61 = vand.u32 2147483648, %v4795_v18  ;;  %vm4874_vm2 = vmor %vm2156_vm11, %vm2157_vm15  ;;  %v3201_v38 = vld [vmem:[%s5059_s5 + $0x4] sm:$0xf]  ;;  %2316 = vmatpush.bf16.msrb.mxu1 %v2990_v16  ;;  %v3225_v16 = vld [vmem:[%s5061_s8 + $0x18] sm:$0xff] }
 0x624   :  { %v2153_v49 = vsub.f32 1.0, %v2152_v46  ;;  %vm2196_vm3 = vweird.f32 %v4790_v17  ;;  %v3004_v46 = vor.u32 %v3204_v47, %v3003_v1  ;;  %vm2138_vm11 = vcmp.eq.f32.partialorder %v2137_v31, 8.507059e+37 }
 0x625   :  { %v2116_v26 = vmul.f32 %v4792_v55, %v2115_v59  ;;  %3495 = vrcp.f32 %v4809_v43  ;;  %v2177_v32 = vand.u32 2147483648, %v4809_v43  ;;  %v2175_v24 = vand.u32 2147483647, %v4809_v43 }
 0x626   :  { %v2154_v35 = vmul.f32 %v4798_v33, %v2153_v49  ;;  %3497 = vtanh.f32 %v2103_v58  ;;  %v3008_v58 = vor.u32 %v3203_v6, %v3005_v10  ;;  %2410 = vmatpush.bf16.msrb.mxu2 %v3004_v46  ;;  %v2140_v39 = vor.u32 1.1754944e-38, %v2139_v61 }
 0x627   :  { %v4832_v30 = vpop.eup %3491  ;;  %v2117_v28 = vadd.f32 %v4792_v55, %v2116_v26  ;;  %3499 = vpow2.f32 %v2970_v21  ;;  %v3229_v21 = vld [vmem:[%s5061_s8 + $0x38] sm:$0xff]  ;;  %v3000_v26 = vor.u32 %v3201_v38, %v2997_v36  ;;  %vm2171_vm10 = vweird.f32 %v4809_v43  ;;  %2317 = vmatpush.bf16.msrb.mxu1 %v2982_v20  ;;  %v3244_v38 = vld [vmem:[%s5064_s10 + $0x30] sm:$0xff]  ;;  %v3243_v36 = vld [vmem:[%s5064_s10 + $0x28] sm:$0xff] }
 0x628   :  { %v2155_v51 = vadd.f32 %v4798_v33, %v2154_v35  ;;  %v2192_v57 = vmul.f32 %v4832_v30, %v4790_v17  ;;  %v4868_v11 = vpop.eup %3493  ;;  %vm2197_vm4 = vweird.f32 %v4832_v30  ;;  %2424 = vmatpush.bf16.msra.mxu3 %v3008_v58  ;;  %vm2176_vm13 = vcmp.eq.f32.partialorder %v2175_v24, 8.507059e+37 }
 0x629   :  { %v2121_v19 = vsel %vm4846_vm0, %v4792_v55, %v2117_v28  ;;  %v2129_v53 = vmul.f32 %v4868_v11, %v4795_v18  ;;  %vm2134_vm5 = vweird.f32 %v4868_v11  ;;  %v2200_v28 = vand.u32 2147483647, %v4790_v17  ;;  %vm4953_vm9 = vmor %vm2196_vm3, %vm2197_vm4 }
 0x62a   :  { %v2126_v52 = vsel %vm4812_vm12, %v2125_v44, %v2121_v19  ;;  %v2159_v41 = vsel %vm4874_vm2, %v4798_v33, %v2155_v51  ;;  %v2193_v45 = vsub.f32 1.0, %v2192_v57  ;;  %v2996_v44 = vor.u32 %v3202_v2, %v2995_v22  ;;  %vm2135_vm7 = vmor %vm2133_vm1, %vm2134_vm5  ;;  %2992 = vmatmul.msk.bf16.vlgmr.msrb.gmra.mxu1 %vm2285_vm8, %v3217_v23  ;;  %v3224_v22 = vld [vmem:[%s5061_s8 + $0x10] sm:$0xff] }
 0x62b   :  { %v4900_v62 = vpop.eup %3495  ;;  %v2164_v5 = vsel %vm4818_vm14, %v2163_v7, %v2159_v41  ;;  %v2223_v4 = vmul.f32 %v3490_v0, %v2126_v52  ;;  %v2130_v15 = vsub.f32 1.0, %v2129_v53  ;;  %v2178_v57 = vor.u32 1.1754944e-38, %v2177_v32  ;;  %2594 = vmatpush.bf16.msra.mxu1 %v3237_v8  ;;  %v3236_v32 = vld [vmem:[%s5061_s8 + $0x70] sm:$0xff] }
 0x62c   :  { %v3498_v55 = vpop.eup %3497  ;;  %v2221_v50 = vmul.f32 %v2164_v5, %v4670_v12  ;;  %v2194_v37 = vmul.f32 %v4832_v30, %v2193_v45  ;;  %v2167_v33 = vmul.f32 %v4900_v62, %v4809_v43  ;;  %v2978_v12 = vor.u32 %v3219_v56, %v2977_v34  ;;  %2411 = vmatpush.bf16.msrb.mxu2 %v2996_v44  ;;  %v3226_v5 = vld [vmem:[%s5061_s8 + $0x20] sm:$0xff]  ;;  %v3232_v2 = vld [vmem:[%s5061_s8 + $0x50] sm:$0xff] }
 0x62d   :  { %v3500_v3 = vpop.eup %3499  ;;  %v2131_v49 = vmul.f32 %v4868_v11, %v2130_v15  ;;  %vm2172_vm6 = vweird.f32 %v4900_v62  ;;  %2425 = vmatpush.bf16.msra.mxu3 %v3000_v26  ;;  %v2203_v18 = vor.u32 1.1754944e-38, %v2202_v42  ;;  %vm2201_vm14 = vcmp.eq.f32.partialorder %v2200_v28, 8.507059e+37  ;;  %v3230_v15 = vld [vmem:[%s5061_s8 + $0x40] sm:$0xff] }
 0x62e   :  { %v2225_v0 = vadd.f32 %v2223_v4, %v2221_v50  ;;  %v2195_v59 = vadd.f32 %v4832_v30, %v2194_v37  ;;  %v2168_v27 = vsub.f32 1.0, %v2167_v33  ;;  %v2190_v7 = vadd.f32 1.0, %v3500_v3  ;;  %2303 = vmatpush.bf16.msrb.mxu0 %v2978_v12  ;;  %vm2173_vm12 = vmor %vm2171_vm10, %vm2172_vm6  ;;  %v3234_v4 = vld [vmem:[%s5061_s8 + $0x60] sm:$0xff]  ;;  %v3231_v50 = vld [vmem:[%s5061_s8 + $0x48] sm:$0xff] }
 0x62f   :  { %v2132_v35 = vadd.f32 %v4868_v11, %v2131_v49  ;;  %2595 = vmatpush.bf16.msra.mxu1 %v3236_v32  ;;  %v3222_v37 = vld [vmem:[%s5061_s8] sm:$0xff]  ;;  %v3245_v33 = vld [vmem:[%s5064_s10 + $0x38] sm:$0xff] }
 0x630   :  { %3501 = vtanh.f32 %v2225_v0  ;;  %v2169_v13 = vmul.f32 %v4900_v62, %v2168_v27  ;;  %v2199_v1 = vsel %vm4953_vm9, %v4832_v30, %v2195_v59  ;;  %v2217_v24 = vand.u32 2147483648, %v2190_v7  ;;  %2679 = vmatpush.bf16.msra.mxu2 %v3245_v33  ;;  %v3242_v3 = vld [vmem:[%s5064_s10 + $0x20] sm:$0xff] }
 0x631   :  { %3503 = vrcp.f32 %v2190_v7  ;;  %v2136_v48 = vsel %vm2135_vm7, %v4868_v11, %v2132_v35  ;;  %2991 = vmatmul.msk.bf16.vlgmr.msrb.gmra.mxu0 %vm2285_vm8, %v3217_v23  ;;  %v2204_v30 = vsel %vm2201_vm14, %v2203_v18, %v2199_v1  ;;  %v2215_v29 = vand.u32 2147483647, %v2190_v7  ;;  %v2432_v0 = vld [vmem:[%s5065_s7] sm:$0x3]  ;;  %v3241_v18 = vld [vmem:[%s5064_s10 + $0x18] sm:$0xff] }
 0x632   :  { %2580 = vmatpush.bf16.msra.mxu0 %v3229_v21  ;;  %v2170_v51 = vadd.f32 %v4900_v62, %v2169_v13  ;;  %v2141_v61 = vsel %vm2138_vm11, %v2140_v39, %v2136_v48  ;;  %vm2211_vm0 = vweird.f32 %v2190_v7  ;;  %v2218_v52 = vor.u32 1.1754944e-38, %v2217_v24  ;;  %v3238_v32 = vld [vmem:[%s5064_s10] sm:$0xff] }
 0x633   :  { %v2224_v47 = vmul.f32 %v3498_v55, %v2141_v61  ;;  %vm2216_vm2 = vcmp.eq.f32.partialorder %v2215_v29, 8.507059e+37  ;;  %v3223_v55 = vld [vmem:[%s5061_s8 + $0x8] sm:$0xff]  ;;  %v2434_v27 = vperm.slane %v2432_v0, 0 }
 0x634   :  { %v2174_v31 = vsel %vm2173_vm12, %v4900_v62, %v2170_v51  ;;  %v3235_v62 = vld [vmem:[%s5061_s8 + $0x68] sm:$0xff]  ;;  %2680 = vmatpush.bf16.msra.mxu2 %v3244_v38 }
 0x635   :  { %v2179_v6 = vsel %vm2176_vm13, %v2178_v57, %v2174_v31  ;;  %2596 = vmatpush.bf16.msra.mxu1 %v3235_v62  ;;  %v3240_v31 = vld [vmem:[%s5064_s10 + $0x10] sm:$0xff] }
 0x636   :  { %2581 = vmatpush.bf16.msra.mxu0 %v3228_v40  ;;  %v3502_v17 = vpop.eup %3501  ;;  %v2222_v42 = vmul.f32 %v2179_v6, %v4678_v63 }
 0x637   :  { %v3504_v10 = vpop.eup %3503  ;;  %v2229_v43 = vmul.f32 %v3502_v17, %v2204_v30 }
 0x638   :  { %v2226_v11 = vadd.f32 %v2224_v47, %v2222_v42  ;;  %v2207_v14 = vmul.f32 %v3504_v10, %v2190_v7  ;;  %vm2212_vm15 = vweird.f32 %v3504_v10  ;;  %2681 = vmatpush.bf16.msra.mxu2 %v3243_v36  ;;  %v2435_v7 = vperm.slane %v2432_v0, 1  ;;  %v3239_v47 = vld [vmem:[%s5064_s10 + $0x8] sm:$0xff]  ;;  %v3249_v42 = vld [vmem:[%s5063_s9] ss:$0 sm:$0xff] }
 0x639   :  { %vm2213_vm1 = vmor %vm2211_vm0, %vm2212_vm15  ;;  %2597 = vmatpush.bf16.msra.mxu1 %v3234_v4 }
 0x63a   :  { %3505 = vtanh.f32 %v2226_v11  ;;  %v2208_v19 = vsub.f32 1.0, %v2207_v14  ;;  %2582 = vmatpush.bf16.msra.mxu0 %v3227_v60 }
 0x63c   :  { %v2209_v25 = vmul.f32 %v3504_v10, %v2208_v19  ;;  %2682 = vmatpush.bf16.msra.mxu2 %v3242_v3 }
 0x63d   :  { %2598 = vmatpush.bf16.msra.mxu1 %v3233_v9 }
 0x63e   :  { %v2210_v34 = vadd.f32 %v3504_v10, %v2209_v25  ;;  %2583 = vmatpush.bf16.msra.mxu0 %v3226_v5 }
 0x640   :  { %v3506_v41 = vpop.eup %3505  ;;  %v2214_v45 = vsel %vm2213_vm1, %v3504_v10, %v2210_v34  ;;  %2683 = vmatpush.bf16.msra.mxu2 %v3241_v18  ;;  %v3250_v34 = vld [vmem:[%s5066_s11] ss:$0 sm:$0xff] }
 0x641   :  { %v2219_v63 = vsel %vm2216_vm2, %v2218_v52, %v2214_v45  ;;  %2599 = vmatpush.bf16.msra.mxu1 %v3232_v2 }
 0x642   :  { %v2230_v53 = vmul.f32 %v3506_v41, %v2219_v63  ;;  %2584 = vmatpush.bf16.msra.mxu0 %v3225_v16 }
 0x644   :  { %v2231_v56 = vpack.c.bf16 %v2230_v53, %v2229_v43  ;;  %2684 = vmatpush.bf16.msra.mxu2 %v3240_v31 }
 0x645   :  { %2600 = vmatpush.bf16.msra.mxu1 %v3231_v50 }
 0x646   :  { %2412 = vmatmul.bf16.vlgmr.msrb.gmra.mxu2 %v2231_v56  ;;  %2426 = vmatmul.bf16.vlgmr.msra.gmra.mxu3 %v2231_v56 }
 0x647   :  { %2585 = vmatpush.bf16.msra.mxu0 %v3224_v22 }
 0x648   :  { %2685 = vmatpush.bf16.msra.mxu2 %v3239_v47 }
 0x649   :  { %2601 = vmatpush.bf16.msra.mxu1 %v3230_v15 }
 0x64b   :  { %2586 = vmatpush.bf16.msra.mxu0 %v3223_v55 }
 0x64c   :  { %2686 = vmatpush.bf16.msra.mxu2 %v3238_v32 }
 0x64f   :  { %2587 = vmatpush.bf16.msra.mxu0 %v3222_v37 }
 0x6a7   :  { %v2319_v58 = vpop.f32.mrf.mxu1 }
 0x6ae   :  { %v2305_v46 = vpop.f32.mrf.mxu0 }
 0x6af   :  { %v2321_v44 = vpop.f32.mrf.mxu1 }
 0x6b6   :  { %v2307_v20 = vpop.f32.mrf.mxu0 }
 0x6c9   :  { %v2413_v12 = vpop.f32.mrf.mxu2  ;;  %v2427_v21 = vpop.f32.mrf.mxu3 }
 0x6ca   :  { %v2414_v59 = vadd.f32 %v2413_v12, %v2305_v46  ;;  %v2428_v49 = vadd.f32 %v2427_v21, %v2319_v58 }
 0x6cc   :  { %v2438_v35 = vadd.f32 %v2434_v27, %v2414_v59  ;;  %v2439_v23 = vadd.f32 %v2435_v7, %v2428_v49 }
 0x6ce   :  { %v2442_v54 = vmax.f32 %v2438_v35, 0.0  ;;  %v2443_v48 = vmax.f32 %v2439_v23, 0.0 }
 0x6d1   :  { %v2415_v26 = vpop.f32.mrf.mxu2  ;;  %v2429_v13 = vpop.f32.mrf.mxu3 }
 0x6d2   :  { %v2416_v8 = vadd.f32 %v2415_v26, %v2307_v20  ;;  %v2430_v28 = vadd.f32 %v2429_v13, %v2321_v44 }
 0x6d4   :  { %v2440_v39 = vadd.f32 %v2434_v27, %v2416_v8  ;;  %v2441_v40 = vadd.f32 %v2435_v7, %v2430_v28 }
 0x6d6   :  { %v2444_v51 = vmax.f32 %v2440_v39, 0.0  ;;  %v2445_v57 = vmax.f32 %v2441_v40, 0.0 }
 0x6d8   :  { %v2446_v61 = vpack.c.bf16 %v2444_v51, %v2442_v54  ;;  %v2447_v1 = vpack.c.bf16 %v2445_v57, %v2443_v48 }
 0x6da   :  { %2588 = vmatmul.bf16.vlgmr.msra.gmra.mxu0 %v2446_v61  ;;  %2602 = vmatmul.bf16.vlgmr.msra.gmra.mxu1 %v2447_v1 }
 0x757   :  { %v2589_v6 = vpop.f32.mrf.mxu0  ;;  %v2603_v17 = vpop.f32.mrf.mxu1 }
 0x758   :  { %v2590_v30 = vadd.f32 %v3249_v42, %v2589_v6 }
 0x75a   :  { %v2604_v43 = vadd.f32 %v2603_v17, %v2590_v30 }
 0x75c   :  { %v2608_v24 = vmax.f32 %v2604_v43, 0.0 }
 0x75f   :  { %v2591_v10 = vpop.f32.mrf.mxu0  ;;  %v2605_v14 = vpop.f32.mrf.mxu1 }
 0x760   :  { %v2592_v11 = vadd.f32 %v3249_v42, %v2591_v10 }
 0x762   :  { %v2606_v19 = vadd.f32 %v2605_v14, %v2592_v11 }
 0x764   :  { %v2609_v25 = vmax.f32 %v2606_v19, 0.0 }
 0x766   :  { %v2610_v29 = vpack.c.bf16 %v2609_v25, %v2608_v24 }
 0x768   :  { %2687 = vmatmul.bf16.vlgmr.msra.gmra.mxu2 %v2610_v29 }
 0x7eb   :  { %v2688_v52 = vpop.f32.mrf.mxu2 }
 0x7ec   :  { %v2689_v41 = vadd.f32 %v3250_v34, %v2688_v52 }
 0x7ee   :  { %2693 = vst [vmem:[%s5067_s12] sm:$0xff] %v2689_v41 }
 0x7f3   :  { %v2690_v45 = vpop.f32.mrf.mxu2 }
 0x7f4   :  { %v2691_v63 = vadd.f32 %v3250_v34, %v2690_v45 }
 0x7f6   :  { %2694 = vst [vmem:[%s5067_s12 + $0x8] sm:$0xff] %v2691_v63 }

</bundles_post_ra>
